<compile_context>
chip_gen: v6e
topology: v6e:2x2x1
jax: 0.10.0
libtpu: 0.0.40
codegen_flags: <defaults>
</compile_context>

<pallas_src>
import math
import functools

import jax
import jax.numpy as jnp
from jax import lax
from jax.experimental import pallas as pl
from jax.experimental.pallas import tpu as pltpu


# Column indices inside the packed per-layer (C, 8) parameter block.
_BQ, _BO, _G1, _BE1, _B2, _G2, _BE2 = range(7)


# ----------------------------- fused encoder-stack kernel ----------------------------

def _encoder_stack_kernel(*refs, nhead, eps, has_mask):
    if has_mask:
        (qin_ref, content_ref, style_ref,
         wq_ref, wkv_ref, wo_ref, w1_ref, w2_ref,
         bkv_ref, b1_ref, vecs_ref, mask_ref, o_ref) = refs
    else:
        (qin_ref, content_ref, style_ref,
         wq_ref, wkv_ref, wo_ref, w1_ref, w2_ref,
         bkv_ref, b1_ref, vecs_ref, o_ref) = refs
        mask_ref = None

    layer = pl.program_id(1)

    # output = content.clone()  -- initialise the VMEM-resident carry at layer 0.
    @pl.when(layer == 0)
    def _():
        o_ref[...] = content_ref[...]

    bb, C, Lq = qin_ref.shape
    Dh = C // nhead

    # Per-layer weights: one dynamic first-axis index into the VMEM-resident stacks
    # (constant index_map => the stacks are DMA'd from HBM exactly once).
    wq = wq_ref[layer]        # (C, C)   pre-scaled by Dh**-0.5 (folded host-side)
    wkv = wkv_ref[layer]      # (C, 2C)  k|v projection fused
    wo = wo_ref[layer]        # (C, C)
    w1 = w1_ref[layer]        # (C, F)
    w2 = w2_ref[layer]        # (F, C)
    bkv = bkv_ref[layer]      # (2C, 1)
    b1 = b1_ref[layer]        # (F, 1)
    vecs = vecs_ref[layer]    # (C, 8) cols: [bq, bo, ln1_g, ln1_b, b2, ln2_g, ln2_b, -]
    bq, bo = vecs[:, _BQ:_BQ + 1], vecs[:, _BO:_BO + 1]
    g1, be1 = vecs[:, _G1:_G1 + 1], vecs[:, _BE1:_BE1 + 1]
    b2 = vecs[:, _B2:_B2 + 1]
    g2, be2 = vecs[:, _G2:_G2 + 1], vecs[:, _BE2:_BE2 + 1]

    # Shared additive mask (already transposed to (Lk, Lq)); hoisted out of the loops.
    mask = mask_ref[...] if has_mask else None

    # Contract dim 0 of both operands (transposed-LHS form; native on the MXU).
    cdims = (((0,), (0,)), ((), ()))
    f32 = jnp.float32

    for b in range(bb):                 # static unroll over the folded batch
        qin = qin_ref[b]                # (C, Lq)  q = content + pos_embed_s
        style = style_ref[b]            # (C, Lk)  k = v = style
        prev = o_ref[b]                 # (C, Lq)  carried `output` from previous layer

        # --- projections (channel-major => per-head slices are sublane-aligned) ---
        q_t = lax.dot_general(wq, qin, cdims, preferred_element_type=f32) + bq       # (C, Lq)
        kv_t = lax.dot_general(wkv, style, cdims, preferred_element_type=f32) + bkv  # (2C, Lk)

        # --- attention: per-head sublane slices, out-proj fused & accumulated ---
        attn = None
        for h in range(nhead):
            r0 = h * Dh
            q_h = q_t[r0:r0 + Dh, :]                  # (Dh, Lq)
            k_h = kv_t[r0:r0 + Dh, :]                 # (Dh, Lk)
            v_h = kv_t[C + r0:C + r0 + Dh, :]         # (Dh, Lk)
            s = lax.dot_general(k_h, q_h, cdims, preferred_element_type=f32)   # (Lk, Lq)
            if has_mask:
                s = s + mask
            s = s - jnp.max(s, axis=0, keepdims=True)
            p = jnp.exp(s)
            p = p / jnp.sum(p, axis=0, keepdims=True)   # exact division (torch parity)
            head = jnp.dot(v_h, p, preferred_element_type=f32)                 # (Dh, Lq)
            part = lax.dot_general(wo[r0:r0 + Dh, :], head, cdims,
                                   preferred_element_type=f32)                 # (C, Lq)
            attn = part if attn is None else attn + part
        attn = attn + bo

        # --- add + LayerNorm 1 (dropout1 = identity); channel axis on sublanes ---
        x = attn + prev
        mu = jnp.mean(x, axis=0, keepdims=True)
        xc = x - mu
        var = jnp.mean(xc * xc, axis=0, keepdims=True)
        x = xc * lax.rsqrt(var + eps) * g1 + be1

        # --- FFN: linear1 -> relu -> linear2 (dropout = identity) ---
        hdn = lax.dot_general(w1, x, cdims, preferred_element_type=f32) + b1   # (F, Lq)
        hdn = jnp.maximum(hdn, 0.0)
        ff = lax.dot_general(w2, hdn, cdims, preferred_element_type=f32) + b2  # (C, Lq)

        # --- add + LayerNorm 2 ---
        y = x + ff
        mu2 = jnp.mean(y, axis=0, keepdims=True)
        yc = y - mu2
        var2 = jnp.mean(yc * yc, axis=0, keepdims=True)
        o_ref[b] = yc * lax.rsqrt(var2 + eps) * g2 + be2


def _batch_fold(B):
    """Batches per block: fold everything on single-TC chips, keep a parallel batch
    axis on multi-TC chips so both TensorCores get work."""
    try:
        kind = jax.devices()[0].device_kind.lower()
    except Exception:
        kind = ""
    multi_tc = any(t in kind for t in ("v7", "v4", "v5p"))
    if not multi_tc:
        return B
    for bb in range(max(B // 2, 1), 0, -1):
        if B % bb == 0:
            return bb
    return 1


def encoder_stack(p, qin, content, style, mask, nhead, eps=1e-5):
    """qin/content/style are channel-major (B, C, L); returns (B, C, Lq)."""
    B, C, Lq = qin.shape
    Lk = style.shape[2]
    n_layers = p['wq'].shape[0]
    has_mask = mask is not None

    bb = _batch_fold(B)
    nb = B // bb

    inputs = [qin, content, style, p['wq'], p['wkv'], p['wo'], p['w1'], p['w2'],
              p['bkv'], p['b1'], p['vecs']]

    def seq_spec(L):
        return pl.BlockSpec((bb, C, L), lambda i, l: (i, 0, 0))

    def resident(arr):  # full-stack block, constant index_map -> VMEM-resident weights
        return pl.BlockSpec(arr.shape, lambda i, l: (0,) * arr.ndim)

    in_specs = [seq_spec(Lq), seq_spec(Lq), seq_spec(Lk),
                resident(p['wq']), resident(p['wkv']), resident(p['wo']),
                resident(p['w1']), resident(p['w2']),
                resident(p['bkv']), resident(p['b1']), resident(p['vecs'])]
    if has_mask:
        # TODO(synk): only a shared 2-D float additive attn_mask is supported; boolean
        # (-inf fill) or per-batch/per-head 3-D masks would be silently wrong.
        inputs.append(jnp.transpose(mask).astype(jnp.float32))   # kernel wants (Lk, Lq)
        in_specs.append(pl.BlockSpec((Lk, Lq), lambda i, l: (0, 0)))

    kernel = functools.partial(_encoder_stack_kernel, nhead=nhead, eps=eps,
                               has_mask=has_mask)
    return pl.pallas_call(
        kernel,
        out_shape=jax.ShapeDtypeStruct((B, C, Lq), jnp.float32),
        grid=(nb, n_layers),
        in_specs=in_specs,
        out_specs=pl.BlockSpec((bb, C, Lq), lambda i, l: (i, 0, 0)),
        compiler_params=pltpu.CompilerParams(
            dimension_semantics=("parallel", "arbitrary")),
    )(*inputs)


# -------------------- dead pos_embed_c pipeline (never consumed; flag-gated) ---------

def _avgpool_matrix(in_size, out_size):
    rows = []
    for i in range(out_size):
        s = (i * in_size) // out_size
        e = -(-((i + 1) * in_size) // out_size)
        rows.append(jnp.zeros((in_size,), jnp.float32).at[s:e].set(1.0 / (e - s)))
    return jnp.stack(rows)


def _bilinear_matrix(in_size, out_size):
    c = (jnp.arange(out_size, dtype=jnp.float32) + 0.5) * (in_size / out_size) - 0.5
    c = jnp.clip(c, 0.0, in_size - 1.0)
    lo = jnp.floor(c).astype(jnp.int32)
    hi = jnp.minimum(lo + 1, in_size - 1)
    w = c - lo.astype(jnp.float32)
    m = jnp.zeros((out_size, in_size), jnp.float32)
    m = m.at[jnp.arange(out_size), lo].add(1.0 - w)
    m = m.at[jnp.arange(out_size), hi].add(w)
    return m


def compute_dead_pos_embed_c(params, content, out_hw):
    # AdaptiveAvgPool2d(18) -> 1x1 conv -> bilinear resize, all as matmuls (plain JAX).
    B, C, H, W = content.shape
    Ph, Pw = _avgpool_matrix(H, 18), _avgpool_matrix(W, 18)
    pooled = jnp.einsum('ph,bchw,qw->bcpq', Ph, content, Pw)
    pos = (jnp.einsum('bcpq,cd->bdpq', pooled, params['conv_w'])
           + params['conv_b'][None, :, None, None])
    Ry, Rx = _bilinear_matrix(18, out_hw[0]), _bilinear_matrix(18, out_hw[1])
    return jnp.einsum('yp,bcpq,xq->bcyx', Ry, pos, Rx)


# ------------------------------------ forward -----------------------------------------

def transformer_forward(params, style, mask, content, pos_embed_c, pos_embed_s, nhead,
                        compute_dead_pos_embed=False):
    del pos_embed_c  # the reference overwrites this argument before any use
    B, C, Hs, Ws = style.shape

    if compute_dead_pos_embed:
        # Dead in the reference (result never consumed); kept only for fidelity testing.
        _ = compute_dead_pos_embed_c(params, content, (Hs, Ws))

    # Channel-major sequences: only free reshapes, no XLA transposes.
    style_seq = style.reshape(B, C, Hs * Ws)
    content_seq = content.reshape(B, C, -1)
    if pos_embed_s is None:
        qin_seq = content_seq
    else:
        qin_seq = content_seq + pos_embed_s.reshape(B, C, -1)

    out = encoder_stack(params, qin_seq, content_seq, style_seq, mask, nhead)  # (B,C,Lq)

    N = out.shape[2]
    Hout = int(math.sqrt(N))          # matches the reference's int(np.sqrt(N))
    return out.reshape(B, C, -1, Hout)


# ----------------------------- parameter init ------------------------------------------

def init_params(key, d_model, nhead, dim_ff, num_layers):
    C, F = d_model, dim_ff
    scale = (C // nhead) ** -0.5       # folded into wq / bq (q scaling in MHA)

    def xavier(k, shape, fan_in, fan_out):
        a = math.sqrt(6.0 / (fan_in + fan_out))
        return jax.random.uniform(k, shape, jnp.float32, -a, a)

    def bias(k, shape):
        return jax.random.uniform(k, shape, jnp.float32, -0.05, 0.05)

    keys = jax.random.split(key, 12)
    p = {
        'wq':  xavier(keys[0], (num_layers, C, C), C, C) * scale,
        'wkv': xavier(keys[1], (num_layers, C, 2 * C), C, C),
        'wo':  xavier(keys[2], (num_layers, C, C), C, C),
        'w1':  xavier(keys[3], (num_layers, C, F), C, F),
        'w2':  xavier(keys[4], (num_layers, F, C), F, C),
        'bkv': bias(keys[5], (num_layers, 2 * C, 1)),
        'b1':  bias(keys[6], (num_layers, F, 1)),
    }
    bq = bias(keys[7], (num_layers, C)) * scale
    bo = bias(keys[8], (num_layers, C))
    b2 = bias(keys[9], (num_layers, C))
    ones = jnp.ones((num_layers, C), jnp.float32)
    zeros = jnp.zeros((num_layers, C), jnp.float32)
    # packed columns: [bq, bo, ln1_g, ln1_b, b2, ln2_g, ln2_b, pad]  -> (L, C, 8)
    p['vecs'] = jnp.stack([bq, bo, ones, zeros, b2, ones, zeros, zeros], axis=-1)
    # 1x1 conv of the dead pos_embed_c pipeline
    p['conv_w'] = xavier(keys[10], (C, C), C, C)
    p['conv_b'] = bias(keys[11], (C,))
    return p


# ----------------------------------- main ----------------------------------------------

if __name__ == "__main__":
    B, d_model, nhead, dim_ff, nlayers = 2, 64, 4, 128, 3
    Hc = Wc = 8     # content spatial (Lq = 64)
    Hs = Ws = 8     # style spatial   (Lk = 64)

    key = jax.random.PRNGKey(0)
    k_params, k_style, k_content, k_pos_s = jax.random.split(key, 4)
    params = init_params(k_params, d_model, nhead, dim_ff, nlayers)

    style = jax.random.normal(k_style, (B, d_model, Hs, Ws), jnp.float32)
    content = jax.random.normal(k_content, (B, d_model, Hc, Wc), jnp.float32)
    pos_embed_s = jax.random.normal(k_pos_s, (B, d_model, Hs, Ws), jnp.float32)
    mask = None           # attn_mask in the reference call path
    pos_embed_c = None    # overwritten before use in the reference; not allocated

    fwd = jax.jit(functools.partial(transformer_forward, nhead=nhead))
    hs = fwd(params, style, mask, content, pos_embed_c, pos_embed_s)
    jax.block_until_ready(hs)

    assert hs.shape == (B, d_model, (Hc * Wc) // 8, 8), hs.shape
    assert bool(jnp.all(jnp.isfinite(hs)))
    print("KERNEL_OK")
</pallas_src>

<mosaic_0001>
module attributes {stable_mosaic.version = 11 : i64} {
  func.func @_encoder_stack_kernel(%arg0: i32, %arg1: i32, %arg2: memref<2x64x64xf32, #tpu.memory_space<vmem>>, %arg3: memref<2x64x64xf32, #tpu.memory_space<vmem>>, %arg4: memref<2x64x64xf32, #tpu.memory_space<vmem>>, %arg5: memref<3x64x64xf32, #tpu.memory_space<vmem>>, %arg6: memref<3x64x128xf32, #tpu.memory_space<vmem>>, %arg7: memref<3x64x64xf32, #tpu.memory_space<vmem>>, %arg8: memref<3x64x128xf32, #tpu.memory_space<vmem>>, %arg9: memref<3x128x64xf32, #tpu.memory_space<vmem>>, %arg10: memref<3x128x1xf32, #tpu.memory_space<vmem>>, %arg11: memref<3x128x1xf32, #tpu.memory_space<vmem>>, %arg12: memref<3x64x8xf32, #tpu.memory_space<vmem>>, %arg13: memref<2x64x64xf32, #tpu.memory_space<vmem>>) attributes {dimension_semantics = [#tpu.dimension_semantics<parallel>, #tpu.dimension_semantics<arbitrary>], iteration_bounds = array<i64: 1, 3>, scalar_prefetch = 0 : i64, scratch_operands = 0 : i64, tpu.core_type = #tpu.core_type<tc>, window_params = [{transform_indices = @transform_0, window_bounds = array<i64: 2, 64, 64>}, {transform_indices = @transform_1, window_bounds = array<i64: 2, 64, 64>}, {transform_indices = @transform_2, window_bounds = array<i64: 2, 64, 64>}, {pipeline_mode = #tpu.pipeline_mode<synchronous>, transform_indices = @transform_3, window_bounds = array<i64: 3, 64, 64>}, {pipeline_mode = #tpu.pipeline_mode<synchronous>, transform_indices = @transform_4, window_bounds = array<i64: 3, 64, 128>}, {pipeline_mode = #tpu.pipeline_mode<synchronous>, transform_indices = @transform_5, window_bounds = array<i64: 3, 64, 64>}, {pipeline_mode = #tpu.pipeline_mode<synchronous>, transform_indices = @transform_6, window_bounds = array<i64: 3, 64, 128>}, {pipeline_mode = #tpu.pipeline_mode<synchronous>, transform_indices = @transform_7, window_bounds = array<i64: 3, 128, 64>}, {pipeline_mode = #tpu.pipeline_mode<synchronous>, transform_indices = @transform_8, window_bounds = array<i64: 3, 128, 1>}, {pipeline_mode = #tpu.pipeline_mode<synchronous>, transform_indices = @transform_9, window_bounds = array<i64: 3, 128, 1>}, {pipeline_mode = #tpu.pipeline_mode<synchronous>, transform_indices = @transform_10, window_bounds = array<i64: 3, 64, 8>}, {transform_indices = @transform_11, window_bounds = array<i64: 2, 64, 64>}]} {
    %c0_i32 = arith.constant 0 : i32
    %0 = arith.cmpi eq, %arg1, %c0_i32 : i32
    %1 = arith.extui %0 : i1 to i32
    %c0_i32_0 = arith.constant 0 : i32
    %2 = arith.cmpi ne, %1, %c0_i32_0 : i32
    scf.if %2 {
      %c0_108 = arith.constant 0 : index
      %c0_109 = arith.constant 0 : index
      %c0_110 = arith.constant 0 : index
      %302 = vector.load %arg3[%c0_108, %c0_109, %c0_110] : memref<2x64x64xf32, #tpu.memory_space<vmem>>, vector<2x64x64xf32>
      %c0_111 = arith.constant 0 : index
      %c0_112 = arith.constant 0 : index
      %c0_113 = arith.constant 0 : index
      %303 = vector.load %arg13[%c0_111, %c0_112, %c0_113] : memref<2x64x64xf32, #tpu.memory_space<vmem>>, vector<2x64x64xf32>
      tpu.vector_store %arg13[%c0_111, %c0_112, %c0_113], %302 {strides = array<i32>} : memref<2x64x64xf32, #tpu.memory_space<vmem>>, vector<2x64x64xf32>,
    } else {
    }
    %3 = arith.index_cast %arg1 : i32 to index
    %c0 = arith.constant 0 : index
    %c0_1 = arith.constant 0 : index
    %4 = vector.load %arg5[%3, %c0, %c0_1] : memref<3x64x64xf32, #tpu.memory_space<vmem>>, vector<1x64x64xf32>
    %5 = vector.shape_cast %4 : vector<1x64x64xf32> to vector<64x64xf32>
    %6 = arith.index_cast %arg1 : i32 to index
    %c0_2 = arith.constant 0 : index
    %c0_3 = arith.constant 0 : index
    %7 = vector.load %arg6[%6, %c0_2, %c0_3] : memref<3x64x128xf32, #tpu.memory_space<vmem>>, vector<1x64x128xf32>
    %8 = vector.shape_cast %7 : vector<1x64x128xf32> to vector<64x128xf32>
    %9 = arith.index_cast %arg1 : i32 to index
    %c0_4 = arith.constant 0 : index
    %c0_5 = arith.constant 0 : index
    %10 = vector.load %arg7[%9, %c0_4, %c0_5] : memref<3x64x64xf32, #tpu.memory_space<vmem>>, vector<1x64x64xf32>
    %11 = vector.shape_cast %10 : vector<1x64x64xf32> to vector<64x64xf32>
    %12 = arith.index_cast %arg1 : i32 to index
    %c0_6 = arith.constant 0 : index
    %c0_7 = arith.constant 0 : index
    %13 = vector.load %arg8[%12, %c0_6, %c0_7] : memref<3x64x128xf32, #tpu.memory_space<vmem>>, vector<1x64x128xf32>
    %14 = vector.shape_cast %13 : vector<1x64x128xf32> to vector<64x128xf32>
    %15 = arith.index_cast %arg1 : i32 to index
    %c0_8 = arith.constant 0 : index
    %c0_9 = arith.constant 0 : index
    %16 = vector.load %arg9[%15, %c0_8, %c0_9] : memref<3x128x64xf32, #tpu.memory_space<vmem>>, vector<1x128x64xf32>
    %17 = vector.shape_cast %16 : vector<1x128x64xf32> to vector<128x64xf32>
    %18 = arith.index_cast %arg1 : i32 to index
    %c0_10 = arith.constant 0 : index
    %c0_11 = arith.constant 0 : index
    %19 = vector.load %arg10[%18, %c0_10, %c0_11] : memref<3x128x1xf32, #tpu.memory_space<vmem>>, vector<1x128x1xf32>
    %20 = vector.shape_cast %19 : vector<1x128x1xf32> to vector<128x1xf32>
    %21 = arith.index_cast %arg1 : i32 to index
    %c0_12 = arith.constant 0 : index
    %c0_13 = arith.constant 0 : index
    %22 = vector.load %arg11[%21, %c0_12, %c0_13] : memref<3x128x1xf32, #tpu.memory_space<vmem>>, vector<1x128x1xf32>
    %23 = vector.shape_cast %22 : vector<1x128x1xf32> to vector<128x1xf32>
    %24 = arith.index_cast %arg1 : i32 to index
    %c0_14 = arith.constant 0 : index
    %c0_15 = arith.constant 0 : index
    %25 = vector.load %arg12[%24, %c0_14, %c0_15] : memref<3x64x8xf32, #tpu.memory_space<vmem>>, vector<1x64x8xf32>
    %26 = vector.shape_cast %25 : vector<1x64x8xf32> to vector<64x8xf32>
    %27 = vector.extract_strided_slice %26 {offsets = [0, 0], sizes = [64, 1], strides = [1, 1]} : vector<64x8xf32> to vector<64x1xf32>
    %28 = vector.extract_strided_slice %26 {offsets = [0, 1], sizes = [64, 1], strides = [1, 1]} : vector<64x8xf32> to vector<64x1xf32>
    %29 = vector.extract_strided_slice %26 {offsets = [0, 2], sizes = [64, 1], strides = [1, 1]} : vector<64x8xf32> to vector<64x1xf32>
    %30 = vector.extract_strided_slice %26 {offsets = [0, 3], sizes = [64, 1], strides = [1, 1]} : vector<64x8xf32> to vector<64x1xf32>
    %31 = vector.extract_strided_slice %26 {offsets = [0, 4], sizes = [64, 1], strides = [1, 1]} : vector<64x8xf32> to vector<64x1xf32>
    %32 = vector.extract_strided_slice %26 {offsets = [0, 5], sizes = [64, 1], strides = [1, 1]} : vector<64x8xf32> to vector<64x1xf32>
    %33 = vector.extract_strided_slice %26 {offsets = [0, 6], sizes = [64, 1], strides = [1, 1]} : vector<64x8xf32> to vector<64x1xf32>
    %c0_16 = arith.constant 0 : index
    %c0_17 = arith.constant 0 : index
    %c0_18 = arith.constant 0 : index
    %34 = vector.load %arg2[%c0_16, %c0_17, %c0_18] : memref<2x64x64xf32, #tpu.memory_space<vmem>>, vector<1x64x64xf32>
    %35 = vector.shape_cast %34 : vector<1x64x64xf32> to vector<64x64xf32>
    %c0_19 = arith.constant 0 : index
    %c0_20 = arith.constant 0 : index
    %c0_21 = arith.constant 0 : index
    %36 = vector.load %arg4[%c0_19, %c0_20, %c0_21] : memref<2x64x64xf32, #tpu.memory_space<vmem>>, vector<1x64x64xf32>
    %37 = vector.shape_cast %36 : vector<1x64x64xf32> to vector<64x64xf32>
    %c0_22 = arith.constant 0 : index
    %c0_23 = arith.constant 0 : index
    %c0_24 = arith.constant 0 : index
    %38 = vector.load %arg13[%c0_22, %c0_23, %c0_24] : memref<2x64x64xf32, #tpu.memory_space<vmem>>, vector<1x64x64xf32>
    %39 = vector.shape_cast %38 : vector<1x64x64xf32> to vector<64x64xf32>
    %cst = arith.constant dense<0.000000e+00> : vector<64x64xf32>
    %40 = tpu.matmul %5, %35, %cst {dimension_numbers = #tpu.dot_dimension_numbers<[0], [0], [1], [1], [0, 1, 1, 1], [], []>} : vector<64x64xf32>, vector<64x64xf32>, vector<64x64xf32> -> vector<64x64xf32>
    %41 = vector.broadcast %27 : vector<64x1xf32> to vector<64x64xf32>
    %42 = arith.addf %40, %41 : vector<64x64xf32>
    %cst_25 = arith.constant dense<0.000000e+00> : vector<128x64xf32>
    %43 = tpu.matmul %8, %37, %cst_25 {dimension_numbers = #tpu.dot_dimension_numbers<[0], [0], [1], [1], [0, 1, 1, 1], [], []>} : vector<64x128xf32>, vector<64x64xf32>, vector<128x64xf32> -> vector<128x64xf32>
    %44 = vector.broadcast %20 : vector<128x1xf32> to vector<128x64xf32>
    %45 = arith.addf %43, %44 : vector<128x64xf32>
    %46 = vector.extract_strided_slice %42 {offsets = [0, 0], sizes = [16, 64], strides = [1, 1]} : vector<64x64xf32> to vector<16x64xf32>
    %47 = vector.extract_strided_slice %45 {offsets = [0, 0], sizes = [16, 64], strides = [1, 1]} : vector<128x64xf32> to vector<16x64xf32>
    %48 = vector.extract_strided_slice %45 {offsets = [64, 0], sizes = [16, 64], strides = [1, 1]} : vector<128x64xf32> to vector<16x64xf32>
    %cst_26 = arith.constant dense<0.000000e+00> : vector<64x64xf32>
    %49 = tpu.matmul %47, %46, %cst_26 {dimension_numbers = #tpu.dot_dimension_numbers<[0], [0], [1], [1], [0, 1, 1, 1], [], []>} : vector<16x64xf32>, vector<16x64xf32>, vector<64x64xf32> -> vector<64x64xf32>
    %cst_27 = arith.constant dense<0xFF800000> : vector<64xf32>
    %50 = vector.multi_reduction <maximumf>, %49, %cst_27 [0] : vector<64x64xf32> to vector<64xf32>
    %51 = vector.shape_cast %50 : vector<64xf32> to vector<1x64xf32>
    %52 = vector.broadcast %51 : vector<1x64xf32> to vector<64x64xf32>
    %53 = arith.subf %49, %52 : vector<64x64xf32>
    %54 = math.exp %53 : vector<64x64xf32>
    %cst_28 = arith.constant dense<0.000000e+00> : vector<64xf32>
    %55 = vector.multi_reduction <add>, %54, %cst_28 [0] : vector<64x64xf32> to vector<64xf32>
    %56 = vector.shape_cast %55 : vector<64xf32> to vector<1x64xf32>
    %57 = vector.broadcast %56 : vector<1x64xf32> to vector<64x64xf32>
    %58 = arith.divf %54, %57 : vector<64x64xf32>
    %cst_29 = arith.constant dense<0.000000e+00> : vector<16x64xf32>
    %59 = tpu.matmul %48, %58, %cst_29 {dimension_numbers = #tpu.dot_dimension_numbers<[1], [0], [0], [1], [0, 0, 1, 1], [], []>} : vector<16x64xf32>, vector<64x64xf32>, vector<16x64xf32> -> vector<16x64xf32>
    %60 = vector.extract_strided_slice %11 {offsets = [0, 0], sizes = [16, 64], strides = [1, 1]} : vector<64x64xf32> to vector<16x64xf32>
    %cst_30 = arith.constant dense<0.000000e+00> : vector<64x64xf32>
    %61 = tpu.matmul %60, %59, %cst_30 {dimension_numbers = #tpu.dot_dimension_numbers<[0], [0], [1], [1], [0, 1, 1, 1], [], []>} : vector<16x64xf32>, vector<16x64xf32>, vector<64x64xf32> -> vector<64x64xf32>
    %62 = vector.extract_strided_slice %42 {offsets = [16, 0], sizes = [16, 64], strides = [1, 1]} : vector<64x64xf32> to vector<16x64xf32>
    %63 = vector.extract_strided_slice %45 {offsets = [16, 0], sizes = [16, 64], strides = [1, 1]} : vector<128x64xf32> to vector<16x64xf32>
    %64 = vector.extract_strided_slice %45 {offsets = [80, 0], sizes = [16, 64], strides = [1, 1]} : vector<128x64xf32> to vector<16x64xf32>
    %cst_31 = arith.constant dense<0.000000e+00> : vector<64x64xf32>
    %65 = tpu.matmul %63, %62, %cst_31 {dimension_numbers = #tpu.dot_dimension_numbers<[0], [0], [1], [1], [0, 1, 1, 1], [], []>} : vector<16x64xf32>, vector<16x64xf32>, vector<64x64xf32> -> vector<64x64xf32>
    %cst_32 = arith.constant dense<0xFF800000> : vector<64xf32>
    %66 = vector.multi_reduction <maximumf>, %65, %cst_32 [0] : vector<64x64xf32> to vector<64xf32>
    %67 = vector.shape_cast %66 : vector<64xf32> to vector<1x64xf32>
    %68 = vector.broadcast %67 : vector<1x64xf32> to vector<64x64xf32>
    %69 = arith.subf %65, %68 : vector<64x64xf32>
    %70 = math.exp %69 : vector<64x64xf32>
    %cst_33 = arith.constant dense<0.000000e+00> : vector<64xf32>
    %71 = vector.multi_reduction <add>, %70, %cst_33 [0] : vector<64x64xf32> to vector<64xf32>
    %72 = vector.shape_cast %71 : vector<64xf32> to vector<1x64xf32>
    %73 = vector.broadcast %72 : vector<1x64xf32> to vector<64x64xf32>
    %74 = arith.divf %70, %73 : vector<64x64xf32>
    %cst_34 = arith.constant dense<0.000000e+00> : vector<16x64xf32>
    %75 = tpu.matmul %64, %74, %cst_34 {dimension_numbers = #tpu.dot_dimension_numbers<[1], [0], [0], [1], [0, 0, 1, 1], [], []>} : vector<16x64xf32>, vector<64x64xf32>, vector<16x64xf32> -> vector<16x64xf32>
    %76 = vector.extract_strided_slice %11 {offsets = [16, 0], sizes = [16, 64], strides = [1, 1]} : vector<64x64xf32> to vector<16x64xf32>
    %cst_35 = arith.constant dense<0.000000e+00> : vector<64x64xf32>
    %77 = tpu.matmul %76, %75, %cst_35 {dimension_numbers = #tpu.dot_dimension_numbers<[0], [0], [1], [1], [0, 1, 1, 1], [], []>} : vector<16x64xf32>, vector<16x64xf32>, vector<64x64xf32> -> vector<64x64xf32>
    %78 = arith.addf %61, %77 : vector<64x64xf32>
    %79 = vector.extract_strided_slice %42 {offsets = [32, 0], sizes = [16, 64], strides = [1, 1]} : vector<64x64xf32> to vector<16x64xf32>
    %80 = vector.extract_strided_slice %45 {offsets = [32, 0], sizes = [16, 64], strides = [1, 1]} : vector<128x64xf32> to vector<16x64xf32>
    %81 = vector.extract_strided_slice %45 {offsets = [96, 0], sizes = [16, 64], strides = [1, 1]} : vector<128x64xf32> to vector<16x64xf32>
    %cst_36 = arith.constant dense<0.000000e+00> : vector<64x64xf32>
    %82 = tpu.matmul %80, %79, %cst_36 {dimension_numbers = #tpu.dot_dimension_numbers<[0], [0], [1], [1], [0, 1, 1, 1], [], []>} : vector<16x64xf32>, vector<16x64xf32>, vector<64x64xf32> -> vector<64x64xf32>
    %cst_37 = arith.constant dense<0xFF800000> : vector<64xf32>
    %83 = vector.multi_reduction <maximumf>, %82, %cst_37 [0] : vector<64x64xf32> to vector<64xf32>
    %84 = vector.shape_cast %83 : vector<64xf32> to vector<1x64xf32>
    %85 = vector.broadcast %84 : vector<1x64xf32> to vector<64x64xf32>
    %86 = arith.subf %82, %85 : vector<64x64xf32>
    %87 = math.exp %86 : vector<64x64xf32>
    %cst_38 = arith.constant dense<0.000000e+00> : vector<64xf32>
    %88 = vector.multi_reduction <add>, %87, %cst_38 [0] : vector<64x64xf32> to vector<64xf32>
    %89 = vector.shape_cast %88 : vector<64xf32> to vector<1x64xf32>
    %90 = vector.broadcast %89 : vector<1x64xf32> to vector<64x64xf32>
    %91 = arith.divf %87, %90 : vector<64x64xf32>
    %cst_39 = arith.constant dense<0.000000e+00> : vector<16x64xf32>
    %92 = tpu.matmul %81, %91, %cst_39 {dimension_numbers = #tpu.dot_dimension_numbers<[1], [0], [0], [1], [0, 0, 1, 1], [], []>} : vector<16x64xf32>, vector<64x64xf32>, vector<16x64xf32> -> vector<16x64xf32>
    %93 = vector.extract_strided_slice %11 {offsets = [32, 0], sizes = [16, 64], strides = [1, 1]} : vector<64x64xf32> to vector<16x64xf32>
    %cst_40 = arith.constant dense<0.000000e+00> : vector<64x64xf32>
    %94 = tpu.matmul %93, %92, %cst_40 {dimension_numbers = #tpu.dot_dimension_numbers<[0], [0], [1], [1], [0, 1, 1, 1], [], []>} : vector<16x64xf32>, vector<16x64xf32>, vector<64x64xf32> -> vector<64x64xf32>
    %95 = arith.addf %78, %94 : vector<64x64xf32>
    %96 = vector.extract_strided_slice %42 {offsets = [48, 0], sizes = [16, 64], strides = [1, 1]} : vector<64x64xf32> to vector<16x64xf32>
    %97 = vector.extract_strided_slice %45 {offsets = [48, 0], sizes = [16, 64], strides = [1, 1]} : vector<128x64xf32> to vector<16x64xf32>
    %98 = vector.extract_strided_slice %45 {offsets = [112, 0], sizes = [16, 64], strides = [1, 1]} : vector<128x64xf32> to vector<16x64xf32>
    %cst_41 = arith.constant dense<0.000000e+00> : vector<64x64xf32>
    %99 = tpu.matmul %97, %96, %cst_41 {dimension_numbers = #tpu.dot_dimension_numbers<[0], [0], [1], [1], [0, 1, 1, 1], [], []>} : vector<16x64xf32>, vector<16x64xf32>, vector<64x64xf32> -> vector<64x64xf32>
    %cst_42 = arith.constant dense<0xFF800000> : vector<64xf32>
    %100 = vector.multi_reduction <maximumf>, %99, %cst_42 [0] : vector<64x64xf32> to vector<64xf32>
    %101 = vector.shape_cast %100 : vector<64xf32> to vector<1x64xf32>
    %102 = vector.broadcast %101 : vector<1x64xf32> to vector<64x64xf32>
    %103 = arith.subf %99, %102 : vector<64x64xf32>
    %104 = math.exp %103 : vector<64x64xf32>
    %cst_43 = arith.constant dense<0.000000e+00> : vector<64xf32>
    %105 = vector.multi_reduction <add>, %104, %cst_43 [0] : vector<64x64xf32> to vector<64xf32>
    %106 = vector.shape_cast %105 : vector<64xf32> to vector<1x64xf32>
    %107 = vector.broadcast %106 : vector<1x64xf32> to vector<64x64xf32>
    %108 = arith.divf %104, %107 : vector<64x64xf32>
    %cst_44 = arith.constant dense<0.000000e+00> : vector<16x64xf32>
    %109 = tpu.matmul %98, %108, %cst_44 {dimension_numbers = #tpu.dot_dimension_numbers<[1], [0], [0], [1], [0, 0, 1, 1], [], []>} : vector<16x64xf32>, vector<64x64xf32>, vector<16x64xf32> -> vector<16x64xf32>
    %110 = vector.extract_strided_slice %11 {offsets = [48, 0], sizes = [16, 64], strides = [1, 1]} : vector<64x64xf32> to vector<16x64xf32>
    %cst_45 = arith.constant dense<0.000000e+00> : vector<64x64xf32>
    %111 = tpu.matmul %110, %109, %cst_45 {dimension_numbers = #tpu.dot_dimension_numbers<[0], [0], [1], [1], [0, 1, 1, 1], [], []>} : vector<16x64xf32>, vector<16x64xf32>, vector<64x64xf32> -> vector<64x64xf32>
    %112 = arith.addf %95, %111 : vector<64x64xf32>
    %113 = vector.broadcast %28 : vector<64x1xf32> to vector<64x64xf32>
    %114 = arith.addf %112, %113 : vector<64x64xf32>
    %115 = arith.addf %114, %39 : vector<64x64xf32>
    %cst_46 = arith.constant dense<0.000000e+00> : vector<64xf32>
    %116 = vector.multi_reduction <add>, %115, %cst_46 [0] : vector<64x64xf32> to vector<64xf32>
    %117 = vector.shape_cast %116 : vector<64xf32> to vector<1x64xf32>
    %cst_47 = arith.constant 6.400000e+01 : f32
    %118 = vector.broadcast %cst_47 : f32 to vector<1x64xf32>
    %119 = arith.divf %117, %118 : vector<1x64xf32>
    %120 = vector.broadcast %119 : vector<1x64xf32> to vector<64x64xf32>
    %121 = arith.subf %115, %120 : vector<64x64xf32>
    %122 = arith.mulf %121, %121 : vector<64x64xf32>
    %cst_48 = arith.constant dense<0.000000e+00> : vector<64xf32>
    %123 = vector.multi_reduction <add>, %122, %cst_48 [0] : vector<64x64xf32> to vector<64xf32>
    %124 = vector.shape_cast %123 : vector<64xf32> to vector<1x64xf32>
    %cst_49 = arith.constant 6.400000e+01 : f32
    %125 = vector.broadcast %cst_49 : f32 to vector<1x64xf32>
    %126 = arith.divf %124, %125 : vector<1x64xf32>
    %cst_50 = arith.constant 9.99999974E-6 : f32
    %127 = vector.broadcast %cst_50 : f32 to vector<1x64xf32>
    %128 = arith.addf %126, %127 : vector<1x64xf32>
    %129 = math.rsqrt %128 : vector<1x64xf32>
    %130 = vector.broadcast %129 : vector<1x64xf32> to vector<64x64xf32>
    %131 = arith.mulf %121, %130 : vector<64x64xf32>
    %132 = vector.broadcast %29 : vector<64x1xf32> to vector<64x64xf32>
    %133 = arith.mulf %131, %132 : vector<64x64xf32>
    %134 = vector.broadcast %30 : vector<64x1xf32> to vector<64x64xf32>
    %135 = arith.addf %133, %134 : vector<64x64xf32>
    %cst_51 = arith.constant dense<0.000000e+00> : vector<128x64xf32>
    %136 = tpu.matmul %14, %135, %cst_51 {dimension_numbers = #tpu.dot_dimension_numbers<[0], [0], [1], [1], [0, 1, 1, 1], [], []>} : vector<64x128xf32>, vector<64x64xf32>, vector<128x64xf32> -> vector<128x64xf32>
    %137 = vector.broadcast %23 : vector<128x1xf32> to vector<128x64xf32>
    %138 = arith.addf %136, %137 : vector<128x64xf32>
    %cst_52 = arith.constant 0.000000e+00 : f32
    %139 = vector.broadcast %cst_52 : f32 to vector<128x64xf32>
    %140 = arith.maximumf %138, %139 : vector<128x64xf32>
    %cst_53 = arith.constant dense<0.000000e+00> : vector<64x64xf32>
    %141 = tpu.matmul %17, %140, %cst_53 {dimension_numbers = #tpu.dot_dimension_numbers<[0], [0], [1], [1], [0, 1, 1, 1], [], []>} : vector<128x64xf32>, vector<128x64xf32>, vector<64x64xf32> -> vector<64x64xf32>
    %142 = vector.broadcast %31 : vector<64x1xf32> to vector<64x64xf32>
    %143 = arith.addf %141, %142 : vector<64x64xf32>
    %144 = arith.addf %135, %143 : vector<64x64xf32>
    %cst_54 = arith.constant dense<0.000000e+00> : vector<64xf32>
    %145 = vector.multi_reduction <add>, %144, %cst_54 [0] : vector<64x64xf32> to vector<64xf32>
    %146 = vector.shape_cast %145 : vector<64xf32> to vector<1x64xf32>
    %cst_55 = arith.constant 6.400000e+01 : f32
    %147 = vector.broadcast %cst_55 : f32 to vector<1x64xf32>
    %148 = arith.divf %146, %147 : vector<1x64xf32>
    %149 = vector.broadcast %148 : vector<1x64xf32> to vector<64x64xf32>
    %150 = arith.subf %144, %149 : vector<64x64xf32>
    %151 = arith.mulf %150, %150 : vector<64x64xf32>
    %cst_56 = arith.constant dense<0.000000e+00> : vector<64xf32>
    %152 = vector.multi_reduction <add>, %151, %cst_56 [0] : vector<64x64xf32> to vector<64xf32>
    %153 = vector.shape_cast %152 : vector<64xf32> to vector<1x64xf32>
    %cst_57 = arith.constant 6.400000e+01 : f32
    %154 = vector.broadcast %cst_57 : f32 to vector<1x64xf32>
    %155 = arith.divf %153, %154 : vector<1x64xf32>
    %cst_58 = arith.constant 9.99999974E-6 : f32
    %156 = vector.broadcast %cst_58 : f32 to vector<1x64xf32>
    %157 = arith.addf %155, %156 : vector<1x64xf32>
    %158 = math.rsqrt %157 : vector<1x64xf32>
    %159 = vector.broadcast %158 : vector<1x64xf32> to vector<64x64xf32>
    %160 = arith.mulf %150, %159 : vector<64x64xf32>
    %161 = vector.broadcast %32 : vector<64x1xf32> to vector<64x64xf32>
    %162 = arith.mulf %160, %161 : vector<64x64xf32>
    %163 = vector.broadcast %33 : vector<64x1xf32> to vector<64x64xf32>
    %164 = arith.addf %162, %163 : vector<64x64xf32>
    %c0_59 = arith.constant 0 : index
    %c0_60 = arith.constant 0 : index
    %c0_61 = arith.constant 0 : index
    %165 = vector.load %arg13[%c0_59, %c0_60, %c0_61] : memref<2x64x64xf32, #tpu.memory_space<vmem>>, vector<1x64x64xf32>
    %166 = vector.shape_cast %165 : vector<1x64x64xf32> to vector<64x64xf32>
    %167 = vector.shape_cast %164 : vector<64x64xf32> to vector<1x64x64xf32>
    tpu.vector_store %arg13[%c0_59, %c0_60, %c0_61], %167 {strides = array<i32>} : memref<2x64x64xf32, #tpu.memory_space<vmem>>, vector<1x64x64xf32>,
    %c1 = arith.constant 1 : index
    %c0_62 = arith.constant 0 : index
    %c0_63 = arith.constant 0 : index
    %168 = vector.load %arg2[%c1, %c0_62, %c0_63] : memref<2x64x64xf32, #tpu.memory_space<vmem>>, vector<1x64x64xf32>
    %169 = vector.shape_cast %168 : vector<1x64x64xf32> to vector<64x64xf32>
    %c1_64 = arith.constant 1 : index
    %c0_65 = arith.constant 0 : index
    %c0_66 = arith.constant 0 : index
    %170 = vector.load %arg4[%c1_64, %c0_65, %c0_66] : memref<2x64x64xf32, #tpu.memory_space<vmem>>, vector<1x64x64xf32>
    %171 = vector.shape_cast %170 : vector<1x64x64xf32> to vector<64x64xf32>
    %c1_67 = arith.constant 1 : index
    %c0_68 = arith.constant 0 : index
    %c0_69 = arith.constant 0 : index
    %172 = vector.load %arg13[%c1_67, %c0_68, %c0_69] : memref<2x64x64xf32, #tpu.memory_space<vmem>>, vector<1x64x64xf32>
    %173 = vector.shape_cast %172 : vector<1x64x64xf32> to vector<64x64xf32>
    %cst_70 = arith.constant dense<0.000000e+00> : vector<64x64xf32>
    %174 = tpu.matmul %5, %169, %cst_70 {dimension_numbers = #tpu.dot_dimension_numbers<[0], [0], [1], [1], [0, 1, 1, 1], [], []>} : vector<64x64xf32>, vector<64x64xf32>, vector<64x64xf32> -> vector<64x64xf32>
    %175 = vector.broadcast %27 : vector<64x1xf32> to vector<64x64xf32>
    %176 = arith.addf %174, %175 : vector<64x64xf32>
    %cst_71 = arith.constant dense<0.000000e+00> : vector<128x64xf32>
    %177 = tpu.matmul %8, %171, %cst_71 {dimension_numbers = #tpu.dot_dimension_numbers<[0], [0], [1], [1], [0, 1, 1, 1], [], []>} : vector<64x128xf32>, vector<64x64xf32>, vector<128x64xf32> -> vector<128x64xf32>
    %178 = vector.broadcast %20 : vector<128x1xf32> to vector<128x64xf32>
    %179 = arith.addf %177, %178 : vector<128x64xf32>
    %180 = vector.extract_strided_slice %176 {offsets = [0, 0], sizes = [16, 64], strides = [1, 1]} : vector<64x64xf32> to vector<16x64xf32>
    %181 = vector.extract_strided_slice %179 {offsets = [0, 0], sizes = [16, 64], strides = [1, 1]} : vector<128x64xf32> to vector<16x64xf32>
    %182 = vector.extract_strided_slice %179 {offsets = [64, 0], sizes = [16, 64], strides = [1, 1]} : vector<128x64xf32> to vector<16x64xf32>
    %cst_72 = arith.constant dense<0.000000e+00> : vector<64x64xf32>
    %183 = tpu.matmul %181, %180, %cst_72 {dimension_numbers = #tpu.dot_dimension_numbers<[0], [0], [1], [1], [0, 1, 1, 1], [], []>} : vector<16x64xf32>, vector<16x64xf32>, vector<64x64xf32> -> vector<64x64xf32>
    %cst_73 = arith.constant dense<0xFF800000> : vector<64xf32>
    %184 = vector.multi_reduction <maximumf>, %183, %cst_73 [0] : vector<64x64xf32> to vector<64xf32>
    %185 = vector.shape_cast %184 : vector<64xf32> to vector<1x64xf32>
    %186 = vector.broadcast %185 : vector<1x64xf32> to vector<64x64xf32>
    %187 = arith.subf %183, %186 : vector<64x64xf32>
    %188 = math.exp %187 : vector<64x64xf32>
    %cst_74 = arith.constant dense<0.000000e+00> : vector<64xf32>
    %189 = vector.multi_reduction <add>, %188, %cst_74 [0] : vector<64x64xf32> to vector<64xf32>
    %190 = vector.shape_cast %189 : vector<64xf32> to vector<1x64xf32>
    %191 = vector.broadcast %190 : vector<1x64xf32> to vector<64x64xf32>
    %192 = arith.divf %188, %191 : vector<64x64xf32>
    %cst_75 = arith.constant dense<0.000000e+00> : vector<16x64xf32>
    %193 = tpu.matmul %182, %192, %cst_75 {dimension_numbers = #tpu.dot_dimension_numbers<[1], [0], [0], [1], [0, 0, 1, 1], [], []>} : vector<16x64xf32>, vector<64x64xf32>, vector<16x64xf32> -> vector<16x64xf32>
    %194 = vector.extract_strided_slice %11 {offsets = [0, 0], sizes = [16, 64], strides = [1, 1]} : vector<64x64xf32> to vector<16x64xf32>
    %cst_76 = arith.constant dense<0.000000e+00> : vector<64x64xf32>
    %195 = tpu.matmul %194, %193, %cst_76 {dimension_numbers = #tpu.dot_dimension_numbers<[0], [0], [1], [1], [0, 1, 1, 1], [], []>} : vector<16x64xf32>, vector<16x64xf32>, vector<64x64xf32> -> vector<64x64xf32>
    %196 = vector.extract_strided_slice %176 {offsets = [16, 0], sizes = [16, 64], strides = [1, 1]} : vector<64x64xf32> to vector<16x64xf32>
    %197 = vector.extract_strided_slice %179 {offsets = [16, 0], sizes = [16, 64], strides = [1, 1]} : vector<128x64xf32> to vector<16x64xf32>
    %198 = vector.extract_strided_slice %179 {offsets = [80, 0], sizes = [16, 64], strides = [1, 1]} : vector<128x64xf32> to vector<16x64xf32>
    %cst_77 = arith.constant dense<0.000000e+00> : vector<64x64xf32>
    %199 = tpu.matmul %197, %196, %cst_77 {dimension_numbers = #tpu.dot_dimension_numbers<[0], [0], [1], [1], [0, 1, 1, 1], [], []>} : vector<16x64xf32>, vector<16x64xf32>, vector<64x64xf32> -> vector<64x64xf32>
    %cst_78 = arith.constant dense<0xFF800000> : vector<64xf32>
    %200 = vector.multi_reduction <maximumf>, %199, %cst_78 [0] : vector<64x64xf32> to vector<64xf32>
    %201 = vector.shape_cast %200 : vector<64xf32> to vector<1x64xf32>
    %202 = vector.broadcast %201 : vector<1x64xf32> to vector<64x64xf32>
    %203 = arith.subf %199, %202 : vector<64x64xf32>
    %204 = math.exp %203 : vector<64x64xf32>
    %cst_79 = arith.constant dense<0.000000e+00> : vector<64xf32>
    %205 = vector.multi_reduction <add>, %204, %cst_79 [0] : vector<64x64xf32> to vector<64xf32>
    %206 = vector.shape_cast %205 : vector<64xf32> to vector<1x64xf32>
    %207 = vector.broadcast %206 : vector<1x64xf32> to vector<64x64xf32>
    %208 = arith.divf %204, %207 : vector<64x64xf32>
    %cst_80 = arith.constant dense<0.000000e+00> : vector<16x64xf32>
    %209 = tpu.matmul %198, %208, %cst_80 {dimension_numbers = #tpu.dot_dimension_numbers<[1], [0], [0], [1], [0, 0, 1, 1], [], []>} : vector<16x64xf32>, vector<64x64xf32>, vector<16x64xf32> -> vector<16x64xf32>
    %210 = vector.extract_strided_slice %11 {offsets = [16, 0], sizes = [16, 64], strides = [1, 1]} : vector<64x64xf32> to vector<16x64xf32>
    %cst_81 = arith.constant dense<0.000000e+00> : vector<64x64xf32>
    %211 = tpu.matmul %210, %209, %cst_81 {dimension_numbers = #tpu.dot_dimension_numbers<[0], [0], [1], [1], [0, 1, 1, 1], [], []>} : vector<16x64xf32>, vector<16x64xf32>, vector<64x64xf32> -> vector<64x64xf32>
    %212 = arith.addf %195, %211 : vector<64x64xf32>
    %213 = vector.extract_strided_slice %176 {offsets = [32, 0], sizes = [16, 64], strides = [1, 1]} : vector<64x64xf32> to vector<16x64xf32>
    %214 = vector.extract_strided_slice %179 {offsets = [32, 0], sizes = [16, 64], strides = [1, 1]} : vector<128x64xf32> to vector<16x64xf32>
    %215 = vector.extract_strided_slice %179 {offsets = [96, 0], sizes = [16, 64], strides = [1, 1]} : vector<128x64xf32> to vector<16x64xf32>
    %cst_82 = arith.constant dense<0.000000e+00> : vector<64x64xf32>
    %216 = tpu.matmul %214, %213, %cst_82 {dimension_numbers = #tpu.dot_dimension_numbers<[0], [0], [1], [1], [0, 1, 1, 1], [], []>} : vector<16x64xf32>, vector<16x64xf32>, vector<64x64xf32> -> vector<64x64xf32>
    %cst_83 = arith.constant dense<0xFF800000> : vector<64xf32>
    %217 = vector.multi_reduction <maximumf>, %216, %cst_83 [0] : vector<64x64xf32> to vector<64xf32>
    %218 = vector.shape_cast %217 : vector<64xf32> to vector<1x64xf32>
    %219 = vector.broadcast %218 : vector<1x64xf32> to vector<64x64xf32>
    %220 = arith.subf %216, %219 : vector<64x64xf32>
    %221 = math.exp %220 : vector<64x64xf32>
    %cst_84 = arith.constant dense<0.000000e+00> : vector<64xf32>
    %222 = vector.multi_reduction <add>, %221, %cst_84 [0] : vector<64x64xf32> to vector<64xf32>
    %223 = vector.shape_cast %222 : vector<64xf32> to vector<1x64xf32>
    %224 = vector.broadcast %223 : vector<1x64xf32> to vector<64x64xf32>
    %225 = arith.divf %221, %224 : vector<64x64xf32>
    %cst_85 = arith.constant dense<0.000000e+00> : vector<16x64xf32>
    %226 = tpu.matmul %215, %225, %cst_85 {dimension_numbers = #tpu.dot_dimension_numbers<[1], [0], [0], [1], [0, 0, 1, 1], [], []>} : vector<16x64xf32>, vector<64x64xf32>, vector<16x64xf32> -> vector<16x64xf32>
    %227 = vector.extract_strided_slice %11 {offsets = [32, 0], sizes = [16, 64], strides = [1, 1]} : vector<64x64xf32> to vector<16x64xf32>
    %cst_86 = arith.constant dense<0.000000e+00> : vector<64x64xf32>
    %228 = tpu.matmul %227, %226, %cst_86 {dimension_numbers = #tpu.dot_dimension_numbers<[0], [0], [1], [1], [0, 1, 1, 1], [], []>} : vector<16x64xf32>, vector<16x64xf32>, vector<64x64xf32> -> vector<64x64xf32>
    %229 = arith.addf %212, %228 : vector<64x64xf32>
    %230 = vector.extract_strided_slice %176 {offsets = [48, 0], sizes = [16, 64], strides = [1, 1]} : vector<64x64xf32> to vector<16x64xf32>
    %231 = vector.extract_strided_slice %179 {offsets = [48, 0], sizes = [16, 64], strides = [1, 1]} : vector<128x64xf32> to vector<16x64xf32>
    %232 = vector.extract_strided_slice %179 {offsets = [112, 0], sizes = [16, 64], strides = [1, 1]} : vector<128x64xf32> to vector<16x64xf32>
    %cst_87 = arith.constant dense<0.000000e+00> : vector<64x64xf32>
    %233 = tpu.matmul %231, %230, %cst_87 {dimension_numbers = #tpu.dot_dimension_numbers<[0], [0], [1], [1], [0, 1, 1, 1], [], []>} : vector<16x64xf32>, vector<16x64xf32>, vector<64x64xf32> -> vector<64x64xf32>
    %cst_88 = arith.constant dense<0xFF800000> : vector<64xf32>
    %234 = vector.multi_reduction <maximumf>, %233, %cst_88 [0] : vector<64x64xf32> to vector<64xf32>
    %235 = vector.shape_cast %234 : vector<64xf32> to vector<1x64xf32>
    %236 = vector.broadcast %235 : vector<1x64xf32> to vector<64x64xf32>
    %237 = arith.subf %233, %236 : vector<64x64xf32>
    %238 = math.exp %237 : vector<64x64xf32>
    %cst_89 = arith.constant dense<0.000000e+00> : vector<64xf32>
    %239 = vector.multi_reduction <add>, %238, %cst_89 [0] : vector<64x64xf32> to vector<64xf32>
    %240 = vector.shape_cast %239 : vector<64xf32> to vector<1x64xf32>
    %241 = vector.broadcast %240 : vector<1x64xf32> to vector<64x64xf32>
    %242 = arith.divf %238, %241 : vector<64x64xf32>
    %cst_90 = arith.constant dense<0.000000e+00> : vector<16x64xf32>
    %243 = tpu.matmul %232, %242, %cst_90 {dimension_numbers = #tpu.dot_dimension_numbers<[1], [0], [0], [1], [0, 0, 1, 1], [], []>} : vector<16x64xf32>, vector<64x64xf32>, vector<16x64xf32> -> vector<16x64xf32>
    %244 = vector.extract_strided_slice %11 {offsets = [48, 0], sizes = [16, 64], strides = [1, 1]} : vector<64x64xf32> to vector<16x64xf32>
    %cst_91 = arith.constant dense<0.000000e+00> : vector<64x64xf32>
    %245 = tpu.matmul %244, %243, %cst_91 {dimension_numbers = #tpu.dot_dimension_numbers<[0], [0], [1], [1], [0, 1, 1, 1], [], []>} : vector<16x64xf32>, vector<16x64xf32>, vector<64x64xf32> -> vector<64x64xf32>
    %246 = arith.addf %229, %245 : vector<64x64xf32>
    %247 = vector.broadcast %28 : vector<64x1xf32> to vector<64x64xf32>
    %248 = arith.addf %246, %247 : vector<64x64xf32>
    %249 = arith.addf %248, %173 : vector<64x64xf32>
    %cst_92 = arith.constant dense<0.000000e+00> : vector<64xf32>
    %250 = vector.multi_reduction <add>, %249, %cst_92 [0] : vector<64x64xf32> to vector<64xf32>
    %251 = vector.shape_cast %250 : vector<64xf32> to vector<1x64xf32>
    %cst_93 = arith.constant 6.400000e+01 : f32
    %252 = vector.broadcast %cst_93 : f32 to vector<1x64xf32>
    %253 = arith.divf %251, %252 : vector<1x64xf32>
    %254 = vector.broadcast %253 : vector<1x64xf32> to vector<64x64xf32>
    %255 = arith.subf %249, %254 : vector<64x64xf32>
    %256 = arith.mulf %255, %255 : vector<64x64xf32>
    %cst_94 = arith.constant dense<0.000000e+00> : vector<64xf32>
    %257 = vector.multi_reduction <add>, %256, %cst_94 [0] : vector<64x64xf32> to vector<64xf32>
    %258 = vector.shape_cast %257 : vector<64xf32> to vector<1x64xf32>
    %cst_95 = arith.constant 6.400000e+01 : f32
    %259 = vector.broadcast %cst_95 : f32 to vector<1x64xf32>
    %260 = arith.divf %258, %259 : vector<1x64xf32>
    %cst_96 = arith.constant 9.99999974E-6 : f32
    %261 = vector.broadcast %cst_96 : f32 to vector<1x64xf32>
    %262 = arith.addf %260, %261 : vector<1x64xf32>
    %263 = math.rsqrt %262 : vector<1x64xf32>
    %264 = vector.broadcast %263 : vector<1x64xf32> to vector<64x64xf32>
    %265 = arith.mulf %255, %264 : vector<64x64xf32>
    %266 = vector.broadcast %29 : vector<64x1xf32> to vector<64x64xf32>
    %267 = arith.mulf %265, %266 : vector<64x64xf32>
    %268 = vector.broadcast %30 : vector<64x1xf32> to vector<64x64xf32>
    %269 = arith.addf %267, %268 : vector<64x64xf32>
    %cst_97 = arith.constant dense<0.000000e+00> : vector<128x64xf32>
    %270 = tpu.matmul %14, %269, %cst_97 {dimension_numbers = #tpu.dot_dimension_numbers<[0], [0], [1], [1], [0, 1, 1, 1], [], []>} : vector<64x128xf32>, vector<64x64xf32>, vector<128x64xf32> -> vector<128x64xf32>
    %271 = vector.broadcast %23 : vector<128x1xf32> to vector<128x64xf32>
    %272 = arith.addf %270, %271 : vector<128x64xf32>
    %cst_98 = arith.constant 0.000000e+00 : f32
    %273 = vector.broadcast %cst_98 : f32 to vector<128x64xf32>
    %274 = arith.maximumf %272, %273 : vector<128x64xf32>
    %cst_99 = arith.constant dense<0.000000e+00> : vector<64x64xf32>
    %275 = tpu.matmul %17, %274, %cst_99 {dimension_numbers = #tpu.dot_dimension_numbers<[0], [0], [1], [1], [0, 1, 1, 1], [], []>} : vector<128x64xf32>, vector<128x64xf32>, vector<64x64xf32> -> vector<64x64xf32>
    %276 = vector.broadcast %31 : vector<64x1xf32> to vector<64x64xf32>
    %277 = arith.addf %275, %276 : vector<64x64xf32>
    %278 = arith.addf %269, %277 : vector<64x64xf32>
    %cst_100 = arith.constant dense<0.000000e+00> : vector<64xf32>
    %279 = vector.multi_reduction <add>, %278, %cst_100 [0] : vector<64x64xf32> to vector<64xf32>
    %280 = vector.shape_cast %279 : vector<64xf32> to vector<1x64xf32>
    %cst_101 = arith.constant 6.400000e+01 : f32
    %281 = vector.broadcast %cst_101 : f32 to vector<1x64xf32>
    %282 = arith.divf %280, %281 : vector<1x64xf32>
    %283 = vector.broadcast %282 : vector<1x64xf32> to vector<64x64xf32>
    %284 = arith.subf %278, %283 : vector<64x64xf32>
    %285 = arith.mulf %284, %284 : vector<64x64xf32>
    %cst_102 = arith.constant dense<0.000000e+00> : vector<64xf32>
    %286 = vector.multi_reduction <add>, %285, %cst_102 [0] : vector<64x64xf32> to vector<64xf32>
    %287 = vector.shape_cast %286 : vector<64xf32> to vector<1x64xf32>
    %cst_103 = arith.constant 6.400000e+01 : f32
    %288 = vector.broadcast %cst_103 : f32 to vector<1x64xf32>
    %289 = arith.divf %287, %288 : vector<1x64xf32>
    %cst_104 = arith.constant 9.99999974E-6 : f32
    %290 = vector.broadcast %cst_104 : f32 to vector<1x64xf32>
    %291 = arith.addf %289, %290 : vector<1x64xf32>
    %292 = math.rsqrt %291 : vector<1x64xf32>
    %293 = vector.broadcast %292 : vector<1x64xf32> to vector<64x64xf32>
    %294 = arith.mulf %284, %293 : vector<64x64xf32>
    %295 = vector.broadcast %32 : vector<64x1xf32> to vector<64x64xf32>
    %296 = arith.mulf %294, %295 : vector<64x64xf32>
    %297 = vector.broadcast %33 : vector<64x1xf32> to vector<64x64xf32>
    %298 = arith.addf %296, %297 : vector<64x64xf32>
    %c1_105 = arith.constant 1 : index
    %c0_106 = arith.constant 0 : index
    %c0_107 = arith.constant 0 : index
    %299 = vector.load %arg13[%c1_105, %c0_106, %c0_107] : memref<2x64x64xf32, #tpu.memory_space<vmem>>, vector<1x64x64xf32>
    %300 = vector.shape_cast %299 : vector<1x64x64xf32> to vector<64x64xf32>
    %301 = vector.shape_cast %298 : vector<64x64xf32> to vector<1x64x64xf32>
    tpu.vector_store %arg13[%c1_105, %c0_106, %c0_107], %301 {strides = array<i32>} : memref<2x64x64xf32, #tpu.memory_space<vmem>>, vector<1x64x64xf32>,
    return
  }
  func.func @transform_0(%arg0: i32, %arg1: i32) -> (i32, i32, i32) {
    %c0_i32 = arith.constant 0 : i32
    %c0_i32_0 = arith.constant 0 : i32
    %c0_i32_1 = arith.constant 0 : i32
    return %arg0, %c0_i32, %c0_i32_0 : i32, i32, i32
  }
  func.func @transform_1(%arg0: i32, %arg1: i32) -> (i32, i32, i32) {
    %c0_i32 = arith.constant 0 : i32
    %c0_i32_0 = arith.constant 0 : i32
    %c0_i32_1 = arith.constant 0 : i32
    return %arg0, %c0_i32, %c0_i32_0 : i32, i32, i32
  }
  func.func @transform_2(%arg0: i32, %arg1: i32) -> (i32, i32, i32) {
    %c0_i32 = arith.constant 0 : i32
    %c0_i32_0 = arith.constant 0 : i32
    %c0_i32_1 = arith.constant 0 : i32
    return %arg0, %c0_i32, %c0_i32_0 : i32, i32, i32
  }
  func.func @transform_3(%arg0: i32, %arg1: i32) -> (i32, i32, i32) {
    %c0_i32 = arith.constant 0 : i32
    %c0_i32_0 = arith.constant 0 : i32
    %c0_i32_1 = arith.constant 0 : i32
    %c0_i32_2 = arith.constant 0 : i32
    return %c0_i32, %c0_i32_0, %c0_i32_1 : i32, i32, i32
  }
  func.func @transform_4(%arg0: i32, %arg1: i32) -> (i32, i32, i32) {
    %c0_i32 = arith.constant 0 : i32
    %c0_i32_0 = arith.constant 0 : i32
    %c0_i32_1 = arith.constant 0 : i32
    %c0_i32_2 = arith.constant 0 : i32
    return %c0_i32, %c0_i32_0, %c0_i32_1 : i32, i32, i32
  }
  func.func @transform_5(%arg0: i32, %arg1: i32) -> (i32, i32, i32) {
    %c0_i32 = arith.constant 0 : i32
    %c0_i32_0 = arith.constant 0 : i32
    %c0_i32_1 = arith.constant 0 : i32
    %c0_i32_2 = arith.constant 0 : i32
    return %c0_i32, %c0_i32_0, %c0_i32_1 : i32, i32, i32
  }
  func.func @transform_6(%arg0: i32, %arg1: i32) -> (i32, i32, i32) {
    %c0_i32 = arith.constant 0 : i32
    %c0_i32_0 = arith.constant 0 : i32
    %c0_i32_1 = arith.constant 0 : i32
    %c0_i32_2 = arith.constant 0 : i32
    return %c0_i32, %c0_i32_0, %c0_i32_1 : i32, i32, i32
  }
  func.func @transform_7(%arg0: i32, %arg1: i32) -> (i32, i32, i32) {
    %c0_i32 = arith.constant 0 : i32
    %c0_i32_0 = arith.constant 0 : i32
    %c0_i32_1 = arith.constant 0 : i32
    %c0_i32_2 = arith.constant 0 : i32
    return %c0_i32, %c0_i32_0, %c0_i32_1 : i32, i32, i32
  }
  func.func @transform_8(%arg0: i32, %arg1: i32) -> (i32, i32, i32) {
    %c0_i32 = arith.constant 0 : i32
    %c0_i32_0 = arith.constant 0 : i32
    %c0_i32_1 = arith.constant 0 : i32
    %c0_i32_2 = arith.constant 0 : i32
    return %c0_i32, %c0_i32_0, %c0_i32_1 : i32, i32, i32
  }
  func.func @transform_9(%arg0: i32, %arg1: i32) -> (i32, i32, i32) {
    %c0_i32 = arith.constant 0 : i32
    %c0_i32_0 = arith.constant 0 : i32
    %c0_i32_1 = arith.constant 0 : i32
    %c0_i32_2 = arith.constant 0 : i32
    return %c0_i32, %c0_i32_0, %c0_i32_1 : i32, i32, i32
  }
  func.func @transform_10(%arg0: i32, %arg1: i32) -> (i32, i32, i32) {
    %c0_i32 = arith.constant 0 : i32
    %c0_i32_0 = arith.constant 0 : i32
    %c0_i32_1 = arith.constant 0 : i32
    %c0_i32_2 = arith.constant 0 : i32
    return %c0_i32, %c0_i32_0, %c0_i32_1 : i32, i32, i32
  }
  func.func @transform_11(%arg0: i32, %arg1: i32) -> (i32, i32, i32) {
    %c0_i32 = arith.constant 0 : i32
    %c0_i32_0 = arith.constant 0 : i32
    %c0_i32_1 = arith.constant 0 : i32
    return %arg0, %c0_i32, %c0_i32_0 : i32, i32, i32
  }
}

</mosaic_0001>

<bundles_post_ra>
// kernel: transformer_forward.1
= control target key start
LH: loop header
LB: loop body
LE: loop exit
PB: predicated region body
PF: predicated region fallthrough
CT: control target
= control target key end

     0   :  { %s8179_s17 = smov 0   ;;  %s8181_s18 = smov 0   ;;  %s10306_s0 = inlined_call_operand.vmem [shape: f32[2,64,64], index: 0, kind: input, shape index: {}]   ;;  %s10307_s1 = inlined_call_operand.vmem [shape: f32[2,64,64], index: 1, kind: input, shape index: {}]   ;;  %s10308_s2 = inlined_call_operand.vmem [shape: f32[2,64,64], index: 2, kind: input, shape index: {}]   ;;  %s10309_s3 = inlined_call_operand.vmem [shape: f32[3,64,64], index: 3, kind: input, shape index: {}]   ;;  %s10310_s4 = inlined_call_operand.vmem [shape: f32[3,64,128], index: 4, kind: input, shape index: {}]   ;;  %s10311_s5 = inlined_call_operand.vmem [shape: f32[3,64,64], index: 5, kind: input, shape index: {}]   ;;  %s10312_s6 = inlined_call_operand.vmem [shape: f32[3,64,128], index: 6, kind: input, shape index: {}]   ;;  %s10313_s7 = inlined_call_operand.vmem [shape: f32[3,128,64], index: 7, kind: input, shape index: {}]   ;;  %s10314_s8 = inlined_call_operand.vmem [shape: f32[3,128,1], index: 8, kind: input, shape index: {}]   ;;  %s10315_s9 = inlined_call_operand.vmem [shape: f32[3,128,1], index: 9, kind: input, shape index: {}]   ;;  %s10316_s10 = inlined_call_operand.vmem [shape: f32[3,64,8], index: 10, kind: input, shape index: {}]   ;;  %s10317_s11 = inlined_call_operand.vmem [shape: f32[2,64,64], index: 11, kind: output, shape index: {}]  }
   0x1   :  { %s8183_s19 = smov 0  }
   0x2 LB: > { %s30_s20 = sadd.s32 1, %s8106_s18  ;;  %p6476_p0 = scmp.ge.s32.totalorder %s8110_s19, 1  ;;  %s8110_s19 = sphi %s8183_s19, %s21_s19   ;;  %s8106_s18 = sphi %s8181_s18, %s10811_s18   ;;  %s8102_s17 = sphi %s8179_s17, %s10810_s17  }
   0x3   : > { %p31_p1 = scmp.ge.s32.totalorder %s30_s20, 3  ;;  %p375_p2 = scmp.lt.s32.totalorder %s8110_s19, 4 }
   0x5   : > { %s10813_s20 = smov (%p31_p1, %s30_s20), 0  ;;  %p376_p3 = pnand %p6476_p0, %p375_p2 }
   0x7   : > { %379 = sbr.rel (%p376_p3) target bundleno = 5048 (0x13b8), region = 64 }
   0xc   : > { %p6477_p4 = scmp.ne.s32.totalorder %s8102_s17, 0 }
   0xe   : > { %460 = sbr.rel (%p6477_p4) target bundleno = 28 (0x1c), region = 68 }
  0x13   : > { %v461_v0 = vld [vmem:[%s10307_s1] sm:$0xff]  ;;  %vm477_vm0 = vcmask 523264   ;;  %v462_v1 = vld [vmem:[%s10307_s1 + $0x8] sm:$0xff]  ;;  %v463_v2 = vld [vmem:[%s10307_s1 + $0x10] sm:$0xff] }
  0x14   : > { %478 = vst.msk [vmem:[%s10317_s11] sm:$0xff] %vm477_vm0, %v461_v0  ;;  %479 = vst.msk [vmem:[%s10317_s11 + $0x8] sm:$0xff] %vm477_vm0, %v462_v1  ;;  %v464_v3 = vld [vmem:[%s10307_s1 + $0x18] sm:$0xff]  ;;  %v465_v4 = vld [vmem:[%s10307_s1 + $0x20] sm:$0xff] }
  0x15   : > { %480 = vst.msk [vmem:[%s10317_s11 + $0x10] sm:$0xff] %vm477_vm0, %v463_v2  ;;  %v466_v5 = vld [vmem:[%s10307_s1 + $0x28] sm:$0xff]  ;;  %481 = vst.msk [vmem:[%s10317_s11 + $0x18] sm:$0xff] %vm477_vm0, %v464_v3  ;;  %v467_v6 = vld [vmem:[%s10307_s1 + $0x30] sm:$0xff] }
  0x16   : > { %482 = vst.msk [vmem:[%s10317_s11 + $0x20] sm:$0xff] %vm477_vm0, %v465_v4  ;;  %483 = vst.msk [vmem:[%s10317_s11 + $0x28] sm:$0xff] %vm477_vm0, %v466_v5  ;;  %v468_v7 = vld [vmem:[%s10307_s1 + $0x38] sm:$0xff]  ;;  %v469_v8 = vld [vmem:[%s10307_s1 + $0x40] sm:$0xff] }
  0x17   : > { %484 = vst.msk [vmem:[%s10317_s11 + $0x30] sm:$0xff] %vm477_vm0, %v467_v6  ;;  %485 = vst.msk [vmem:[%s10317_s11 + $0x38] sm:$0xff] %vm477_vm0, %v468_v7  ;;  %v470_v9 = vld [vmem:[%s10307_s1 + $0x48] sm:$0xff]  ;;  %v471_v10 = vld [vmem:[%s10307_s1 + $0x50] sm:$0xff] }
  0x18   : > { %486 = vst.msk [vmem:[%s10317_s11 + $0x40] sm:$0xff] %vm477_vm0, %v469_v8  ;;  %v472_v11 = vld [vmem:[%s10307_s1 + $0x58] sm:$0xff]  ;;  %487 = vst.msk [vmem:[%s10317_s11 + $0x48] sm:$0xff] %vm477_vm0, %v470_v9  ;;  %v473_v12 = vld [vmem:[%s10307_s1 + $0x60] sm:$0xff] }
  0x19   : > { %488 = vst.msk [vmem:[%s10317_s11 + $0x50] sm:$0xff] %vm477_vm0, %v471_v10  ;;  %489 = vst.msk [vmem:[%s10317_s11 + $0x58] sm:$0xff] %vm477_vm0, %v472_v11  ;;  %v474_v13 = vld [vmem:[%s10307_s1 + $0x68] sm:$0xff]  ;;  %v475_v14 = vld [vmem:[%s10307_s1 + $0x70] sm:$0xff] }
  0x1a   : > { %490 = vst.msk [vmem:[%s10317_s11 + $0x60] sm:$0xff] %vm477_vm0, %v473_v12  ;;  %491 = vst.msk [vmem:[%s10317_s11 + $0x68] sm:$0xff] %vm477_vm0, %v474_v13  ;;  %v476_v15 = vld [vmem:[%s10307_s1 + $0x78] sm:$0xff] }
  0x1b   : > { %492 = vst.msk [vmem:[%s10317_s11 + $0x70] sm:$0xff] %vm477_vm0, %v475_v14  ;;  %493 = vst.msk [vmem:[%s10317_s11 + $0x78] sm:$0xff] %vm477_vm0, %v476_v15 }
  0x1c PF: > { %s8313_s25 = sshll.u32 %s8102_s17, 6  ;;  %v607_v16 = vld [vmem:[%s10308_s2 + $0x38] sm:$0xff]  ;;  %v606_v18 = vld [vmem:[%s10308_s2 + $0x30] sm:$0xff]  ;;  %v605_v22 = vld [vmem:[%s10308_s2 + $0x28] sm:$0xff]  ;;  %s8392_s26 = sshll.u32 %s8102_s17, 7  ;;  %v10318_v49 = vmov 0  }
  0x1d   : > { %v599_v17 = vld [vmem:[%s10306_s0 + $0x38] sm:$0xff]  ;;  %s8325_s13 = scalar_lea.vmem %s10310_s4, %s8313_s25  ;;  %s8331_s16 = scalar_lea.vmem %s10309_s3, %s8313_s25  ;;  %7184 = vmatprep.subr.mxu1 %v607_v16  ;;  %v598_v19 = vld [vmem:[%s10306_s0 + $0x30] sm:$0xff]  ;;  %v604_v25 = vld [vmem:[%s10308_s2 + $0x20] sm:$0xff]  ;;  %vm688_vm1 = vcmask 523264   ;;  %vm1155_vm2 = vcmask 130048  }
  0x1e   : > { %7156 = vmatprep.subr.mxu0 %v599_v17  ;;  %v505_v20 = vld [vmem:[%s8325_s13] sm:$0xff]  ;;  %7185 = vmatpush3.msra.mxu1 %v607_v16  ;;  %v506_v23 = vld [vmem:[%s8325_s13 + $0x8] sm:$0xff]  ;;  %v507_v27 = vld [vmem:[%s8325_s13 + $0x10] sm:$0xff]  ;;  %s8398_s29 = scalar_lea.vmem %s10314_s8, %s8392_s26  ;;  %s8545_s14 = scalar_lea.vmem %s10311_s5, %s8313_s25 }
  0x1f   : > { %v496_v21 = vld [vmem:[%s8331_s16] sm:$0xff]  ;;  %7157 = vmatpush3.msra.mxu0 %v599_v17  ;;  %898 = vxpose.xlu0.b32.start [1/8] (short) %v505_v20, 128  ;;  %v497_v24 = vld [vmem:[%s8331_s16 + $0x8] sm:$0xff]  ;;  %v498_v28 = vld [vmem:[%s8331_s16 + $0x10] sm:$0xff]  ;;  %s522_s22 = scalar_lea.vmem %s10312_s6, %s8313_s25  ;;  %s9098_s24 = scalar_lea.vmem %s10315_s9, %s8392_s26 }
  0x20   : > { %656 = vxpose.xlu1.b32.start [1/8] (short) (narrow) %v496_v21, 64  ;;  %7186 = vmatprep.subr.mxu1 %v606_v18  ;;  %v597_v26 = vld [vmem:[%s10306_s0 + $0x28] sm:$0xff]  ;;  %v596_v29 = vld [vmem:[%s10306_s0 + $0x20] sm:$0xff]  ;;  %v603_v30 = vld [vmem:[%s10308_s2 + $0x18] sm:$0xff] }
  0x21   : > { %7158 = vmatprep.subr.mxu0 %v598_v19  ;;  %7187 = vmatpush3.msra.mxu1 %v606_v18  ;;  %v595_v31 = vld [vmem:[%s10306_s0 + $0x18] sm:$0xff]  ;;  %v602_v32 = vld [vmem:[%s10308_s2 + $0x10] sm:$0xff]  ;;  %v601_v36 = vld [vmem:[%s10308_s2 + $0x8] sm:$0xff] }
  0x22   : > { %7159 = vmatpush3.msra.mxu0 %v598_v19  ;;  %7188 = vmatprep.subr.mxu1 %v605_v22  ;;  %v508_v33 = vld [vmem:[%s8325_s13 + $0x18] sm:$0xff]  ;;  %v594_v35 = vld [vmem:[%s10306_s0 + $0x10] sm:$0xff]  ;;  %v593_v37 = vld [vmem:[%s10306_s0 + $0x8] sm:$0xff] }
  0x23   : > { %899 = vxpose.xlu0.b32.cont [2/8] (short) %v506_v23, 128  ;;  %7189 = vmatpush3.msra.mxu1 %v605_v22  ;;  %v499_v34 = vld [vmem:[%s8331_s16 + $0x18] sm:$0xff]  ;;  %v509_v38 = vld [vmem:[%s8325_s13 + $0x20] sm:$0xff]  ;;  %v510_v42 = vld [vmem:[%s8325_s13 + $0x28] sm:$0xff] }
  0x24   : > { %657 = vxpose.xlu1.b32.cont [2/8] (short) (narrow) %v497_v24, 64  ;;  %7160 = vmatprep.subr.mxu0 %v597_v26  ;;  %v500_v39 = vld [vmem:[%s8331_s16 + $0x20] sm:$0xff]  ;;  %v501_v43 = vld [vmem:[%s8331_s16 + $0x28] sm:$0xff]  ;;  %v511_v44 = vld [vmem:[%s8325_s13 + $0x30] sm:$0xff] }
  0x25   : > { %7190 = vmatprep.subr.mxu1 %v604_v25  ;;  %7161 = vmatpush3.msra.mxu0 %v597_v26  ;;  %v600_v40 = vld [vmem:[%s10308_s2] sm:$0xff]  ;;  %v502_v45 = vld [vmem:[%s8331_s16 + $0x30] sm:$0xff]  ;;  %v512_v46 = vld [vmem:[%s8325_s13 + $0x38] sm:$0xff]  ;;  %s9206_s13 = scalar_lea.vmem %s10313_s7, %s8392_s26 }
  0x26   : > { %7191 = vmatpush3.msra.mxu1 %v604_v25  ;;  %7162 = vmatprep.subr.mxu0 %v596_v29  ;;  %v592_v41 = vld [vmem:[%s10306_s0] sm:$0xff]  ;;  %v503_v47 = vld [vmem:[%s8331_s16 + $0x38] sm:$0xff]  ;;  %v551_v48 = vld [vmem:[%s8398_s29 + $0x8] sm:$0xff]  ;;  %s8408_s16 = scalar_lea.vmem %s10316_s10, %s8313_s25 }
  0x27   : > { %900 = vxpose.xlu0.b32.cont [3/8] (short) %v507_v27, 128  ;;  %7192 = vmatprep.subr.mxu1 %v603_v30  ;;  %v552_v50 = vld [vmem:[%s8398_s29 + $0x10] sm:$0xff]  ;;  %v553_v51 = vld [vmem:[%s8398_s29 + $0x18] sm:$0xff]  ;;  %v585_v52 = vld [vmem:[%s8408_s16 + $0x8] sm:$0xff] }
  0x28   : > { %658 = vxpose.xlu1.b32.cont [3/8] (short) (narrow) %v498_v28, 64  ;;  %7163 = vmatpush3.msra.mxu0 %v596_v29  ;;  %v584_v53 = vld [vmem:[%s8408_s16] sm:$0xff]  ;;  %v587_v54 = vld [vmem:[%s8408_s16 + $0x18] sm:$0xff]  ;;  %v586_v55 = vld [vmem:[%s8408_s16 + $0x10] sm:$0xff] }
  0x29   : > { %7193 = vmatpush3.msra.mxu1 %v603_v30  ;;  %7164 = vmatprep.subr.mxu0 %v595_v31  ;;  %v550_v56 = vld [vmem:[%s8398_s29] sm:$0xff] }
  0x2a   : > { %7194 = vmatprep.subr.mxu1 %v602_v32  ;;  %7165 = vmatpush3.msra.mxu0 %v595_v31 }
  0x2b   : > { %901 = vxpose.xlu0.b32.cont [4/8] (short) %v508_v33, 128  ;;  %7195 = vmatpush3.msra.mxu1 %v602_v32 }
  0x2c   : > { %659 = vxpose.xlu1.b32.cont [4/8] (short) (narrow) %v499_v34, 64  ;;  %7166 = vmatprep.subr.mxu0 %v594_v35 }
  0x2d   : > { %7196 = vmatprep.subr.mxu1 %v601_v36  ;;  %7167 = vmatpush3.msra.mxu0 %v594_v35 }
  0x2e   : > { %7197 = vmatpush3.msra.mxu1 %v601_v36  ;;  %7168 = vmatprep.subr.mxu0 %v593_v37 }
  0x2f   : > { %902 = vxpose.xlu0.b32.cont [5/8] (short) %v509_v38, 128  ;;  %7198 = vmatprep.subr.mxu1 %v600_v40  ;;  %v560_v38 = vld [vmem:[%s8398_s29 + $0x50] sm:$0xff] }
  0x30   : > { %660 = vxpose.xlu1.b32.cont [5/8] (short) (narrow) %v500_v39, 64  ;;  %7169 = vmatpush3.msra.mxu0 %v593_v37  ;;  %v554_v39 = vld [vmem:[%s8398_s29 + $0x20] sm:$0xff] }
  0x31   : > { %7199 = vmatpush3.msra.mxu1 %v600_v40  ;;  %7170 = vmatprep.subr.mxu0 %v592_v41  ;;  %v555_v40 = vld [vmem:[%s8398_s29 + $0x28] sm:$0xff] }
  0x32   : > { %7171 = vmatpush3.msra.mxu0 %v592_v41  ;;  %v558_v41 = vld [vmem:[%s8398_s29 + $0x40] sm:$0xff] }
  0x33   : > { %903 = vxpose.xlu0.b32.cont [6/8] (short) %v510_v42, 128  ;;  %v559_v42 = vld [vmem:[%s8398_s29 + $0x48] sm:$0xff] }
  0x34   : > { %661 = vxpose.xlu1.b32.cont [6/8] (short) (narrow) %v501_v43, 64  ;;  %v561_v43 = vld [vmem:[%s8398_s29 + $0x58] sm:$0xff] }
  0x37   : > { %904 = vxpose.xlu0.b32.cont [7/8] (short) %v511_v44, 128  ;;  %v589_v44 = vld [vmem:[%s8408_s16 + $0x28] sm:$0xff] }
  0x38   : > { %662 = vxpose.xlu1.b32.cont [7/8] (short) (narrow) %v502_v45, 64  ;;  %v588_v45 = vld [vmem:[%s8408_s16 + $0x20] sm:$0xff] }
  0x3b   : > { %905 = vxpose.xlu0.b32.end [8/8] (short) %v512_v46, 128  ;;  %v516_v46 = vld [vmem:[%s8545_s14 + $0x10] sm:$0xff] }
  0x3c   : > { %663 = vxpose.xlu1.b32.end [8/8] (short) (narrow) %v503_v47, 64 }
  0x5a   : > { %7901 = vset.pattern.permute.xlu1 %v10318_v49 }
  0x5b   : > { %825 = vperm.xlu1 %7901, %v551_v48   ;;  %v517_v48 = vld [vmem:[%s8545_s14 + $0x18] sm:$0xff] }
  0x5f   : > { %830 = vperm.xlu1 %7901, %v552_v50  }
  0x63   : > { %835 = vperm.xlu1 %7901, %v553_v51  }
  0x64   : > { %7900 = vset.pattern.permute.xlu0 %v10318_v49 }
  0x67   : > { %623 = vperm.xlu1 %7901, %v585_v52  }
  0x6b   : > { %618 = vperm.xlu1 %7901, %v584_v53  }
  0x6f   : > { %633 = vperm.xlu1 %7901, %v587_v54  }
  0x73   : > { %628 = vperm.xlu1 %7901, %v586_v55  }
  0x84   : > { %820 = vperm.xlu0 %7900, %v550_v56  }
  0x9b   : > { %v8416_v57 = vpop.trf.xlu0 }
  0x9c   : > { %10473 = vst [vmem:[#allocation2_spill] sm:$0xff] %v8416_v57  ;;  %v8418_v58 = vpop.trf.xlu1  ;;  %7200 = vmatprep.mubr.msk.f32.mxu1 %vm688_vm1, %v8416_v57  ;;  %v564_v57 = vld [vmem:[%s8398_s29 + $0x70] sm:$0xff] }
  0x9d   : > { %7172 = vmatprep.mubr.msk.f32.mxu0 %vm688_vm1, %v8418_v58 }
  0x9f   : > { %v8424_v59 = vpop.trf.xlu0 }
  0xa0   : > { %10474 = vst [vmem:[#allocation3_spill] sm:$0xff] %v8424_v59  ;;  %v8426_v60 = vpop.trf.xlu1  ;;  %7201 = vmatmul.mubr.msk.f32.vlgmr.msra.gmra.mxu1 %vm688_vm1, %v8424_v59 }
  0xa1   : > { %7173 = vmatmul.mubr.msk.f32.vlgmr.msra.gmra.mxu0 %vm688_vm1, %v8426_v60 }
  0xa3   : > { %v8432_v61 = vpop.trf.xlu0 }
  0xa4   : > { %10475 = vst [vmem:[#allocation4_spill] sm:$0xff] %v8432_v61  ;;  %v8434_v62 = vpop.trf.xlu1  ;;  %7203 = vmatprep.mubr.msk.f32.mxu1 %vm688_vm1, %v8432_v61 }
  0xa5   : > { %7175 = vmatprep.mubr.msk.f32.mxu0 %vm688_vm1, %v8434_v62 }
  0xa7   : > { %v8440_v63 = vpop.trf.xlu0 }
  0xa8   : > { %10476 = vst [vmem:[#allocation5_spill] sm:$0xff] %v8440_v63  ;;  %v8442_v0 = vpop.trf.xlu1  ;;  %7204 = vmatmul.mubr.msk.f32.gmra.mxu1 %vm688_vm1, %v8440_v63 }
  0xa9   : > { %10477 = vst [vmem:[#allocation6_spill] sm:$0xff] %v8442_v0  ;;  %7176 = vmatmul.mubr.msk.f32.gmra.mxu0 %vm688_vm1, %v8442_v0 }
  0xab   : > { %v8448_v1 = vpop.trf.xlu0 }
  0xac   : > { %10478 = vst [vmem:[#allocation7_spill] sm:$0xff] %v8448_v1  ;;  %v8450_v2 = vpop.trf.xlu1  ;;  %7206 = vmatprep.mubr.msk.f32.mxu1 %vm688_vm1, %v8448_v1 }
  0xad   : > { %10479 = vst [vmem:[#allocation8_spill] sm:$0xff] %v8450_v2  ;;  %7178 = vmatprep.mubr.msk.f32.mxu0 %vm688_vm1, %v8450_v2 }
  0xaf   : > { %v8456_v3 = vpop.trf.xlu0 }
  0xb0   : > { %10480 = vst [vmem:[#allocation9_spill] sm:$0xff] %v8456_v3  ;;  %v8458_v4 = vpop.trf.xlu1  ;;  %7207 = vmatmul.mubr.msk.f32.gmra.mxu1 %vm688_vm1, %v8456_v3 }
  0xb1   : > { %10481 = vst [vmem:[#allocation10_spill] sm:$0xff] %v8458_v4  ;;  %7179 = vmatmul.mubr.msk.f32.gmra.mxu0 %vm688_vm1, %v8458_v4 }
  0xb3   : > { %v8464_v5 = vpop.trf.xlu0 }
  0xb4   : > { %10482 = vst [vmem:[#allocation11_spill] sm:$0xff] %v8464_v5  ;;  %v8466_v6 = vpop.trf.xlu1  ;;  %7209 = vmatprep.mubr.msk.f32.mxu1 %vm688_vm1, %v8464_v5 }
  0xb5   : > { %10483 = vst [vmem:[#allocation12_spill] sm:$0xff] %v8466_v6  ;;  %7181 = vmatprep.mubr.msk.f32.mxu0 %vm688_vm1, %v8466_v6 }
  0xb7   : > { %v8472_v7 = vpop.trf.xlu0 }
  0xb8   : > { %10484 = vst [vmem:[#allocation13_spill] sm:$0xff] %v8472_v7  ;;  %v8474_v8 = vpop.trf.xlu1  ;;  %7210 = vmatmul.mubr.msk.f32.gmra.mxu1 %vm688_vm1, %v8472_v7 }
  0xb9   : > { %10485 = vst [vmem:[#allocation14_spill] sm:$0xff] %v8474_v8  ;;  %7182 = vmatmul.mubr.msk.f32.gmra.mxu0 %vm688_vm1, %v8474_v8 }
  0xbb   : > { %v8480_v9 = vpop.trf.xlu0 }
  0xbc   : > { %10486 = vst [vmem:[#allocation15_spill] sm:$0xff] %v8480_v9  ;;  %7212 = vmatprep.mubr.msk.f32.mxu1 %vm688_vm1, %v8480_v9 }
  0xbf   : > { %v8484_v10 = vpop.trf.xlu0 }
  0xc0   : > { %10487 = vst [vmem:[#allocation16_spill] sm:$0xff] %v8484_v10  ;;  %7213 = vmatmul.mubr.msk.f32.gmra.mxu1 %vm688_vm1, %v8484_v10 }
  0xc3   : > { %v8488_v11 = vpop.trf.xlu0 }
  0xc4   : > { %10488 = vst [vmem:[#allocation17_spill] sm:$0xff] %v8488_v11  ;;  %7215 = vmatprep.mubr.msk.f32.mxu1 %vm688_vm1, %v8488_v11 }
  0xc7   : > { %v8492_v12 = vpop.trf.xlu0 }
  0xc8   : > { %10489 = vst [vmem:[#allocation18_spill] sm:$0xff] %v8492_v12  ;;  %7216 = vmatmul.mubr.msk.f32.gmra.mxu1 %vm688_vm1, %v8492_v12 }
  0xcb   : > { %v8496_v13 = vpop.trf.xlu0 }
  0xcc   : > { %10490 = vst [vmem:[#allocation19_spill] sm:$0xff] %v8496_v13  ;;  %7218 = vmatprep.mubr.msk.f32.mxu1 %vm688_vm1, %v8496_v13 }
  0xcf   : > { %v8500_v14 = vpop.trf.xlu0 }
  0xd0   : > { %10491 = vst [vmem:[#allocation20_spill] sm:$0xff] %v8500_v14  ;;  %7219 = vmatmul.mubr.msk.f32.gmra.mxu1 %vm688_vm1, %v8500_v14 }
  0xd3   : > { %v8504_v15 = vpop.trf.xlu0 }
  0xd4   : > { %10492 = vst [vmem:[#allocation21_spill] sm:$0xff] %v8504_v15  ;;  %7221 = vmatprep.mubr.msk.f32.mxu1 %vm688_vm1, %v8504_v15 }
  0xd6   : > { %v8512_v17 = vpop.permute.xlu1 %825 }
  0xd7   : > { %v8508_v16 = vpop.trf.xlu0  ;;  %10494 = vst [vmem:[#allocation23_spill] sm:$0xff] %v8512_v17 }
  0xd8   : > { %10493 = vst [vmem:[#allocation22_spill] sm:$0xff] %v8508_v16  ;;  %7222 = vmatmul.mubr.msk.f32.gmra.mxu1 %vm688_vm1, %v8508_v16 }
  0xda   : > { %v8514_v18 = vpop.permute.xlu1 %830 }
  0xdb   : > { %10495 = vst [vmem:[#allocation24_spill] sm:$0xff] %v8514_v18 }
  0xde   : > { %v8516_v19 = vpop.permute.xlu1 %835 }
  0xdf   : > { %10496 = vst [vmem:[#allocation25_spill] sm:$0xff] %v8516_v19 }
  0xe2   : > { %v8518_v20 = vpop.permute.xlu1 %623 }
  0xe3   : > { %10497 = vst [vmem:[#allocation26_spill] sm:$0xff] %v8518_v20 }
  0xe6   : > { %v8522_v24 = vpop.permute.xlu1 %618 }
  0xe7   : > { %10499 = vst [vmem:[#allocation28_spill] sm:$0xff] %v8522_v24 }
  0xea   : > { %v8528_v31 = vpop.permute.xlu1 %633 }
  0xeb   : > { %10500 = vst [vmem:[#allocation29_spill] sm:$0xff] %v8528_v31 }
  0xee   : > { %v8548_v47 = vpop.permute.xlu1 %628 }
  0xef   : > { %10501 = vst [vmem:[#allocation30_spill] sm:$0xff] %v8548_v47 }
  0xff   : > { %v8520_v21 = vpop.permute.xlu0 %820 }
 0x100   : > { %10498 = vst [vmem:[#allocation27_spill] sm:$0xff] %v8520_v21 }
 0x160   : > { %v7202_v22 = vpop.f32.mrf.mxu1 }
 0x161   : > { %v7174_v23 = vpop.f32.mrf.mxu0  ;;  %v1050_v30 = vadd.f32 %v7202_v22, %v8512_v17 }
 0x162   : > { %v785_v25 = vadd.f32 %v7174_v23, %v8518_v20  ;;  %v1044_v26 = vpop.f32.mrf.mxu1 }
 0x163   : > { %v779_v27 = vpop.f32.mrf.mxu0  ;;  %v1045_v28 = vadd.f32 %v1044_v26, %v8520_v21 }
 0x164   : > { %v780_v29 = vadd.f32 %v779_v27, %v8522_v24  ;;  %7224 = vmatprep.subr.mxu0 %v785_v25 }
 0x165   : > { %7225 = vmatpush3.msra.mxu0 %v785_v25  ;;  %1123 = vxpose.xlu1.b32.start [1/2] (short) (narrow) %v1045_v28, 64 }
 0x166   : > { %7226 = vmatprep.subr.mxu0 %v780_v29 }
 0x167   : > { %7227 = vmatpush3.msra.mxu0 %v780_v29 }
 0x168   : > { %v7205_v33 = vpop.f32.mrf.mxu1 }
 0x169   : > { %v7177_v32 = vpop.f32.mrf.mxu0  ;;  %1124 = vxpose.xlu1.b32.end [2/2] (short) (narrow) %v1050_v30, 64  ;;  %v1060_v37 = vadd.f32 %v7205_v33, %v8516_v19 }
 0x16a   : > { %v795_v34 = vadd.f32 %v7177_v32, %v8528_v31  ;;  %v1054_v35 = vpop.f32.mrf.mxu1 }
 0x16b   : > { %v1055_v36 = vadd.f32 %v1054_v35, %v8514_v18  ;;  %v789_v51 = vpop.f32.mrf.mxu0 }
 0x16c   : > { %7259 = vmatprep.subr.mxu0 %v795_v34  ;;  %v790_v53 = vadd.f32 %v789_v51, %v8548_v47 }
 0x16d   : > { %1441 = vxpose.xlu0.b32.start [1/2] (short) (narrow) %v1055_v36, 64 }
 0x170   : > { %v7208_v33 = vpop.f32.mrf.mxu1 }
 0x171   : > { %1442 = vxpose.xlu0.b32.end [2/2] (short) (narrow) %v1060_v37, 64 }
 0x172   : > { %v1064_v35 = vpop.f32.mrf.mxu1 }
 0x178   : > { %v8565_v36 = vpop.f32.mrf.mxu1 }
 0x19f   : > { %870 = vperm.xlu1 %7901, %v560_v38   ;;  %v8569_v38 = vpop.f32.mrf.mxu1 }
 0x1a3   : > { %840 = vperm.xlu1 %7901, %v554_v39   ;;  %v8572_v39 = vpop.f32.mrf.mxu1 }
 0x1a7   : > { %845 = vperm.xlu1 %7901, %v555_v40   ;;  %v557_v40 = vld [vmem:[%s8398_s29 + $0x38] sm:$0xff] }
 0x1ab   : > { %860 = vperm.xlu1 %7901, %v558_v41   ;;  %v1084_v41 = vpop.f32.mrf.mxu1 }
 0x1af   : > { %865 = vperm.xlu1 %7901, %v559_v42   ;;  %v8575_v42 = vpop.f32.mrf.mxu1 }
 0x1b2   : > { %875 = vperm.xlu0 %7900, %v561_v43   ;;  %v591_v43 = vld [vmem:[%s8408_s16 + $0x38] sm:$0xff] }
 0x1b3   : > { %643 = vperm.xlu1 %7901, %v589_v44   ;;  %v1094_v44 = vpop.f32.mrf.mxu1 }
 0x1b6   : > { %638 = vperm.xlu0 %7900, %v588_v45  }
 0x1dc   : > { %1758 = vxpose.xlu1.b32.start [1/2] (short) (narrow) %v516_v46, 64 }
 0x1e0   : > { %1759 = vxpose.xlu1.b32.end [2/2] (short) (narrow) %v517_v48, 64 }
 0x1e1   : > { %v1139_v50 = vpop.trf.xlu1 }
 0x1e2   : > { %7228 = vmatprep.mubr.msk.f32.mxu0 %vm1155_vm2, %v1139_v50 }
 0x1e5   : > { %v1140_v52 = vpop.trf.xlu1 }
 0x1e6   : > { %7229 = vmatmul.mubr.msk.f32.vlgmr.msra.gmra.mxu0 %vm1155_vm2, %v1140_v52 }
 0x1e7   : > { %7260 = vmatpush3.msra.mxu0 %v795_v34 }
 0x1e8   : > { %7261 = vmatprep.subr.mxu0 %v790_v53 }
 0x1e9   : > { %7262 = vmatpush3.msra.mxu0 %v790_v53  ;;  %v1141_v54 = vpop.trf.xlu1  ;;  %v1457_v55 = vpop.trf.xlu0 }
 0x1ea   : > { %7231 = vmatprep.mubr.msk.f32.mxu0 %vm1155_vm2, %v1141_v54 }
 0x1ed   : > { %v1142_v56 = vpop.trf.xlu1  ;;  %v1458_v22 = vpop.trf.xlu0 }
 0x1ee   : > { %7232 = vmatmul.mubr.msk.f32.gmra.mxu0 %vm1155_vm2, %v1142_v56  ;;  %v590_v56 = vld [vmem:[%s8408_s16 + $0x30] sm:$0xff] }
 0x1f1   : > { %v1143_v23 = vpop.trf.xlu1  ;;  %v1459_v25 = vpop.trf.xlu0 }
 0x1f2   : > { %7234 = vmatprep.mubr.msk.f32.mxu0 %vm1155_vm2, %v1143_v23  ;;  %v563_v23 = vld [vmem:[%s8398_s29 + $0x68] sm:$0xff] }
 0x1f5   : > { %v1144_v26 = vpop.trf.xlu1  ;;  %v1460_v27 = vpop.trf.xlu0 }
 0x1f6   : > { %7235 = vmatmul.mubr.msk.f32.gmra.mxu0 %vm1155_vm2, %v1144_v26  ;;  %v515_v26 = vld [vmem:[%s8545_s14 + $0x8] sm:$0xff] }
 0x1f9   : > { %v1145_v28 = vpop.trf.xlu1  ;;  %v1461_v29 = vpop.trf.xlu0 }
 0x1fa   : > { %7237 = vmatprep.mubr.msk.f32.mxu0 %vm1155_vm2, %v1145_v28 }
 0x1fd   : > { %v1146_v30 = vpop.trf.xlu1  ;;  %v1462_v32 = vpop.trf.xlu0 }
 0x1fe   : > { %7238 = vmatmul.mubr.msk.f32.gmra.mxu0 %vm1155_vm2, %v1146_v30 }
 0x1ff   : > { %7263 = vmatprep.mubr.msk.f32.mxu0 %vm1155_vm2, %v1457_v55  ;;  %v556_v55 = vld [vmem:[%s8398_s29 + $0x30] sm:$0xff] }
 0x201   : > { %v1463_v34 = vpop.trf.xlu0 }
 0x202   : > { %7264 = vmatmul.mubr.msk.f32.vlgmr.msra.gmra.mxu0 %vm1155_vm2, %v1458_v22  ;;  %v562_v22 = vld [vmem:[%s8398_s29 + $0x60] sm:$0xff] }
 0x203   : > { %7266 = vmatprep.mubr.msk.f32.mxu0 %vm1155_vm2, %v1459_v25  ;;  %v514_v25 = vld [vmem:[%s8545_s14] sm:$0xff] }
 0x205   : > { %v1464_v37 = vpop.trf.xlu0 }
 0x206   : > { %7267 = vmatmul.mubr.msk.f32.gmra.mxu0 %vm1155_vm2, %v1460_v27  ;;  %v8598_v27 = vpop.f32.mrf.mxu0 }
 0x207   : > { %7269 = vmatprep.mubr.msk.f32.mxu0 %vm1155_vm2, %v1461_v29 }
 0x208   : > { %v8600_v28 = vpop.f32.mrf.mxu0 }
 0x20a   : > { %7270 = vmatmul.mubr.msk.f32.gmra.mxu0 %vm1155_vm2, %v1462_v32  ;;  %v8602_v29 = vpop.f32.mrf.mxu0 }
 0x20b   : > { %7272 = vmatprep.mubr.msk.f32.mxu0 %vm1155_vm2, %v1463_v34 }
 0x20c   : > { %v8606_v32 = vpop.f32.mrf.mxu0 }
 0x20e   : > { %7273 = vmatmul.mubr.msk.f32.gmra.mxu0 %vm1155_vm2, %v1464_v37 }
 0x216   : > { %855 = vperm.xlu1 %7901, %v557_v40  }
 0x21a   : > { %653 = vperm.xlu1 %7901, %v591_v43   ;;  %v8578_v45 = vpop.permute.xlu1 %870 }
 0x21b   : > { %10502 = vst [vmem:[#allocation31_spill] sm:$0xff] %v8578_v45  ;;  %v1095_v46 = vadd.f32 %v1094_v44, %v8578_v45 }
 0x21d   : > { %7291 = vmatprep.mubr.msk.f32.mxu0 %vm688_vm1, %v1095_v46 }
 0x21e   : > { %v8582_v48 = vpop.permute.xlu1 %840 }
 0x21f   : > { %10503 = vst [vmem:[#allocation32_spill] sm:$0xff] %v8582_v48  ;;  %v1065_v50 = vadd.f32 %v1064_v35, %v8582_v48 }
 0x221   : > { %2080 = vxpose.xlu0.b32.start [1/2] (short) (narrow) %v1065_v50, 64 }
 0x222   : > { %v8585_v51 = vpop.permute.xlu1 %845 }
 0x223   : > { %10504 = vst [vmem:[#allocation33_spill] sm:$0xff] %v8585_v51  ;;  %v1070_v52 = vadd.f32 %v7208_v33, %v8585_v51 }
 0x225   : > { %2081 = vxpose.xlu0.b32.end [2/2] (short) (narrow) %v1070_v52, 64 }
 0x226   : > { %v8588_v53 = vpop.permute.xlu1 %860 }
 0x227   : > { %10505 = vst [vmem:[#allocation34_spill] sm:$0xff] %v8588_v53  ;;  %v1085_v54 = vadd.f32 %v1084_v41, %v8588_v53 }
 0x229   : > { %7256 = vmatprep.mubr.msk.f32.mxu1 %vm688_vm1, %v1085_v54 }
 0x22a   : > { %v8608_v33 = vpop.permute.xlu1 %865 }
 0x22d   : > { %v8604_v30 = vpop.permute.xlu0 %875 }
 0x22e   : > { %v8616_v40 = vpop.permute.xlu1 %643 }
 0x22f   : > { %10507 = vst [vmem:[#allocation36_spill] sm:$0xff] %v8616_v40 }
 0x231   : > { %v8612_v35 = vpop.permute.xlu0 %638 }
 0x232   : > { %10506 = vst [vmem:[#allocation35_spill] sm:$0xff] %v8612_v35 }
 0x258   : > { %v8622_v44 = vpop.trf.xlu1 }
 0x25c   : > { %v8630_v54 = vpop.trf.xlu1 }
 0x25d   : > { %10508 = vst [vmem:[#allocation37_spill] sm:$0xff] %v8630_v54 }
 0x266   : > { %850 = vperm.xlu0 %7900, %v556_v55  }
 0x26a   : > { %648 = vperm.xlu0 %7900, %v590_v56  }
 0x26e   : > { %880 = vperm.xlu0 %7900, %v562_v22  }
 0x272   : > { %885 = vperm.xlu0 %7900, %v563_v23  }
 0x290   : > { %1919 = vxpose.xlu0.b32.start [1/2] (short) (narrow) %v514_v25, 64  ;;  %v8640_v25 = vpop.trf.xlu1 }
 0x291   : > { %10509 = vst [vmem:[#allocation38_spill] sm:$0xff] %v8640_v25 }
 0x294   : > { %1920 = vxpose.xlu0.b32.end [2/2] (short) (narrow) %v515_v26, 64  ;;  %v8664_v13 = vpop.trf.xlu1 }
 0x295   : > { %10510 = vst [vmem:[#allocation39_spill] sm:$0xff] %v8664_v13 }
 0x29d   : > { %v8620_v43 = vpop.trf.xlu0 }
 0x2a1   : > { %v8628_v52 = vpop.trf.xlu0 }
 0x2a5   : > { %v8636_v22 = vpop.trf.xlu0 }
 0x2a6   : > { %v8610_v34 = vpop.f32.mrf.mxu0 }
 0x2a7   : > { %v1286_v51 = vsel %vm688_vm1, %v8610_v34, -inf }
 0x2a8   : > { %v8614_v37 = vpop.f32.mrf.mxu0 }
 0x2a9   : > { %v1285_v26 = vsel %vm688_vm1, %v8614_v37, -inf }
 0x2ae   : > { %v8618_v41 = vpop.f32.mrf.mxu0 }
 0x2af   : > { %v1288_v48 = vsel %vm688_vm1, %v8618_v41, -inf }
 0x2b0   : > { %v8624_v46 = vpop.f32.mrf.mxu0 }
 0x2b1   : > { %v1287_v45 = vsel %vm688_vm1, %v8624_v46, -inf }
 0x2b6   : > { %v8626_v50 = vpop.f32.mrf.mxu0 }
 0x2b7   : > { %v1291_v49 = vsel %vm688_vm1, %v8626_v50, -inf }
 0x2b8   : > { %v8632_v55 = vpop.f32.mrf.mxu0  ;;  %v1292_v18 = vmax.f32 %v1286_v51, %v1291_v49 }
 0x2b9   : > { %v1289_v56 = vsel %vm688_vm1, %v8632_v55, -inf }
 0x2ba   : > { %v1290_v31 = vmax.f32 %v1285_v26, %v1289_v56  ;;  %v8660_v56 = vpop.trf.xlu0 }
 0x2bc   : > { %v1297_v26 = vmax.f32 %v1290_v31, %v1292_v18 }
 0x2be   : > { %v8638_v23 = vpop.f32.mrf.mxu0  ;;  %v8670_v7 = vpop.trf.xlu0 }
 0x2bf   : > { %v1295_v47 = vsel %vm688_vm1, %v8638_v23, -inf }
 0x2c0   : > { %v8648_v53 = vpop.f32.mrf.mxu0  ;;  %v1296_v17 = vmax.f32 %v1288_v48, %v1295_v47  ;;  %v8674_v47 = vpop.trf.xlu1 }
 0x2c1   : > { %v1293_v19 = vsel %vm688_vm1, %v8648_v53, -inf  ;;  %10511 = vst [vmem:[#allocation40_spill] sm:$0xff] %v8674_v47 }
 0x2c2   : > { %v1294_v21 = vmax.f32 %v1287_v45, %v1293_v19  ;;  %v8658_v16 = vpop.f32.mrf.mxu0  ;;  %v8682_v31 = vpop.trf.xlu0 }
 0x2c3   : > { %v1603_v63 = vsel %vm688_vm1, %v8658_v16, -inf }
 0x2c4   : > { %v1298_v15 = vmax.f32 %v1294_v21, %v1296_v17  ;;  %v8662_v14 = vpop.f32.mrf.mxu0 }
 0x2c6   : > { %v1299_v12 = vmax.f32 %v1297_v26, %v1298_v15  ;;  %v8666_v11 = vpop.f32.mrf.mxu0  ;;  %v8708_v2 = vpop.trf.xlu0 }
 0x2c7   : > { %v1605_v61 = vsel %vm688_vm1, %v8666_v11, -inf }
 0x2c8   : > { %v1300_v10 = vrot.slane %v1299_v12, 4  ;;  %v8668_v9 = vpop.f32.mrf.mxu0 }
 0x2ca   : > { %v1301_v49 = vmax.f32 %v1299_v12, %v1300_v10  ;;  %v8672_v19 = vpop.f32.mrf.mxu0  ;;  %v1602_v10 = vsel %vm688_vm1, %v8662_v14, -inf }
 0x2cb   : > { %v1608_v12 = vsel %vm688_vm1, %v8672_v19, -inf }
 0x2cc   : > { %v1302_v45 = vrot.slane %v1301_v49, 2  ;;  %v8676_v18 = vpop.f32.mrf.mxu0  ;;  %v1609_v24 = vmax.f32 %v1603_v63, %v1608_v12 }
 0x2cd   : > { %v1606_v21 = vsel %vm688_vm1, %v8676_v18, -inf }
 0x2ce   : > { %v1303_v17 = vmax.f32 %v1301_v49, %v1302_v45  ;;  %v8680_v15 = vpop.f32.mrf.mxu0  ;;  %v8692_v49 = vpop.trf.xlu1  ;;  %v1604_v45 = vsel %vm688_vm1, %v8668_v9, -inf  ;;  %v1607_v5 = vmax.f32 %v1602_v10, %v1606_v21 }
 0x2cf   : > { %v1612_v51 = vsel %vm688_vm1, %v8680_v15, -inf  ;;  %10512 = vst [vmem:[#allocation41_spill] sm:$0xff] %v8692_v49 }
 0x2d0   : > { %v1304_v48 = vrot.slane %v1303_v17, 1  ;;  %v8690_v26 = vpop.f32.mrf.mxu0  ;;  %v1613_v20 = vmax.f32 %v1605_v61, %v1612_v51 }
 0x2d1   : > { %v1610_v3 = vsel %vm688_vm1, %v8690_v26, -inf }
 0x2d2   : > { %v1305_v1 = vmax.f32 %v1303_v17, %v1304_v48  ;;  %v1611_v59 = vmax.f32 %v1604_v45, %v1610_v3  ;;  %v1614_v48 = vmax.f32 %v1607_v5, %v1609_v24  ;;  %v8710_v63 = vpop.trf.xlu1  ;;  %v8714_v5 = vpop.trf.xlu0 }
 0x2d3   : > { %10513 = vst [vmem:[#allocation42_spill] sm:$0xff] %v8710_v63 }
 0x2d4   : > { %v1306_v8 = vsub.f32 %v8614_v37, %v1305_v1  ;;  %v1307_v6 = vsub.f32 %v8610_v34, %v1305_v1  ;;  %v1308_v21 = vsub.f32 %v8624_v46, %v1305_v1  ;;  %v1309_v10 = vsub.f32 %v8618_v41, %v1305_v1 }
 0x2d5   : > { %v1310_v17 = vsub.f32 %v8632_v55, %v1305_v1  ;;  %v1615_v4 = vmax.f32 %v1611_v59, %v1613_v20  ;;  %890 = vperm.xlu0 %7900, %v564_v57   ;;  %v1311_v61 = vsub.f32 %v8626_v50, %v1305_v1  ;;  %v1312_v46 = vsub.f32 %v8648_v53, %v1305_v1 }
 0x2d6   : > { %v1314_v0 = vmul.f32 1.442695, %v1306_v8  ;;  %v1316_v3 = vmul.f32 1.442695, %v1307_v6  ;;  %v1318_v45 = vmul.f32 1.442695, %v1308_v21  ;;  %v1313_v6 = vsub.f32 %v8638_v23, %v1305_v1  ;;  %v8717_v8 = vpop.trf.xlu1 }
 0x2d7   : > { %v1320_v37 = vmul.f32 1.442695, %v1309_v10  ;;  %v1616_v34 = vmax.f32 %v1614_v48, %v1615_v4  ;;  %v1322_v41 = vmul.f32 1.442695, %v1310_v17  ;;  %v1324_v57 = vmul.f32 1.442695, %v1311_v61 }
 0x2d8   : > { %7920 = vpow2.f32 %v1314_v0  ;;  %10514 = vst [vmem:[#allocation43_spill] sm:$0xff] %v8717_v8  ;;  %v1326_v20 = vmul.f32 1.442695, %v1312_v46  ;;  %v1328_v4 = vmul.f32 1.442695, %v1313_v6 }
 0x2d9   : > { %7922 = vpow2.f32 %v1316_v3  ;;  %v1617_v55 = vrot.slane %v1616_v34, 4 }
 0x2da   : > { %7924 = vpow2.f32 %v1318_v45  ;;  %v8723_v51 = vpop.permute.xlu1 %855 }
 0x2db   : > { %7926 = vpow2.f32 %v1320_v37  ;;  %v1618_v59 = vmax.f32 %v1616_v34, %v1617_v55  ;;  %10516 = vst [vmem:[#allocation45_spill] sm:$0xff] %v8723_v51 }
 0x2dc   : > { %7928 = vpow2.f32 %v1322_v41 }
 0x2dd   : > { %v1619_v24 = vrot.slane %v1618_v59, 2  ;;  %7930 = vpow2.f32 %v1324_v57 }
 0x2de   : > { %7932 = vpow2.f32 %v1326_v20 }
 0x2df   : > { %v1620_v0 = vmax.f32 %v1618_v59, %v1619_v24  ;;  %7934 = vpow2.f32 %v1328_v4 }
 0x2e1   : > { %v1621_v53 = vrot.slane %v1620_v0, 1  ;;  %v8719_v50 = vpop.permute.xlu0 %850 }
 0x2e2   : > { %10515 = vst [vmem:[#allocation44_spill] sm:$0xff] %v8719_v50  ;;  %v1075_v12 = vadd.f32 %v8569_v38, %v8719_v50  ;;  %v1080_v38 = vadd.f32 %v8565_v36, %v8723_v51 }
 0x2e3   : > { %v1622_v21 = vmax.f32 %v1620_v0, %v1621_v53 }
 0x2e4   : > { %2566 = vxpose.xlu1.b32.start [1/2] (short) (narrow) %v1075_v12, 64 }
 0x2e5   : > { %v8725_v1 = vpop.eup %7920  ;;  %v1623_v23 = vsub.f32 %v8662_v14, %v1622_v21  ;;  %v1624_v10 = vsub.f32 %v8658_v16, %v1622_v21  ;;  %v1625_v17 = vsub.f32 %v8668_v9, %v1622_v21  ;;  %v1626_v48 = vsub.f32 %v8666_v11, %v1622_v21 }
 0x2e6   : > { %v8731_v3 = vpop.eup %7922  ;;  %v1330_v45 = vsel %vm688_vm1, %v8725_v1, 0.0  ;;  %v1627_v61 = vsub.f32 %v8676_v18, %v1622_v21  ;;  %v1628_v46 = vsub.f32 %v8672_v19, %v1622_v21  ;;  %v1629_v59 = vsub.f32 %v8690_v26, %v1622_v21 }
 0x2e7   : > { %v8738_v37 = vpop.eup %7924  ;;  %v1331_v14 = vsel %vm688_vm1, %v8731_v3, 0.0  ;;  %v1631_v16 = vmul.f32 1.442695, %v1623_v23  ;;  %v1633_v34 = vmul.f32 1.442695, %v1624_v10  ;;  %v1630_v4 = vsub.f32 %v8680_v15, %v1622_v21 }
 0x2e8   : > { %v8742_v9 = vpop.eup %7926  ;;  %v1332_v11 = vadd.f32 %v1331_v14, %v1330_v45  ;;  %v1635_v41 = vmul.f32 1.442695, %v1625_v17  ;;  %v1637_v55 = vmul.f32 1.442695, %v1626_v48  ;;  %2567 = vxpose.xlu1.b32.end [2/2] (short) (narrow) %v1080_v38, 64  ;;  %v1333_v36 = vsel %vm688_vm1, %v8738_v37, 0.0 }
 0x2e9   : > { %7936 = vpow2.f32 %v1631_v16  ;;  %v8747_v18 = vpop.eup %7928  ;;  %v1639_v6 = vmul.f32 1.442695, %v1627_v61  ;;  %v1335_v20 = vsel %vm688_vm1, %v8742_v9, 0.0  ;;  %v1641_v0 = vmul.f32 1.442695, %v1628_v46 }
 0x2ea   : > { %v1334_v57 = vadd.f32 %v1333_v36, %v1332_v11  ;;  %7938 = vpow2.f32 %v1633_v34  ;;  %v8752_v24 = vpop.eup %7930  ;;  %v1337_v53 = vsel %vm688_vm1, %v8747_v18, 0.0  ;;  %v1643_v26 = vmul.f32 1.442695, %v1629_v59 }
 0x2eb   : > { %7940 = vpow2.f32 %v1635_v41  ;;  %v7933_v12 = vpop.eup %7932  ;;  %v1339_v10 = vsel %vm688_vm1, %v8752_v24, 0.0  ;;  %v1645_v38 = vmul.f32 1.442695, %v1630_v4 }
 0x2ec   : > { %v1336_v19 = vadd.f32 %v1335_v20, %v1334_v57  ;;  %7942 = vpow2.f32 %v1637_v55  ;;  %v7935_v17 = vpop.eup %7934  ;;  %v1341_v45 = vsel %vm688_vm1, %v7933_v12, 0.0 }
 0x2ed   : > { %7944 = vpow2.f32 %v1639_v6  ;;  %v1343_v15 = vsel %vm688_vm1, %v7935_v17, 0.0 }
 0x2ee   : > { %v1338_v23 = vadd.f32 %v1337_v53, %v1336_v19  ;;  %7946 = vpow2.f32 %v1641_v0 }
 0x2ef   : > { %7948 = vpow2.f32 %v1643_v26 }
 0x2f0   : > { %v1340_v48 = vadd.f32 %v1339_v10, %v1338_v23  ;;  %7950 = vpow2.f32 %v1645_v38 }
 0x2f2   : > { %v1342_v61 = vadd.f32 %v1341_v45, %v1340_v48 }
 0x2f4   : > { %v1344_v21 = vadd.f32 %v1343_v15, %v1342_v61 }
 0x2f6   : > { %v8761_v14 = vpop.eup %7936  ;;  %v1345_v16 = vrot.slane %v1344_v21, 4 }
 0x2f7   : > { %v8763_v34 = vpop.eup %7938  ;;  %v1647_v11 = vsel %vm688_vm1, %v8761_v14, 0.0 }
 0x2f8   : > { %v8767_v46 = vpop.eup %7940  ;;  %v1648_v41 = vsel %vm688_vm1, %v8763_v34, 0.0  ;;  %v1346_v55 = vadd.f32 %v1345_v16, %v1344_v21 }
 0x2f9   : > { %v8771_v36 = vpop.eup %7942  ;;  %v1649_v57 = vadd.f32 %v1648_v41, %v1647_v11  ;;  %v1650_v59 = vsel %vm688_vm1, %v8767_v46, 0.0 }
 0x2fa   : > { %v1347_v6 = vrot.slane %v1346_v55, 2  ;;  %v8775_v20 = vpop.eup %7944  ;;  %v1652_v0 = vsel %vm688_vm1, %v8771_v36, 0.0 }
 0x2fb   : > { %v1651_v19 = vadd.f32 %v1650_v59, %v1649_v57  ;;  %v7947_v53 = vpop.eup %7946  ;;  %v1654_v26 = vsel %vm688_vm1, %v8775_v20, 0.0 }
 0x2fc   : > { %v1348_v4 = vadd.f32 %v1347_v6, %v1346_v55  ;;  %v7949_v48 = vpop.eup %7948  ;;  %v1656_v45 = vsel %vm688_vm1, %v7947_v53, 0.0 }
 0x2fd   : > { %v1653_v23 = vadd.f32 %v1652_v0, %v1651_v19  ;;  %v7951_v15 = vpop.eup %7950  ;;  %v1658_v16 = vsel %vm688_vm1, %v7949_v48, 0.0 }
 0x2fe   : > { %v1349_v10 = vrot.slane %v1348_v4, 1  ;;  %v1660_v41 = vsel %vm688_vm1, %v7951_v15, 0.0 }
 0x2ff   : > { %v1655_v38 = vadd.f32 %v1654_v26, %v1653_v23 }
 0x300   : > { %v1350_v61 = vadd.f32 %v1349_v10, %v1348_v4 }
 0x301   : > { %v1657_v21 = vadd.f32 %v1656_v45, %v1655_v38 }
 0x302   : > { %7952 = vrcp.f32 %v1350_v61 }
 0x303   : > { %v1659_v11 = vadd.f32 %v1658_v16, %v1657_v21  ;;  %v1100_v21 = vadd.f32 %v8575_v42, %v8604_v30  ;;  %v8818_v16 = vpop.f32.mrf.mxu1 }
 0x305   : > { %v1661_v55 = vadd.f32 %v1660_v41, %v1659_v11 }
 0x307   : > { %v1662_v57 = vrot.slane %v1661_v55, 4 }
 0x309   : > { %v1663_v59 = vadd.f32 %v1662_v57, %v1661_v55 }
 0x30b   : > { %v1664_v6 = vrot.slane %v1663_v59, 2 }
 0x30d   : > { %v1665_v19 = vadd.f32 %v1664_v6, %v1663_v59 }
 0x30f   : > { %v7953_v0 = vpop.eup %7952  ;;  %v1666_v51 = vrot.slane %v1665_v19, 1 }
 0x310   : > { %v1359_v50 = vmul.f32 %v7953_v0, %v7935_v17  ;;  %v1358_v23 = vmul.f32 %v7953_v0, %v7933_v12  ;;  %v1357_v26 = vmul.f32 %v7953_v0, %v8752_v24  ;;  %v1356_v10 = vmul.f32 %v7953_v0, %v8747_v18  ;;  %v565_v12 = vld [vmem:[%s8398_s29 + $0x78] sm:$0xff]  ;;  %v8796_v24 = vpop.permute.xlu0 %648 }
 0x311   : > { %v1667_v4 = vadd.f32 %v1666_v51, %v1665_v19  ;;  %v1355_v38 = vmul.f32 %v7953_v0, %v8742_v9  ;;  %v1354_v17 = vmul.f32 %v7953_v0, %v8738_v37  ;;  %v1352_v51 = vmul.f32 %v7953_v0, %v8725_v1  ;;  %10517 = vst [vmem:[#allocation46_spill] sm:$0xff] %v8796_v24 }
 0x312   : > { %7240 = vmatprep.subr.mxu1 %v1359_v50  ;;  %v1090_v18 = vadd.f32 %v8572_v39, %v8608_v33 }
 0x313   : > { %7241 = vmatpush3.msra.mxu1 %v1359_v50  ;;  %7954 = vrcp.f32 %v1667_v4  ;;  %v1353_v50 = vmul.f32 %v7953_v0, %v8731_v3 }
 0x314   : > { %7242 = vmatprep.subr.mxu1 %v1358_v23  ;;  %v8799_v45 = vpop.permute.xlu0 %880 }
 0x315   : > { %7243 = vmatpush3.msra.mxu1 %v1358_v23 }
 0x316   : > { %7244 = vmatprep.subr.mxu1 %v1357_v26 }
 0x317   : > { %7245 = vmatpush3.msra.mxu1 %v1357_v26  ;;  %v8850_v26 = vpop.permute.xlu1 %653 }
 0x318   : > { %7246 = vmatprep.subr.mxu1 %v1356_v10  ;;  %10519 = vst [vmem:[#allocation48_spill] sm:$0xff] %v8850_v26 }
 0x319   : > { %7247 = vmatpush3.msra.mxu1 %v1356_v10 }
 0x31a   : > { %7248 = vmatprep.subr.mxu1 %v1355_v38 }
 0x31b   : > { %7249 = vmatpush3.msra.mxu1 %v1355_v38  ;;  %v805_v38 = vadd.f32 %v8598_v27, %v8616_v40  ;;  %v10601_v40 = vld [vmem:[#allocation28_spill] sm:$0xff] }
 0x31c   : > { %7250 = vmatprep.subr.mxu1 %v1354_v17 }
 0x31d   : > { %7251 = vmatpush3.msra.mxu1 %v1354_v17  ;;  %v800_v17 = vadd.f32 %v8600_v28, %v8612_v35 }
 0x31e   : > { %7252 = vmatprep.subr.mxu1 %v1353_v50  ;;  %895 = vperm.xlu1 %7901, %v565_v12  }
 0x31f   : > { %7253 = vmatpush3.msra.mxu1 %v1353_v50  ;;  %v815_v50 = vadd.f32 %v8602_v29, %v8850_v26  ;;  %v810_v29 = vadd.f32 %v8606_v32, %v8796_v24 }
 0x320   : > { %7254 = vmatprep.subr.mxu1 %v1352_v51  ;;  %v7955_v9 = vpop.eup %7954 }
 0x321   : > { %7255 = vmatpush3.msra.mxu1 %v1352_v51  ;;  %v1676_v37 = vmul.f32 %v7955_v9, %v7951_v15  ;;  %v1675_v3 = vmul.f32 %v7955_v9, %v7949_v48  ;;  %v1674_v1 = vmul.f32 %v7955_v9, %v7947_v53  ;;  %v1673_v39 = vmul.f32 %v7955_v9, %v8775_v20  ;;  %v8804_v53 = vpop.permute.xlu0 %885 }
 0x322   : > { %7257 = vmatmul.mubr.msk.f32.vlgmr.msra.gmra.mxu1 %vm688_vm1, %v1090_v18  ;;  %v1672_v61 = vmul.f32 %v7955_v9, %v8771_v36  ;;  %v1671_v15 = vmul.f32 %v7955_v9, %v8767_v46  ;;  %v1670_v48 = vmul.f32 %v7955_v9, %v8763_v34  ;;  %10518 = vst [vmem:[#allocation47_spill] sm:$0xff] %v8804_v53  ;;  %v518_v18 = vld [vmem:[%s8545_s14 + $0x20] sm:$0xff] }
 0x323   : > { %7298 = vmatprep.mubr.msk.f32.mxu1 %vm1155_vm2, %v8622_v44  ;;  %7275 = vmatprep.subr.mxu0 %v1676_v37  ;;  %v1669_v20 = vmul.f32 %v7955_v9, %v8761_v14  ;;  %v1104_v14 = vpop.f32.mrf.mxu1 }
 0x324   : > { %7276 = vmatpush3.msra.mxu0 %v1676_v37  ;;  %v1105_v0 = vadd.f32 %v1104_v14, %v8799_v45 }
 0x325   : > { %7277 = vmatprep.subr.mxu0 %v1675_v3  ;;  %v8809_v36 = vpop.trf.xlu0  ;;  %v8822_v41 = vpop.f32.mrf.mxu1 }
 0x326   : > { %7278 = vmatpush3.msra.mxu0 %v1675_v3 }
 0x327   : > { %7279 = vmatprep.subr.mxu0 %v1674_v1  ;;  %v8824_v42 = vpop.f32.mrf.mxu1 }
 0x328   : > { %7280 = vmatpush3.msra.mxu0 %v1674_v1  ;;  %v519_v1 = vld [vmem:[%s8545_s14 + $0x28] sm:$0xff] }
 0x329   : > { %7281 = vmatprep.subr.mxu0 %v1673_v39  ;;  %v8814_v34 = vpop.trf.xlu0 }
 0x32a   : > { %7282 = vmatpush3.msra.mxu0 %v1673_v39 }
 0x32b   : > { %7283 = vmatprep.subr.mxu0 %v1672_v61 }
 0x32c   : > { %7284 = vmatpush3.msra.mxu0 %v1672_v61 }
 0x32d   : > { %7285 = vmatprep.subr.mxu0 %v1671_v15  ;;  %v8816_v46 = vpop.trf.xlu0 }
 0x32e   : > { %7286 = vmatpush3.msra.mxu0 %v1671_v15 }
 0x32f   : > { %7287 = vmatprep.subr.mxu0 %v1670_v48 }
 0x330   : > { %7288 = vmatpush3.msra.mxu0 %v1670_v48 }
 0x331   : > { %7289 = vmatprep.subr.mxu0 %v1669_v20  ;;  %v8820_v11 = vpop.trf.xlu0 }
 0x332   : > { %7290 = vmatpush3.msra.mxu0 %v1669_v20 }
 0x333   : > { %7292 = vmatmul.mubr.msk.f32.vlgmr.msra.gmra.mxu0 %vm688_vm1, %v1100_v21 }
 0x334   : > { %7314 = vmatprep.mubr.msk.f32.mxu0 %vm1155_vm2, %v8809_v36 }
 0x335   : > { %v8826_v55 = vpop.trf.xlu0 }
 0x339   : > { %v8828_v6 = vpop.trf.xlu0 }
 0x33d   : > { %v8836_v19 = vpop.trf.xlu0 }
 0x341   : > { %v8845_v23 = vpop.trf.xlu0 }
 0x347   : > { %2397 = vxpose.xlu1.b32.start [1/2] (short) (narrow) %v518_v18, 64 }
 0x34b   : > { %2398 = vxpose.xlu1.b32.end [2/2] (short) (narrow) %v519_v1, 64 }
 0x360   : > { %v2582_v12 = vpop.trf.xlu1 }
 0x364   : > { %v2583_v27 = vpop.trf.xlu1 }
 0x368   : > { %v2584_v28 = vpop.trf.xlu1 }
 0x36c   : > { %v2585_v51 = vpop.trf.xlu1 }
 0x370   : > { %v2586_v32 = vpop.trf.xlu1 }
 0x3e2   : > { %v7258_v57 = vpop.f32.mrf.mxu1 }
 0x3e3   : > { %7310 = vmatprep.subr.mxu0 %v7258_v57 }
 0x3e4   : > { %v1432_v59 = vpop.f32.mrf.mxu1  ;;  %7311 = vmatpush3.msra.mxu0 %v7258_v57 }
 0x3e5   : > { %7312 = vmatprep.subr.mxu0 %v1432_v59 }
 0x3e6   : > { %7313 = vmatpush3.msra.mxu0 %v1432_v59 }
 0x3e7   : > { %7315 = vmatmul.mubr.msk.f32.vlgmr.msra.gmra.mxu0 %vm1155_vm2, %v8814_v34 }
 0x3e8   : > { %7317 = vmatprep.mubr.msk.f32.mxu0 %vm1155_vm2, %v8816_v46 }
 0x3eb   : > { %7318 = vmatmul.mubr.msk.f32.gmra.mxu0 %vm1155_vm2, %v8820_v11 }
 0x3ec   : > { %7320 = vmatprep.mubr.msk.f32.mxu0 %vm1155_vm2, %v8826_v55 }
 0x3ef   : > { %7321 = vmatmul.mubr.msk.f32.gmra.mxu0 %vm1155_vm2, %v8828_v6 }
 0x3f0   : > { %7323 = vmatprep.mubr.msk.f32.mxu0 %vm1155_vm2, %v8836_v19 }
 0x3f3   : > { %7324 = vmatmul.mubr.msk.f32.gmra.mxu0 %vm1155_vm2, %v8845_v23  ;;  %v7293_v4 = vpop.f32.mrf.mxu0 }
 0x3f4   : > { %7358 = vmatprep.mubr.msk.f32.mxu0 %vm688_vm1, %v1105_v0  ;;  %7294 = vmatprep.subr.mxu1 %v7293_v4 }
 0x3f5   : > { %v1749_v10 = vpop.f32.mrf.mxu0  ;;  %7295 = vmatpush3.msra.mxu1 %v7293_v4 }
 0x3f6   : > { %7296 = vmatprep.subr.mxu1 %v1749_v10 }
 0x3f7   : > { %7297 = vmatpush3.msra.mxu1 %v1749_v10 }
 0x3f8   : > { %7299 = vmatmul.mubr.msk.f32.vlgmr.msra.gmra.mxu1 %vm1155_vm2, %v8630_v54  ;;  %7326 = vmatprep.subr.mxu1 %v805_v38 }
 0x3f9   : > { %7301 = vmatprep.mubr.msk.f32.mxu1 %vm1155_vm2, %v8640_v25  ;;  %7327 = vmatpush3.msra.mxu1 %v805_v38 }
 0x3fa   : > { %7328 = vmatprep.subr.mxu1 %v800_v17 }
 0x3fb   : > { %7329 = vmatpush3.msra.mxu1 %v800_v17 }
 0x3fc   : > { %7302 = vmatmul.mubr.msk.f32.gmra.mxu1 %vm1155_vm2, %v8664_v13  ;;  %7377 = vmatprep.subr.mxu1 %v815_v50 }
 0x3fd   : > { %7304 = vmatprep.mubr.msk.f32.mxu1 %vm1155_vm2, %v8674_v47 }
 0x400   : > { %7305 = vmatmul.mubr.msk.f32.gmra.mxu1 %vm1155_vm2, %v8692_v49 }
 0x401   : > { %7307 = vmatprep.mubr.msk.f32.mxu1 %vm1155_vm2, %v8710_v63 }
 0x404   : > { %7308 = vmatmul.mubr.msk.f32.gmra.mxu1 %vm1155_vm2, %v8717_v8 }
 0x405   : > { %7330 = vmatprep.mubr.msk.f32.mxu1 %vm1155_vm2, %v8620_v43  ;;  %v2587_v43 = vpop.trf.xlu1 }
 0x408   : > { %7331 = vmatmul.mubr.msk.f32.vlgmr.msra.gmra.mxu1 %vm1155_vm2, %v8628_v52 }
 0x409   : > { %7378 = vmatpush3.msra.mxu1 %v815_v50  ;;  %7333 = vmatprep.mubr.msk.f32.mxu1 %vm1155_vm2, %v8636_v22 }
 0x40a   : > { %7379 = vmatprep.subr.mxu1 %v810_v29 }
 0x40b   : > { %7380 = vmatpush3.msra.mxu1 %v810_v29 }
 0x40c   : > { %7334 = vmatmul.mubr.msk.f32.gmra.mxu1 %vm1155_vm2, %v8660_v56 }
 0x40d   : > { %7336 = vmatprep.mubr.msk.f32.mxu1 %vm1155_vm2, %v8670_v7  ;;  %v2588_v7 = vpop.trf.xlu1 }
 0x410   : > { %7337 = vmatmul.mubr.msk.f32.gmra.mxu1 %vm1155_vm2, %v8682_v31 }
 0x411   : > { %7339 = vmatprep.mubr.msk.f32.mxu1 %vm1155_vm2, %v8708_v2  ;;  %v2589_v2 = vpop.trf.xlu1 }
 0x414   : > { %7340 = vmatmul.mubr.msk.f32.gmra.mxu1 %vm1155_vm2, %v8714_v5 }
 0x415   : > { %7381 = vmatprep.mubr.msk.f32.mxu1 %vm1155_vm2, %v2582_v12 }
 0x418   : > { %7382 = vmatmul.mubr.msk.f32.vlgmr.msra.gmra.mxu1 %vm1155_vm2, %v2583_v27 }
 0x419   : > { %7384 = vmatprep.mubr.msk.f32.mxu1 %vm1155_vm2, %v2584_v28 }
 0x41c   : > { %7385 = vmatmul.mubr.msk.f32.gmra.mxu1 %vm1155_vm2, %v2585_v51 }
 0x41d   : > { %7387 = vmatprep.mubr.msk.f32.mxu1 %vm1155_vm2, %v2586_v32 }
 0x420   : > { %7388 = vmatmul.mubr.msk.f32.gmra.mxu1 %vm1155_vm2, %v2587_v43 }
 0x421   : > { %7390 = vmatprep.mubr.msk.f32.mxu1 %vm1155_vm2, %v2588_v7 }
 0x424   : > { %7391 = vmatmul.mubr.msk.f32.gmra.mxu1 %vm1155_vm2, %v2589_v2 }
 0x4a7   : > { %v7316_v52 = vpop.f32.mrf.mxu0 }
 0x4a9   : > { %v2041_v22 = vpop.f32.mrf.mxu0 }
 0x4ab   : > { %v7319_v56 = vpop.f32.mrf.mxu0 }
 0x4ad   : > { %v2051_v31 = vpop.f32.mrf.mxu0 }
 0x4af   : > { %v7322_v3 = vpop.f32.mrf.mxu0 }
 0x4b1   : > { %v2061_v20 = vpop.f32.mrf.mxu0 }
 0x4b3   : > { %v7325_v0 = vpop.f32.mrf.mxu0 }
 0x4b8   : > { %v7300_v5 = vpop.f32.mrf.mxu1 }
 0x4b9   : > { %v8899_v9 = vadd.f32 %v7316_v52, %v7300_v5 }
 0x4ba   : > { %v1880_v37 = vpop.f32.mrf.mxu1 }
 0x4bb   : > { %v8902_v39 = vadd.f32 %v2041_v22, %v1880_v37 }
 0x4bc   : > { %v7303_v61 = vpop.f32.mrf.mxu1 }
 0x4bd   : > { %v8904_v15 = vadd.f32 %v7319_v56, %v7303_v61 }
 0x4be   : > { %v1890_v48 = vpop.f32.mrf.mxu1 }
 0x4bf   : > { %v8906_v21 = vadd.f32 %v2051_v31, %v1890_v48 }
 0x4c0   : > { %v7306_v14 = vpop.f32.mrf.mxu1 }
 0x4c1   : > { %v8908_v57 = vadd.f32 %v7322_v3, %v7306_v14 }
 0x4c2   : > { %v1900_v59 = vpop.f32.mrf.mxu1 }
 0x4c3   : > { %v8910_v4 = vadd.f32 %v2061_v20, %v1900_v59 }
 0x4c4   : > { %v7309_v10 = vpop.f32.mrf.mxu1 }
 0x4c5   : > { %v8912_v38 = vadd.f32 %v7325_v0, %v7309_v10 }
 0x4c6   : > { %v8914_v17 = vpop.f32.mrf.mxu1 }
 0x4c8   : > { %v7332_v12 = vpop.f32.mrf.mxu1 }
 0x4c9   : > { %v2242_v31 = vsel %vm688_vm1, %v7332_v12, -inf }
 0x4ca   : > { %v2202_v50 = vpop.f32.mrf.mxu1 }
 0x4cb   : > { %v2241_v7 = vsel %vm688_vm1, %v2202_v50, -inf }
 0x4cc   : > { %v7335_v27 = vpop.f32.mrf.mxu1 }
 0x4cd   : > { %v2244_v5 = vsel %vm688_vm1, %v7335_v27, -inf }
 0x4ce   : > { %v2212_v28 = vpop.f32.mrf.mxu1 }
 0x4cf   : > { %v2243_v18 = vsel %vm688_vm1, %v2212_v28, -inf }
 0x4d0   : > { %v7338_v29 = vpop.f32.mrf.mxu1 }
 0x4d1   : > { %v2247_v2 = vsel %vm688_vm1, %v7338_v29, -inf }
 0x4d2   : > { %v2222_v51 = vpop.f32.mrf.mxu1  ;;  %v2248_v3 = vmax.f32 %v2242_v31, %v2247_v2 }
 0x4d3   : > { %v2245_v32 = vsel %vm688_vm1, %v2222_v51, -inf }
 0x4d4   : > { %v7341_v43 = vpop.f32.mrf.mxu1  ;;  %v2246_v22 = vmax.f32 %v2241_v7, %v2245_v32 }
 0x4d5   : > { %v2251_v52 = vsel %vm688_vm1, %v7341_v43, -inf }
 0x4d6   : > { %v2232_v56 = vpop.f32.mrf.mxu1  ;;  %v2252_v1 = vmax.f32 %v2244_v5, %v2251_v52  ;;  %v2253_v48 = vmax.f32 %v2246_v22, %v2248_v3 }
 0x4d7   : > { %v2249_v37 = vsel %vm688_vm1, %v2232_v56, -inf }
 0x4d8   : > { %v2250_v61 = vmax.f32 %v2243_v18, %v2249_v37 }
 0x4da   : > { %v2254_v20 = vmax.f32 %v2250_v61, %v2252_v1 }
 0x4dc   : > { %v2255_v14 = vmax.f32 %v2253_v48, %v2254_v20 }
 0x4de   : > { %v2256_v59 = vrot.slane %v2255_v14, 4 }
 0x4e0   : > { %v2257_v0 = vmax.f32 %v2255_v14, %v2256_v59 }
 0x4e2   : > { %v2258_v10 = vrot.slane %v2257_v0, 2 }
 0x4e4   : > { %v2259_v24 = vmax.f32 %v2257_v0, %v2258_v10 }
 0x4e6   : > { %v2260_v32 = vrot.slane %v2259_v24, 1 }
 0x4e8   : > { %v2261_v7 = vmax.f32 %v2259_v24, %v2260_v32 }
 0x4ea   : > { %v2262_v8 = vsub.f32 %v2202_v50, %v2261_v7  ;;  %v2263_v63 = vsub.f32 %v7332_v12, %v2261_v7  ;;  %v2264_v49 = vsub.f32 %v2212_v28, %v2261_v7  ;;  %v2265_v47 = vsub.f32 %v7335_v27, %v2261_v7 }
 0x4eb   : > { %v2266_v13 = vsub.f32 %v2222_v51, %v2261_v7  ;;  %v2267_v2 = vsub.f32 %v7338_v29, %v2261_v7  ;;  %v2268_v22 = vsub.f32 %v2232_v56, %v2261_v7  ;;  %v2269_v18 = vsub.f32 %v7341_v43, %v2261_v7 }
 0x4ec   : > { %v2270_v26 = vmul.f32 1.442695, %v2262_v8  ;;  %v2272_v25 = vmul.f32 1.442695, %v2263_v63  ;;  %v2274_v54 = vmul.f32 1.442695, %v2264_v49 }
 0x4ed   : > { %v2276_v52 = vmul.f32 1.442695, %v2265_v47  ;;  %v2278_v31 = vmul.f32 1.442695, %v2266_v13  ;;  %v2280_v5 = vmul.f32 1.442695, %v2267_v2 }
 0x4ee   : > { %7956 = vpow2.f32 %v2270_v26  ;;  %v2282_v24 = vmul.f32 1.442695, %v2268_v22  ;;  %v2284_v12 = vmul.f32 1.442695, %v2269_v18 }
 0x4ef   : > { %7958 = vpow2.f32 %v2272_v25 }
 0x4f0   : > { %7960 = vpow2.f32 %v2274_v54 }
 0x4f1   : > { %7962 = vpow2.f32 %v2276_v52 }
 0x4f2   : > { %7964 = vpow2.f32 %v2278_v31 }
 0x4f3   : > { %7966 = vpow2.f32 %v2280_v5 }
 0x4f4   : > { %7968 = vpow2.f32 %v2282_v24 }
 0x4f5   : > { %7970 = vpow2.f32 %v2284_v12 }
 0x4fb   : > { %v7957_v50 = vpop.eup %7956 }
 0x4fc   : > { %v7959_v8 = vpop.eup %7958  ;;  %v2286_v49 = vsel %vm688_vm1, %v7957_v50, 0.0 }
 0x4fd   : > { %v7961_v63 = vpop.eup %7960  ;;  %v2287_v47 = vsel %vm688_vm1, %v7959_v8, 0.0 }
 0x4fe   : > { %v7963_v26 = vpop.eup %7962  ;;  %v2288_v25 = vadd.f32 %v2287_v47, %v2286_v49  ;;  %v2289_v13 = vsel %vm688_vm1, %v7961_v63, 0.0  ;;  %v8932_v47 = vpop.permute.xlu1 %895 }
 0x4ff   : > { %v7965_v54 = vpop.eup %7964  ;;  %v2291_v28 = vsel %vm688_vm1, %v7963_v26, 0.0  ;;  %10520 = vst [vmem:[#allocation49_spill] sm:$0xff] %v8932_v47 }
 0x500   : > { %v2290_v27 = vadd.f32 %v2289_v13, %v2288_v25  ;;  %v7967_v29 = vpop.eup %7966  ;;  %v2293_v43 = vsel %vm688_vm1, %v7965_v54, 0.0 }
 0x501   : > { %v7969_v56 = vpop.eup %7968  ;;  %v2295_v3 = vsel %vm688_vm1, %v7967_v29, 0.0 }
 0x502   : > { %v2292_v51 = vadd.f32 %v2291_v28, %v2290_v27  ;;  %v7971_v1 = vpop.eup %7970  ;;  %v2297_v48 = vsel %vm688_vm1, %v7969_v56, 0.0  ;;  %v1110_v27 = vadd.f32 %v8818_v16, %v8804_v53 }
 0x503   : > { %v2299_v14 = vsel %vm688_vm1, %v7971_v1, 0.0 }
 0x504   : > { %v2294_v37 = vadd.f32 %v2293_v43, %v2292_v51 }
 0x506   : > { %v2296_v61 = vadd.f32 %v2295_v3, %v2294_v37 }
 0x508   : > { %v2298_v20 = vadd.f32 %v2297_v48, %v2296_v61 }
 0x50a   : > { %v2300_v59 = vadd.f32 %v2299_v14, %v2298_v20 }
 0x50c   : > { %v2301_v0 = vrot.slane %v2300_v59, 4 }
 0x50e   : > { %v2302_v10 = vadd.f32 %v2301_v0, %v2300_v59 }
 0x510   : > { %v2303_v32 = vrot.slane %v2302_v10, 2 }
 0x512   : > { %v2304_v7 = vadd.f32 %v2303_v32, %v2302_v10 }
 0x514   : > { %v2305_v2 = vrot.slane %v2304_v7, 1 }
 0x516   : > { %v2306_v52 = vadd.f32 %v2305_v2, %v2304_v7 }
 0x518   : > { %7972 = vrcp.f32 %v2306_v52 }
 0x525   : > { %v7973_v22 = vpop.eup %7972 }
 0x526   : > { %v2315_v31 = vmul.f32 %v7973_v22, %v7971_v1  ;;  %v2314_v5 = vmul.f32 %v7973_v22, %v7969_v56  ;;  %v2313_v18 = vmul.f32 %v7973_v22, %v7967_v29  ;;  %v2312_v24 = vmul.f32 %v7973_v22, %v7965_v54  ;;  %v8936_v54 = vpop.trf.xlu1 }
 0x527   : > { %v2311_v12 = vmul.f32 %v7973_v22, %v7963_v26  ;;  %v2310_v49 = vmul.f32 %v7973_v22, %v7961_v63  ;;  %v2309_v25 = vmul.f32 %v7973_v22, %v7959_v8  ;;  %v2308_v13 = vmul.f32 %v7973_v22, %v7957_v50  ;;  %10521 = vst [vmem:[#allocation50_spill] sm:$0xff] %v8936_v54  ;;  %v7383_v63 = vpop.f32.mrf.mxu1 }
 0x528   : > { %7342 = vmatprep.subr.mxu0 %v2315_v31  ;;  %v2728_v56 = vsel %vm688_vm1, %v7383_v63, -inf }
 0x529   : > { %7343 = vmatpush3.msra.mxu0 %v2315_v31  ;;  %v2688_v26 = vpop.f32.mrf.mxu1 }
 0x52a   : > { %7344 = vmatprep.subr.mxu0 %v2314_v5  ;;  %v2727_v16 = vsel %vm688_vm1, %v2688_v26, -inf }
 0x52b   : > { %7345 = vmatpush3.msra.mxu0 %v2314_v5  ;;  %v7386_v28 = vpop.f32.mrf.mxu1  ;;  %v520_v5 = vld [vmem:[%s8545_s14 + $0x30] sm:$0xff] }
 0x52c   : > { %7346 = vmatprep.subr.mxu0 %v2313_v18  ;;  %v2730_v37 = vsel %vm688_vm1, %v7386_v28, -inf  ;;  %2883 = vxpose.xlu0.b32.start [1/2] (short) (narrow) %v520_v5, 64 }
 0x52d   : > { %7347 = vmatpush3.msra.mxu0 %v2313_v18  ;;  %v2698_v8 = vpop.f32.mrf.mxu1  ;;  %v521_v18 = vld [vmem:[%s8545_s14 + $0x38] sm:$0xff] }
 0x52e   : > { %7348 = vmatprep.subr.mxu0 %v2312_v24  ;;  %v2729_v3 = vsel %vm688_vm1, %v2698_v8, -inf }
 0x52f   : > { %7349 = vmatpush3.msra.mxu0 %v2312_v24  ;;  %v7389_v29 = vpop.f32.mrf.mxu1 }
 0x530   : > { %7350 = vmatprep.subr.mxu0 %v2311_v12  ;;  %v2733_v1 = vsel %vm688_vm1, %v7389_v29, -inf  ;;  %2884 = vxpose.xlu0.b32.end [2/2] (short) (narrow) %v521_v18, 64 }
 0x531   : > { %7351 = vmatpush3.msra.mxu0 %v2311_v12  ;;  %v2708_v51 = vpop.f32.mrf.mxu1  ;;  %v2734_v14 = vmax.f32 %v2728_v56, %v2733_v1 }
 0x532   : > { %7352 = vmatprep.subr.mxu0 %v2310_v49  ;;  %v2731_v61 = vsel %vm688_vm1, %v2708_v51, -inf }
 0x533   : > { %7353 = vmatpush3.msra.mxu0 %v2310_v49  ;;  %v7392_v50 = vpop.f32.mrf.mxu1  ;;  %v2732_v59 = vmax.f32 %v2727_v16, %v2731_v61 }
 0x534   : > { %7354 = vmatprep.subr.mxu0 %v2309_v25  ;;  %v2737_v48 = vsel %vm688_vm1, %v7392_v50, -inf }
 0x535   : > { %7355 = vmatpush3.msra.mxu0 %v2309_v25  ;;  %v2718_v43 = vpop.f32.mrf.mxu1  ;;  %v2738_v0 = vmax.f32 %v2730_v37, %v2737_v48  ;;  %v2739_v32 = vmax.f32 %v2732_v59, %v2734_v14 }
 0x536   : > { %7356 = vmatprep.subr.mxu0 %v2308_v13  ;;  %v2735_v20 = vsel %vm688_vm1, %v2718_v43, -inf }
 0x537   : > { %7357 = vmatpush3.msra.mxu0 %v2308_v13  ;;  %v2736_v10 = vmax.f32 %v2729_v3, %v2735_v20 }
 0x538   : > { %7359 = vmatmul.mubr.msk.f32.vlgmr.msra.gmra.mxu0 %vm688_vm1, %v1110_v27 }
 0x539   : > { %7365 = vmatprep.mubr.msk.f32.mxu0 %vm1155_vm2, %v8936_v54  ;;  %v2740_v7 = vmax.f32 %v2736_v10, %v2738_v0 }
 0x53b   : > { %v2741_v2 = vmax.f32 %v2739_v32, %v2740_v7 }
 0x53d   : > { %v2742_v52 = vrot.slane %v2741_v2, 4 }
 0x53f   : > { %v2743_v22 = vmax.f32 %v2741_v2, %v2742_v52 }
 0x541   : > { %v2744_v31 = vrot.slane %v2743_v22, 2 }
 0x543   : > { %v2745_v24 = vmax.f32 %v2743_v22, %v2744_v31 }
 0x545   : > { %v2746_v12 = vrot.slane %v2745_v24, 1 }
 0x547   : > { %v2747_v49 = vmax.f32 %v2745_v24, %v2746_v12 }
 0x549   : > { %v2748_v25 = vsub.f32 %v2688_v26, %v2747_v49  ;;  %v2749_v13 = vsub.f32 %v7383_v63, %v2747_v49  ;;  %v2750_v56 = vsub.f32 %v2698_v8, %v2747_v49  ;;  %v2751_v37 = vsub.f32 %v7386_v28, %v2747_v49 }
 0x54a   : > { %v2752_v1 = vsub.f32 %v2708_v51, %v2747_v49  ;;  %v2753_v48 = vsub.f32 %v7389_v29, %v2747_v49  ;;  %v2754_v59 = vsub.f32 %v2718_v43, %v2747_v49  ;;  %v2755_v63 = vsub.f32 %v7392_v50, %v2747_v49 }
 0x54b   : > { %v2756_v27 = vmul.f32 1.442695, %v2748_v25  ;;  %v2758_v16 = vmul.f32 1.442695, %v2749_v13  ;;  %v2760_v3 = vmul.f32 1.442695, %v2750_v56 }
 0x54c   : > { %v2762_v61 = vmul.f32 1.442695, %v2751_v37  ;;  %v2764_v20 = vmul.f32 1.442695, %v2752_v1  ;;  %v2766_v0 = vmul.f32 1.442695, %v2753_v48  ;;  %v8968_v48 = vpop.trf.xlu1 }
 0x54d   : > { %7974 = vpow2.f32 %v2756_v27  ;;  %v2768_v8 = vmul.f32 1.442695, %v2754_v59  ;;  %v2770_v32 = vmul.f32 1.442695, %v2755_v63  ;;  %10522 = vst [vmem:[#allocation51_spill] sm:$0xff] %v8968_v48 }
 0x54e   : > { %7976 = vpow2.f32 %v2758_v16 }
 0x54f   : > { %7978 = vpow2.f32 %v2760_v3 }
 0x550   : > { %7980 = vpow2.f32 %v2762_v61  ;;  %v8970_v59 = vpop.trf.xlu1 }
 0x551   : > { %7982 = vpow2.f32 %v2764_v20  ;;  %10523 = vst [vmem:[#allocation52_spill] sm:$0xff] %v8970_v59 }
 0x552   : > { %7984 = vpow2.f32 %v2766_v0 }
 0x553   : > { %7986 = vpow2.f32 %v2768_v8 }
 0x554   : > { %7988 = vpow2.f32 %v2770_v32  ;;  %v8972_v63 = vpop.trf.xlu1 }
 0x555   : > { %10524 = vst [vmem:[#allocation53_spill] sm:$0xff] %v8972_v63 }
 0x558   : > { %v8974_v8 = vpop.trf.xlu1 }
 0x559   : > { %10525 = vst [vmem:[#allocation54_spill] sm:$0xff] %v8974_v8 }
 0x55a   : > { %v8951_v14 = vpop.eup %7974 }
 0x55b   : > { %v8953_v26 = vpop.eup %7976  ;;  %v2772_v28 = vsel %vm688_vm1, %v8951_v14, 0.0 }
 0x55c   : > { %v2773_v51 = vsel %vm688_vm1, %v8953_v26, 0.0  ;;  %v8959_v10 = vpop.eup %7978  ;;  %v8978_v32 = vpop.trf.xlu1 }
 0x55d   : > { %v2774_v29 = vadd.f32 %v2773_v51, %v2772_v28  ;;  %v2775_v43 = vsel %vm688_vm1, %v8959_v10, 0.0  ;;  %v7981_v7 = vpop.eup %7980  ;;  %v8976_v28 = vpop.f32.mrf.mxu0  ;;  %10526 = vst [vmem:[#allocation55_spill] sm:$0xff] %v8978_v32 }
 0x55e   : > { %v2777_v50 = vsel %vm688_vm1, %v7981_v7, 0.0  ;;  %v7983_v52 = vpop.eup %7982 }
 0x55f   : > { %v2776_v2 = vadd.f32 %v2775_v43, %v2774_v29  ;;  %v2779_v31 = vsel %vm688_vm1, %v7983_v52, 0.0  ;;  %v7985_v5 = vpop.eup %7984 }
 0x560   : > { %v2781_v24 = vsel %vm688_vm1, %v7985_v5, 0.0  ;;  %v7987_v12 = vpop.eup %7986 }
 0x561   : > { %v2778_v22 = vadd.f32 %v2777_v50, %v2776_v2  ;;  %v2783_v25 = vsel %vm688_vm1, %v7987_v12, 0.0  ;;  %v7989_v13 = vpop.eup %7988 }
 0x562   : > { %v2785_v56 = vsel %vm688_vm1, %v7989_v13, 0.0 }
 0x563   : > { %v2780_v18 = vadd.f32 %v2779_v31, %v2778_v22  ;;  %v8984_v31 = vpop.trf.xlu1 }
 0x564   : > { %10527 = vst [vmem:[#allocation56_spill] sm:$0xff] %v8984_v31 }
 0x565   : > { %v2782_v49 = vadd.f32 %v2781_v24, %v2780_v18 }
 0x567   : > { %v2784_v27 = vadd.f32 %v2783_v25, %v2782_v49  ;;  %v8072_v25 = vld [vmem:[%s8408_s16 + $0x8] sm:$0xff] }
 0x569   : > { %v2786_v16 = vadd.f32 %v2785_v56, %v2784_v27  ;;  %v8075_v27 = vld [vmem:[%s8408_s16 + $0x28] sm:$0xff]  ;;  %v8076_v56 = vld [vmem:[%s8408_s16 + $0x18] sm:$0xff] }
 0x56b   : > { %v2787_v37 = vrot.slane %v2786_v16, 4 }
 0x56d   : > { %v2788_v3 = vadd.f32 %v2787_v37, %v2786_v16  ;;  %v8077_v16 = vld [vmem:[%s8408_s16 + $0x38] sm:$0xff]  ;;  %v8078_v37 = vld [vmem:[%s8408_s16 + $0x20] sm:$0xff] }
 0x56f   : > { %v2789_v1 = vrot.slane %v2788_v3, 2 }
 0x571   : > { %v2790_v61 = vadd.f32 %v2789_v1, %v2788_v3  ;;  %v8114_v3 = vmov 3   ;;  %v8079_v1 = vld [vmem:[%s8408_s16 + $0x30] sm:$0xff] }
 0x573   : > { %v2791_v20 = vrot.slane %v2790_v61, 1 }
 0x575   : > { %v2792_v0 = vadd.f32 %v2791_v20, %v2790_v61  ;;  %v8115_v61 = vmov 2   ;;  %v523_v20 = vld [vmem:[%s522_s22] sm:$0xff] }
 0x577   : > { %7990 = vrcp.f32 %v2792_v0  ;;  %v524_v0 = vld [vmem:[%s522_s22 + $0x8] sm:$0xff] }
 0x584   : > { %v7991_v29 = vpop.eup %7990 }
 0x585   : > { %v2801_v2 = vmul.f32 %v7991_v29, %v7989_v13  ;;  %v2800_v50 = vmul.f32 %v7991_v29, %v7987_v12  ;;  %v2799_v22 = vmul.f32 %v7991_v29, %v7985_v5  ;;  %v2798_v18 = vmul.f32 %v7991_v29, %v7983_v52  ;;  %v8990_v12 = vpop.permute.xlu0 %890  ;;  %v8997_v52 = vpop.trf.xlu1  ;;  %v8073_v13 = vld [vmem:[%s8408_s16] sm:$0xff] }
 0x586   : > { %v2797_v24 = vmul.f32 %v7991_v29, %v7981_v7  ;;  %10528 = vst [vmem:[#allocation57_spill] sm:$0xff] %v8990_v12  ;;  %v2796_v5 = vmul.f32 %v7991_v29, %v8959_v10  ;;  %10529 = vst [vmem:[#allocation58_spill] sm:$0xff] %v8997_v52  ;;  %v2795_v49 = vmul.f32 %v7991_v29, %v8953_v26 }
 0x587   : > { %v1115_v7 = vadd.f32 %v8824_v42, %v8990_v12  ;;  %v2794_v10 = vmul.f32 %v7991_v29, %v8951_v14  ;;  %v1120_v26 = vadd.f32 %v8822_v41, %v8932_v47  ;;  %v8113_v14 = vmov 1   ;;  %v8074_v41 = vld [vmem:[%s8408_s16 + $0x10] sm:$0xff]  ;;  %v526_v29 = vld [vmem:[%s522_s22 + $0x18] sm:$0xff] }
 0x588   : > { %7903 = vset.pattern.permute.xlu1 %v8113_v14  ;;  %7902 = vset.pattern.permute.xlu0 %v8113_v14 }
 0x589   : > { %3057 = vperm.xlu1 %7903, %v8072_v25   ;;  %3053 = vperm.xlu0 %7902, %v8073_v13  }
 0x58d   : > { %3061 = vperm.xlu1 %7903, %v8074_v41   ;;  %3073 = vperm.xlu0 %7902, %v8075_v27  }
 0x591   : > { %3065 = vperm.xlu1 %7903, %v8076_v56   ;;  %3081 = vperm.xlu0 %7902, %v8077_v16  }
 0x595   : > { %3069 = vperm.xlu1 %7903, %v8078_v37   ;;  %7907 = vset.pattern.permute.xlu0 %v8114_v3 }
 0x596   : > { %3236 = vperm.xlu0 %7907, %v8079_v1  }
 0x599   : > { %3077 = vperm.xlu1 %7903, %v8079_v1  }
 0x59a   : > { %3224 = vperm.xlu0 %7907, %v8076_v56  }
 0x59d   : > { %7904 = vset.pattern.permute.xlu1 %v8115_v61 }
 0x59e   : > { %7910 = vset.pattern.permute.xlu0 %v8115_v61  ;;  %3200 = vperm.xlu1 %7904, %v8077_v16  }
 0x59f   : > { %3196 = vperm.xlu0 %7910, %v8079_v1  }
 0x5a2   : > { %7905 = vset.pattern.permute.xlu1 %v8114_v3 }
 0x5a3   : > { %3184 = vperm.xlu0 %7910, %v8076_v56   ;;  %3240 = vperm.xlu1 %7905, %v8077_v16  }
 0x5a7   : > { %3172 = vperm.xlu0 %7910, %v8073_v13   ;;  %7906 = vset.pattern.permute.xlu1 %v8115_v61 }
 0x5a8   : > { %v9009_v42 = vpop.trf.xlu0  ;;  %3192 = vperm.xlu1 %7906, %v8075_v27  }
 0x5a9   : > { %10530 = vst [vmem:[#allocation59_spill] sm:$0xff] %v9009_v42 }
 0x5ac   : > { %3188 = vperm.xlu1 %7906, %v8078_v37  }
 0x5b0   : > { %7908 = vset.pattern.permute.xlu1 %v8114_v3 }
 0x5b1   : > { %3232 = vperm.xlu1 %7908, %v8075_v27  }
 0x5b5   : > { %3228 = vperm.xlu1 %7908, %v8078_v37  }
 0x5b9   : > { %7909 = vset.pattern.permute.xlu1 %v8115_v61 }
 0x5ba   : > { %3180 = vperm.xlu1 %7909, %v8074_v41  }
 0x5be   : > { %3176 = vperm.xlu1 %7909, %v8072_v25  }
 0x5c2   : > { %7911 = vset.pattern.permute.xlu1 %v8114_v3 }
 0x5c3   : > { %3220 = vperm.xlu1 %7911, %v8074_v41  }
 0x5c5   : > { %3331 = vxpose.xlu0.b32.start [1/8] (short) %v523_v20, 128 }
 0x5c7   : > { %3216 = vperm.xlu1 %7911, %v8072_v25  }
 0x5c9   : > { %3332 = vxpose.xlu0.b32.cont [2/8] (short) %v524_v0, 128 }
 0x5cb   : > { %3212 = vperm.xlu1 %7911, %v8073_v13  }
 0x5f8   : > { %v7360_v51 = vpop.f32.mrf.mxu0 }
 0x5f9   : > { %7361 = vmatprep.subr.mxu0 %v7360_v51 }
 0x5fa   : > { %v2388_v43 = vpop.f32.mrf.mxu0  ;;  %7362 = vmatpush3.msra.mxu0 %v7360_v51  ;;  %v525_v51 = vld [vmem:[%s522_s22 + $0x10] sm:$0xff] }
 0x5fb   : > { %7363 = vmatprep.subr.mxu0 %v2388_v43  ;;  %3333 = vxpose.xlu0.b32.cont [3/8] (short) %v525_v51, 128 }
 0x5fc   : > { %7364 = vmatpush3.msra.mxu0 %v2388_v43  ;;  %v10531_v43 = vmov 0  }
 0x5fd   : > { %7366 = vmatmul.mubr.msk.f32.vlgmr.msra.gmra.mxu0 %vm1155_vm2, %v8968_v48  ;;  %7393 = vmatprep.subr.mxu0 %v2801_v2  ;;  %v10600_v48 = vld [vmem:[#allocation26_spill] sm:$0xff] }
 0x5fe   : > { %7368 = vmatprep.mubr.msk.f32.mxu0 %vm1155_vm2, %v8970_v59  ;;  %7394 = vmatpush3.msra.mxu0 %v2801_v2  ;;  %v527_v2 = vld [vmem:[%s522_s22 + $0x20] sm:$0xff] }
 0x5ff   : > { %7395 = vmatprep.subr.mxu0 %v2800_v50  ;;  %7912 = vset.pattern.permute.xlu1 %v10531_v43 }
 0x600   : > { %7396 = vmatpush3.msra.mxu0 %v2800_v50  ;;  %3334 = vxpose.xlu0.b32.cont [4/8] (short) %v526_v29, 128  ;;  %v528_v50 = vld [vmem:[%s522_s22 + $0x28] sm:$0xff] }
 0x601   : > { %7369 = vmatmul.mubr.msk.f32.gmra.mxu0 %vm1155_vm2, %v8972_v63  ;;  %7397 = vmatprep.subr.mxu0 %v2799_v22 }
 0x602   : > { %7371 = vmatprep.mubr.msk.f32.mxu0 %vm1155_vm2, %v8974_v8  ;;  %7398 = vmatpush3.msra.mxu0 %v2799_v22  ;;  %v529_v22 = vld [vmem:[%s522_s22 + $0x30] sm:$0xff] }
 0x603   : > { %7399 = vmatprep.subr.mxu0 %v2798_v18 }
 0x604   : > { %7400 = vmatpush3.msra.mxu0 %v2798_v18  ;;  %3335 = vxpose.xlu0.b32.cont [5/8] (short) %v527_v2, 128  ;;  %v530_v18 = vld [vmem:[%s522_s22 + $0x38] sm:$0xff] }
 0x605   : > { %7372 = vmatmul.mubr.msk.f32.gmra.mxu0 %vm1155_vm2, %v8978_v32  ;;  %7401 = vmatprep.subr.mxu0 %v2797_v24 }
 0x606   : > { %7374 = vmatprep.mubr.msk.f32.mxu0 %vm1155_vm2, %v8984_v31  ;;  %7402 = vmatpush3.msra.mxu0 %v2797_v24  ;;  %v9026_v24 = vpop.trf.xlu0  ;;  %v544_v31 = vld [vmem:[%s9206_s13 + $0x58] sm:$0xff] }
 0x607   : > { %7403 = vmatprep.subr.mxu0 %v2796_v5  ;;  %10532 = vst [vmem:[#allocation60_spill] sm:$0xff] %v9026_v24 }
 0x608   : > { %7404 = vmatpush3.msra.mxu0 %v2796_v5  ;;  %3336 = vxpose.xlu0.b32.cont [6/8] (short) %v528_v50, 128 }
 0x609   : > { %7375 = vmatmul.mubr.msk.f32.gmra.mxu0 %vm1155_vm2, %v8997_v52  ;;  %7405 = vmatprep.subr.mxu0 %v2795_v49 }
 0x60a   : > { %7406 = vmatpush3.msra.mxu0 %v2795_v49  ;;  %7409 = vmatprep.mubr.msk.f32.mxu0 %vm688_vm1, %v1115_v7  ;;  %v9028_v49 = vpop.trf.xlu0 }
 0x60b   : > { %7407 = vmatprep.subr.mxu0 %v2794_v10  ;;  %10533 = vst [vmem:[#allocation61_spill] sm:$0xff] %v9028_v49 }
 0x60c   : > { %7408 = vmatpush3.msra.mxu0 %v2794_v10  ;;  %3337 = vxpose.xlu0.b32.cont [7/8] (short) %v529_v22, 128 }
 0x60d   : > { %7410 = vmatmul.mubr.msk.f32.vlgmr.msra.gmra.mxu0 %vm688_vm1, %v1120_v26 }
 0x60e   : > { %7416 = vmatprep.mubr.msk.f32.mxu0 %vm1155_vm2, %v9009_v42  ;;  %v9039_v41 = vpop.trf.xlu0 }
 0x60f   : > { %10534 = vst [vmem:[#allocation62_spill] sm:$0xff] %v9039_v41 }
 0x610   : > { %3338 = vxpose.xlu0.b32.end [8/8] (short) %v530_v18, 128 }
 0x612   : > { %v9050_v3 = vpop.trf.xlu0 }
 0x613   : > { %10535 = vst [vmem:[#allocation63_spill] sm:$0xff] %v9050_v3 }
 0x616   : > { %v9059_v0 = vpop.trf.xlu0 }
 0x617   : > { %10536 = vst [vmem:[#allocation64_spill] sm:$0xff] %v9059_v0 }
 0x639   : > { %7913 = vset.pattern.permute.xlu0 %v10531_v43  ;;  %v582_v43 = vld [vmem:[%s9098_s24 + $0x78] sm:$0xff] }
 0x63a   : > { %3328 = vperm.xlu1 %7912, %v582_v43   ;;  %v9117_v43 = vpop.permute.xlu1 %3057 }
 0x63b   : > { %10548 = vst [vmem:[#allocation76_spill] sm:$0xff] %v9117_v43 }
 0x6bd   : > { %v7367_v5 = vpop.f32.mrf.mxu0 }
 0x6be   : > { %v9031_v7 = vadd.f32 %v7367_v5, %v8899_v9  ;;  %v581_v5 = vld [vmem:[%s9098_s24 + $0x70] sm:$0xff] }
 0x6bf   : > { %v2519_v10 = vpop.f32.mrf.mxu0  ;;  %3323 = vperm.xlu1 %7912, %v581_v5   ;;  %v571_v5 = vld [vmem:[%s9098_s24 + $0x20] sm:$0xff] }
 0x6c0   : > { %v9034_v26 = vadd.f32 %v2519_v10, %v8902_v39 }
 0x6c1   : > { %v7370_v14 = vpop.f32.mrf.mxu0 }
 0x6c2   : > { %v9037_v25 = vadd.f32 %v7370_v14, %v8904_v15  ;;  %v2072_v15 = vadd.f32 %v8976_v28, %v8914_v17  ;;  %v580_v14 = vld [vmem:[%s9098_s24 + $0x68] sm:$0xff] }
 0x6c3   : > { %v2529_v13 = vpop.f32.mrf.mxu0  ;;  %3318 = vperm.xlu1 %7912, %v580_v14   ;;  %v570_v14 = vld [vmem:[%s9098_s24 + $0x18] sm:$0xff] }
 0x6c4   : > { %v9042_v27 = vadd.f32 %v2529_v13, %v8906_v21  ;;  %v579_v13 = vld [vmem:[%s9098_s24 + $0x60] sm:$0xff] }
 0x6c5   : > { %v7373_v56 = vpop.f32.mrf.mxu0 }
 0x6c6   : > { %v9045_v16 = vadd.f32 %v7373_v56, %v8908_v57  ;;  %v578_v56 = vld [vmem:[%s9098_s24 + $0x58] sm:$0xff] }
 0x6c7   : > { %v2539_v9 = vpop.f32.mrf.mxu0  ;;  %3313 = vperm.xlu1 %7912, %v579_v13   ;;  %v9121_v13 = vpop.permute.xlu1 %3061 }
 0x6c8   : > { %v9048_v37 = vadd.f32 %v2539_v9, %v8910_v4  ;;  %v9065_v4 = vpop.trf.xlu0  ;;  %v577_v9 = vld [vmem:[%s9098_s24 + $0x50] sm:$0xff]  ;;  %10549 = vst [vmem:[#allocation77_spill] sm:$0xff] %v9121_v13 }
 0x6c9   : > { %v7376_v39 = vpop.f32.mrf.mxu0  ;;  %10537 = vst [vmem:[#allocation65_spill] sm:$0xff] %v9065_v4 }
 0x6ca   : > { %v9055_v1 = vadd.f32 %v7376_v39, %v8912_v38  ;;  %v576_v39 = vld [vmem:[%s9098_s24 + $0x48] sm:$0xff] }
 0x6cb   : > { %v2549_v61 = vpop.f32.mrf.mxu0  ;;  %3308 = vperm.xlu1 %7912, %v578_v56  }
 0x6cc   : > { %v9057_v21 = vadd.f32 %v2549_v61, %v2072_v15  ;;  %v9075_v38 = vpop.trf.xlu0  ;;  %v575_v15 = vld [vmem:[%s9098_s24 + $0x40] sm:$0xff]  ;;  %v574_v61 = vld [vmem:[%s9098_s24 + $0x38] sm:$0xff] }
 0x6cd   : > { %v7411_v20 = vpop.f32.mrf.mxu0  ;;  %10538 = vst [vmem:[#allocation66_spill] sm:$0xff] %v9075_v38 }
 0x6ce   : > { %7412 = vmatprep.subr.mxu0 %v7411_v20 }
 0x6cf   : > { %v2874_v57 = vpop.f32.mrf.mxu0  ;;  %7413 = vmatpush3.msra.mxu0 %v7411_v20  ;;  %3303 = vperm.xlu1 %7912, %v577_v9   ;;  %v573_v20 = vld [vmem:[%s9098_s24 + $0x30] sm:$0xff] }
 0x6d0   : > { %7414 = vmatprep.subr.mxu0 %v2874_v57  ;;  %v9080_v17 = vpop.permute.xlu0 %3053 }
 0x6d1   : > { %7415 = vmatpush3.msra.mxu0 %v2874_v57  ;;  %10539 = vst [vmem:[#allocation67_spill] sm:$0xff] %v9080_v17  ;;  %v572_v57 = vld [vmem:[%s9098_s24 + $0x28] sm:$0xff] }
 0x6d2   : > { %7417 = vmatmul.mubr.msk.f32.vlgmr.msra.gmra.mxu0 %vm1155_vm2, %v9026_v24  ;;  %v540_v24 = vld [vmem:[%s9206_s13 + $0x38] sm:$0xff] }
 0x6d3   : > { %7419 = vmatprep.mubr.msk.f32.mxu0 %vm1155_vm2, %v9028_v49  ;;  %3298 = vperm.xlu1 %7912, %v576_v39   ;;  %v569_v39 = vld [vmem:[%s9098_s24 + $0x10] sm:$0xff] }
 0x6d4   : > { %v9082_v28 = vpop.permute.xlu0 %3073 }
 0x6d5   : > { %10540 = vst [vmem:[#allocation68_spill] sm:$0xff] %v9082_v28 }
 0x6d6   : > { %7420 = vmatmul.mubr.msk.f32.gmra.mxu0 %vm1155_vm2, %v9039_v41 }
 0x6d7   : > { %7422 = vmatprep.mubr.msk.f32.mxu0 %vm1155_vm2, %v9050_v3  ;;  %3293 = vperm.xlu1 %7912, %v575_v15   ;;  %v609_v15 = vld [vmem:[%s10317_s11 + $0x8] sm:$0xff] }
 0x6d8   : > { %v9084_v51 = vpop.permute.xlu0 %3081 }
 0x6d9   : > { %10541 = vst [vmem:[#allocation69_spill] sm:$0xff] %v9084_v51 }
 0x6da   : > { %7423 = vmatmul.mubr.msk.f32.gmra.mxu0 %vm1155_vm2, %v9059_v0  ;;  %v568_v0 = vld [vmem:[%s9098_s24 + $0x8] sm:$0xff] }
 0x6db   : > { %7425 = vmatprep.mubr.msk.f32.mxu0 %vm1155_vm2, %v9065_v4  ;;  %3288 = vperm.xlu1 %7912, %v574_v61  }
 0x6dc   : > { %v9086_v29 = vpop.permute.xlu0 %3236 }
 0x6dd   : > { %10542 = vst [vmem:[#allocation70_spill] sm:$0xff] %v9086_v29 }
 0x6de   : > { %7426 = vmatmul.mubr.msk.f32.gmra.mxu0 %vm1155_vm2, %v9075_v38  ;;  %v9130_v38 = vpop.permute.xlu1 %3065 }
 0x6df   : > { %3283 = vperm.xlu1 %7912, %v573_v20   ;;  %10550 = vst [vmem:[#allocation78_spill] sm:$0xff] %v9130_v38 }
 0x6e0   : > { %v9088_v2 = vpop.permute.xlu0 %3224 }
 0x6e1   : > { %10543 = vst [vmem:[#allocation71_spill] sm:$0xff] %v9088_v2 }
 0x6e3   : > { %3278 = vperm.xlu1 %7912, %v572_v57  }
 0x6e4   : > { %v9090_v50 = vpop.permute.xlu0 %3196 }
 0x6e5   : > { %10544 = vst [vmem:[#allocation72_spill] sm:$0xff] %v9090_v50 }
 0x6e7   : > { %3273 = vperm.xlu1 %7912, %v571_v5   ;;  %v608_v5 = vld [vmem:[%s10317_s11] sm:$0xff] }
 0x6e8   : > { %v9092_v22 = vpop.permute.xlu0 %3184 }
 0x6e9   : > { %10545 = vst [vmem:[#allocation73_spill] sm:$0xff] %v9092_v22 }
 0x6eb   : > { %3268 = vperm.xlu1 %7912, %v570_v14  }
 0x6ec   : > { %v9101_v18 = vpop.permute.xlu0 %3172 }
 0x6ed   : > { %10546 = vst [vmem:[#allocation74_spill] sm:$0xff] %v9101_v18 }
 0x6ef   : > { %3263 = vperm.xlu1 %7912, %v569_v39   ;;  %v610_v39 = vld [vmem:[%s10317_s11 + $0x10] sm:$0xff] }
 0x6f0   : > { %v9104_v10 = vpop.trf.xlu0 }
 0x6f1   : > { %10547 = vst [vmem:[#allocation75_spill] sm:$0xff] %v9104_v10  ;;  %7444 = vmatprep.mubr.msk.f32.mxu1 %vm688_vm1, %v9104_v10 }
 0x6f3   : > { %3258 = vperm.xlu1 %7912, %v568_v0   ;;  %v613_v0 = vld [vmem:[%s10317_s11 + $0x28] sm:$0xff] }
 0x792   : > { %v7418_v56 = vpop.f32.mrf.mxu0 }
 0x793   : > { %v3045_v9 = vadd.f32 %v7418_v56, %v9031_v7 }
 0x794   : > { %v3005_v61 = vpop.f32.mrf.mxu0 }
 0x795   : > { %v3085_v20 = vadd.f32 %v9117_v43, %v3045_v9  ;;  %v3044_v57 = vadd.f32 %v3005_v61, %v9034_v26  ;;  %v611_v26 = vld [vmem:[%s10317_s11 + $0x18] sm:$0xff] }
 0x796   : > { %v7421_v4 = vpop.f32.mrf.mxu0 }
 0x797   : > { %v3093_v14 = vadd.f32 %v3085_v20, %v609_v15  ;;  %v3084_v7 = vadd.f32 %v9080_v17, %v3044_v57  ;;  %v3047_v56 = vadd.f32 %v7421_v4, %v9037_v25 }
 0x798   : > { %v3015_v3 = vpop.f32.mrf.mxu0 }
 0x799   : > { %v3092_v41 = vadd.f32 %v3084_v7, %v608_v5  ;;  %v3087_v9 = vadd.f32 %v9130_v38, %v3047_v56  ;;  %v3046_v61 = vadd.f32 %v3015_v3, %v9042_v27  ;;  %v3101_v20 = vsel %vm688_vm1, %v3093_v14, 0.0  ;;  %v9150_v5 = vpop.permute.xlu1 %3069 }
 0x79a   : > { %v7424_v15 = vpop.f32.mrf.mxu0  ;;  %10551 = vst [vmem:[#allocation79_spill] sm:$0xff] %v9150_v5 }
 0x79b   : > { %v3100_v25 = vsel %vm688_vm1, %v3092_v41, 0.0  ;;  %v3086_v4 = vadd.f32 %v9121_v13, %v3046_v61  ;;  %v3049_v57 = vadd.f32 %v7424_v15, %v9045_v16  ;;  %v3095_v56 = vadd.f32 %v3087_v9, %v611_v26  ;;  %v612_v61 = vld [vmem:[%s10317_s11 + $0x20] sm:$0xff] }
 0x79c   : > { %v3102_v7 = vadd.f32 %v3101_v20, %v3100_v25  ;;  %v3025_v38 = vpop.f32.mrf.mxu0 }
 0x79d   : > { %v3094_v27 = vadd.f32 %v3086_v4, %v610_v39  ;;  %v3089_v3 = vadd.f32 %v9082_v28, %v3049_v57  ;;  %v3048_v17 = vadd.f32 %v3025_v38, %v9048_v37  ;;  %v3105_v9 = vsel %vm688_vm1, %v3095_v56, 0.0  ;;  %v9166_v57 = vpop.permute.xlu1 %3077 }
 0x79e   : > { %v7427_v13 = vpop.f32.mrf.mxu0  ;;  %10552 = vst [vmem:[#allocation80_spill] sm:$0xff] %v9166_v57 }
 0x79f   : > { %v3103_v16 = vsel %vm688_vm1, %v3094_v27, 0.0  ;;  %v3088_v15 = vadd.f32 %v9150_v5, %v3048_v17  ;;  %v3051_v26 = vadd.f32 %v7427_v13, %v9055_v1  ;;  %v3097_v37 = vadd.f32 %v3089_v3, %v613_v0  ;;  %v615_v17 = vld [vmem:[%s10317_s11 + $0x38] sm:$0xff]  ;;  %v614_v1 = vld [vmem:[%s10317_s11 + $0x30] sm:$0xff] }
 0x7a0   : > { %v3104_v39 = vadd.f32 %v3103_v16, %v3102_v7  ;;  %v3035_v20 = vpop.f32.mrf.mxu0 }
 0x7a1   : > { %v3096_v38 = vadd.f32 %v3088_v15, %v612_v61  ;;  %v3091_v25 = vadd.f32 %v9084_v51, %v3051_v26  ;;  %v3050_v4 = vadd.f32 %v3035_v20, %v9057_v21  ;;  %v3109_v0 = vsel %vm688_vm1, %v3097_v37, 0.0  ;;  %v567_v51 = vld [vmem:[%s9098_s24] sm:$0xff] }
 0x7a2   : > { %v3106_v28 = vadd.f32 %v3105_v9, %v3104_v39  ;;  %3253 = vperm.xlu0 %7913, %v567_v51  }
 0x7a3   : > { %v3107_v13 = vsel %vm688_vm1, %v3096_v38, 0.0  ;;  %v3090_v7 = vadd.f32 %v9166_v57, %v3050_v4  ;;  %v3099_v21 = vadd.f32 %v3091_v25, %v615_v17 }
 0x7a4   : > { %v3108_v3 = vadd.f32 %v3107_v13, %v3106_v28 }
 0x7a5   : > { %v3098_v61 = vadd.f32 %v3090_v7, %v614_v1  ;;  %v3113_v9 = vsel %vm688_vm1, %v3099_v21, 0.0 }
 0x7a6   : > { %v3110_v16 = vadd.f32 %v3109_v0, %v3108_v3 }
 0x7a7   : > { %v3111_v15 = vsel %vm688_vm1, %v3098_v61, 0.0 }
 0x7a8   : > { %v3112_v26 = vadd.f32 %v3111_v15, %v3110_v16 }
 0x7aa   : > { %v3114_v39 = vadd.f32 %v3113_v9, %v3112_v26 }
 0x7ac   : > { %v3115_v20 = vrot.slane %v3114_v39, 4 }
 0x7ae   : > { %v3116_v5 = vadd.f32 %v3115_v20, %v3114_v39 }
 0x7b0   : > { %v3117_v43 = vrot.slane %v3116_v5, 2 }
 0x7b2   : > { %v3118_v49 = vadd.f32 %v3117_v43, %v3116_v5 }
 0x7b4   : > { %v3119_v4 = vrot.slane %v3118_v49, 1 }
 0x7b6   : > { %v3120_v28 = vadd.f32 %v3119_v4, %v3118_v49 }
 0x7b8   : > { %v3122_v13 = vmul.f32 0.015625, %v3120_v28  ;;  %v534_v28 = vld [vmem:[%s9206_s13 + $0x8] sm:$0xff] }
 0x7ba   : > { %v9180_v57 = vsub.f32 %v3099_v21, %v3122_v13  ;;  %v9182_v25 = vsub.f32 %v3092_v41, %v3122_v13  ;;  %v9184_v17 = vsub.f32 %v3093_v14, %v3122_v13  ;;  %v9186_v1 = vsub.f32 %v3094_v27, %v3122_v13  ;;  %v9212_v27 = vpop.permute.xlu1 %3200 }
 0x7bb   : > { %v9188_v7 = vsub.f32 %v3095_v56, %v3122_v13  ;;  %v9190_v3 = vsub.f32 %v3096_v38, %v3122_v13  ;;  %v9192_v0 = vsub.f32 %v3097_v37, %v3122_v13  ;;  %v9194_v51 = vsub.f32 %v3098_v61, %v3122_v13  ;;  %10553 = vst [vmem:[#allocation81_spill] sm:$0xff] %v9212_v27  ;;  %v533_v61 = vld [vmem:[%s9206_s13] sm:$0xff] }
 0x7bc   : > { %v3131_v49 = vmul.f32 %v9182_v25, %v9182_v25  ;;  %v3132_v43 = vmul.f32 %v9184_v17, %v9184_v17  ;;  %v3133_v41 = vmul.f32 %v9186_v1, %v9186_v1  ;;  %3604 = vxpose.xlu1.b32.start [1/16] (narrow) %v533_v61, 64 }
 0x7bd   : > { %v3134_v14 = vmul.f32 %v9188_v7, %v9188_v7  ;;  %v3135_v38 = vmul.f32 %v9190_v3, %v9190_v3  ;;  %v3136_v15 = vmul.f32 %v9192_v0, %v9192_v0  ;;  %v3137_v39 = vmul.f32 %v9194_v51, %v9194_v51 }
 0x7be   : > { %v3139_v5 = vsel %vm688_vm1, %v3131_v49, 0.0  ;;  %v3140_v56 = vsel %vm688_vm1, %v3132_v43, 0.0  ;;  %v3142_v21 = vsel %vm688_vm1, %v3133_v41, 0.0  ;;  %v9224_v4 = vpop.permute.xlu1 %3240  ;;  %v3138_v49 = vmul.f32 %v9180_v57, %v9180_v57  ;;  %v9230_v41 = vpop.trf.xlu0 }
 0x7bf   : > { %v3141_v37 = vadd.f32 %v3140_v56, %v3139_v5  ;;  %v3144_v26 = vsel %vm688_vm1, %v3134_v14, 0.0  ;;  %v3146_v20 = vsel %vm688_vm1, %v3135_v38, 0.0  ;;  %10554 = vst [vmem:[#allocation82_spill] sm:$0xff] %v9224_v4  ;;  %v3148_v43 = vsel %vm688_vm1, %v3136_v15, 0.0  ;;  %10555 = vst [vmem:[#allocation83_spill] sm:$0xff] %v9230_v41  ;;  %v535_v56 = vld [vmem:[%s9206_s13 + $0x10] sm:$0xff] }
 0x7c0   : > { %3605 = vxpose.xlu1.b32.cont [2/16] (narrow) %v534_v28, 64  ;;  %v3150_v5 = vsel %vm688_vm1, %v3137_v39, 0.0  ;;  %v3152_v38 = vsel %vm688_vm1, %v3138_v49, 0.0  ;;  %v537_v28 = vld [vmem:[%s9206_s13 + $0x20] sm:$0xff]  ;;  %v538_v49 = vld [vmem:[%s9206_s13 + $0x28] sm:$0xff] }
 0x7c1   : > { %v3143_v16 = vadd.f32 %v3142_v21, %v3141_v37 }
 0x7c2   : > { %v9235_v21 = vpop.permute.xlu1 %3192 }
 0x7c3   : > { %v3145_v9 = vadd.f32 %v3144_v26, %v3143_v16  ;;  %10556 = vst [vmem:[#allocation84_spill] sm:$0xff] %v9235_v21  ;;  %v9237_v16 = vpop.trf.xlu0  ;;  %v536_v26 = vld [vmem:[%s9206_s13 + $0x18] sm:$0xff] }
 0x7c4   : > { %3606 = vxpose.xlu1.b32.cont [3/16] (narrow) %v535_v56, 64  ;;  %10557 = vst [vmem:[#allocation85_spill] sm:$0xff] %v9237_v16 }
 0x7c5   : > { %v3147_v13 = vadd.f32 %v3146_v20, %v3145_v9 }
 0x7c6   : > { %v9240_v20 = vpop.permute.xlu1 %3188 }
 0x7c7   : > { %v3149_v14 = vadd.f32 %v3148_v43, %v3147_v13  ;;  %10558 = vst [vmem:[#allocation86_spill] sm:$0xff] %v9240_v20  ;;  %v9243_v13 = vpop.trf.xlu0 }
 0x7c8   : > { %3607 = vxpose.xlu1.b32.cont [4/16] (narrow) %v536_v26, 64  ;;  %10559 = vst [vmem:[#allocation87_spill] sm:$0xff] %v9243_v13 }
 0x7c9   : > { %v3151_v37 = vadd.f32 %v3150_v5, %v3149_v14 }
 0x7ca   : > { %v9246_v5 = vpop.permute.xlu1 %3232 }
 0x7cb   : > { %v3153_v61 = vadd.f32 %v3152_v38, %v3151_v37  ;;  %10560 = vst [vmem:[#allocation88_spill] sm:$0xff] %v9246_v5  ;;  %v9248_v37 = vpop.trf.xlu0  ;;  %v539_v38 = vld [vmem:[%s9206_s13 + $0x30] sm:$0xff] }
 0x7cc   : > { %3608 = vxpose.xlu1.b32.cont [5/16] (narrow) %v537_v28, 64  ;;  %10561 = vst [vmem:[#allocation89_spill] sm:$0xff] %v9248_v37  ;;  %v541_v28 = vld [vmem:[%s9206_s13 + $0x40] sm:$0xff] }
 0x7cd   : > { %v3154_v15 = vrot.slane %v3153_v61, 4 }
 0x7cf   : > { %v3155_v9 = vadd.f32 %v3154_v15, %v3153_v61  ;;  %v9251_v15 = vpop.permute.xlu1 %3228 }
 0x7d0   : > { %3609 = vxpose.xlu1.b32.cont [6/16] (narrow) %v538_v49, 64  ;;  %10562 = vst [vmem:[#allocation90_spill] sm:$0xff] %v9251_v15  ;;  %v542_v49 = vld [vmem:[%s9206_s13 + $0x48] sm:$0xff] }
 0x7d1   : > { %v3156_v39 = vrot.slane %v3155_v9, 2 }
 0x7d3   : > { %v3157_v43 = vadd.f32 %v3156_v39, %v3155_v9  ;;  %v9254_v9 = vpop.trf.xlu0  ;;  %v9257_v39 = vpop.permute.xlu1 %3180 }
 0x7d4   : > { %3610 = vxpose.xlu1.b32.cont [7/16] (narrow) %v539_v38, 64  ;;  %10563 = vst [vmem:[#allocation91_spill] sm:$0xff] %v9254_v9  ;;  %10564 = vst [vmem:[#allocation92_spill] sm:$0xff] %v9257_v39 }
 0x7d5   : > { %v3158_v14 = vrot.slane %v3157_v43, 1 }
 0x7d7   : > { %v3159_v56 = vadd.f32 %v3158_v14, %v3157_v43  ;;  %v9259_v43 = vpop.trf.xlu0  ;;  %v9262_v14 = vpop.permute.xlu1 %3176 }
 0x7d8   : > { %3611 = vxpose.xlu1.b32.cont [8/16] (narrow) %v540_v24, 64  ;;  %10565 = vst [vmem:[#allocation93_spill] sm:$0xff] %v9259_v43  ;;  %10566 = vst [vmem:[#allocation94_spill] sm:$0xff] %v9262_v14 }
 0x7d9   : > { %v3160_v61 = vmul.f32 0.015625, %v3159_v56  ;;  %v543_v56 = vld [vmem:[%s9206_s13 + $0x50] sm:$0xff] }
 0x7db   : > { %v3161_v26 = vadd.f32 1e-05, %v3160_v61  ;;  %v9265_v61 = vpop.trf.xlu0 }
 0x7dc   : > { %3612 = vxpose.xlu1.b32.cont [9/16] (narrow) %v541_v28, 64  ;;  %10567 = vst [vmem:[#allocation95_spill] sm:$0xff] %v9265_v61 }
 0x7dd   : > { %7992 = vrsqrt.f32 %v3161_v26 }
 0x7e0   : > { %3613 = vxpose.xlu1.b32.cont [10/16] (narrow) %v542_v49, 64 }
 0x7e4   : > { %3614 = vxpose.xlu1.b32.cont [11/16] (narrow) %v543_v56, 64 }
 0x7e8   : > { %3615 = vxpose.xlu1.b32.cont [12/16] (narrow) %v544_v31, 64 }
 0x7ea   : > { %v7993_v38 = vpop.eup %7992 }
 0x7eb   : > { %v3169_v26 = vmul.f32 %v7993_v38, %v9194_v51  ;;  %v3166_v42 = vmul.f32 %v7993_v38, %v9188_v7  ;;  %v3163_v24 = vmul.f32 %v7993_v38, %v9182_v25  ;;  %v3170_v28 = vmul.f32 %v7993_v38, %v9180_v57  ;;  %v9278_v7 = vpop.permute.xlu1 %3220 }
 0x7ec   : > { %v3168_v47 = vmul.f32 %v7993_v38, %v9192_v0  ;;  %v3167_v49 = vmul.f32 %v7993_v38, %v9190_v3  ;;  %v3165_v52 = vmul.f32 %v7993_v38, %v9186_v1  ;;  %v3164_v12 = vmul.f32 %v7993_v38, %v9184_v17  ;;  %10568 = vst [vmem:[#allocation96_spill] sm:$0xff] %v9278_v7  ;;  %v9284_v0 = vpop.trf.xlu0  ;;  %v545_v3 = vld [vmem:[%s9206_s13 + $0x60] sm:$0xff] }
 0x7ed   : > { %v3209_v32 = vmul.f32 %v9090_v50, %v3169_v26  ;;  %v3210_v51 = vmul.f32 %v9212_v27, %v3170_v28  ;;  %10569 = vst [vmem:[#allocation97_spill] sm:$0xff] %v9284_v0  ;;  %v3206_v56 = vmul.f32 %v9092_v22, %v3166_v42  ;;  %3616 = vxpose.xlu1.b32.cont [13/16] (narrow) %v545_v3, 64 }
 0x7ee   : > { %v3208_v57 = vmul.f32 %v9235_v21, %v3168_v47  ;;  %v3207_v17 = vmul.f32 %v9240_v20, %v3167_v49  ;;  %v3205_v26 = vmul.f32 %v9257_v39, %v3165_v52  ;;  %v3204_v49 = vmul.f32 %v9262_v14, %v3164_v12 }
 0x7ef   : > { %v9281_v25 = vadd.f32 %v9224_v4, %v3210_v51  ;;  %v9288_v1 = vadd.f32 %v9086_v29, %v3209_v32  ;;  %v9298_v47 = vpop.permute.xlu1 %3216  ;;  %v546_v32 = vld [vmem:[%s9206_s13 + $0x68] sm:$0xff]  ;;  %v9311_v28 = vadd.f32 %v9088_v2, %v3206_v56  ;;  %v547_v51 = vld [vmem:[%s9206_s13 + $0x70] sm:$0xff]  ;;  %v3203_v52 = vmul.f32 %v9101_v18, %v3163_v24  ;;  %v548_v24 = vld [vmem:[%s9206_s13 + $0x78] sm:$0xff] }
 0x7f0   : > { %v9295_v38 = vadd.f32 %v9246_v5, %v3208_v57  ;;  %10570 = vst [vmem:[#allocation98_spill] sm:$0xff] %v9298_v47  ;;  %v9303_v31 = vadd.f32 %v9251_v15, %v3207_v17  ;;  %v9308_v42 = vpop.trf.xlu0  ;;  %v9319_v57 = vadd.f32 %v9278_v7, %v3205_v26  ;;  %v9326_v17 = vadd.f32 %v9298_v47, %v3204_v49  ;;  %v6598_v26 = vld [vmem:[%s10306_s0 + $0x70] sm:$0xff] }
 0x7f1   : > { %7428 = vmatprep.subr.mxu1 %v9281_v25  ;;  %10571 = vst [vmem:[#allocation99_spill] sm:$0xff] %v9308_v42  ;;  %3617 = vxpose.xlu1.b32.cont [14/16] (narrow) %v546_v32, 64  ;;  %v6599_v32 = vld [vmem:[%s10306_s0 + $0x78] sm:$0xff] }
 0x7f2   : > { %7429 = vmatpush3.msra.mxu1 %v9281_v25 }
 0x7f3   : > { %7430 = vmatprep.subr.mxu1 %v9288_v1  ;;  %v9322_v3 = vpop.permute.xlu1 %3212 }
 0x7f4   : > { %7431 = vmatpush3.msra.mxu1 %v9288_v1  ;;  %10572 = vst [vmem:[#allocation100_spill] sm:$0xff] %v9322_v3  ;;  %v9330_v12 = vpop.trf.xlu0  ;;  %v9334_v56 = vadd.f32 %v9322_v3, %v3203_v52  ;;  %v6596_v52 = vld [vmem:[%s10306_s0 + $0x60] sm:$0xff] }
 0x7f5   : > { %7432 = vmatprep.subr.mxu1 %v9295_v38  ;;  %3618 = vxpose.xlu1.b32.cont [15/16] (narrow) %v547_v51, 64  ;;  %10573 = vst [vmem:[#allocation101_spill] sm:$0xff] %v9330_v12  ;;  %v6597_v51 = vld [vmem:[%s10306_s0 + $0x68] sm:$0xff] }
 0x7f6   : > { %7433 = vmatpush3.msra.mxu1 %v9295_v38 }
 0x7f7   : > { %7434 = vmatprep.subr.mxu1 %v9303_v31 }
 0x7f8   : > { %7435 = vmatpush3.msra.mxu1 %v9303_v31  ;;  %v9350_v49 = vpop.trf.xlu0 }
 0x7f9   : > { %7436 = vmatprep.subr.mxu1 %v9311_v28  ;;  %3619 = vxpose.xlu1.b32.end [16/16] (narrow) %v548_v24, 64  ;;  %10574 = vst [vmem:[#allocation102_spill] sm:$0xff] %v9350_v49  ;;  %v6595_v24 = vld [vmem:[%s10306_s0 + $0x58] sm:$0xff] }
 0x7fa   : > { %7437 = vmatpush3.msra.mxu1 %v9311_v28 }
 0x7fb   : > { %7438 = vmatprep.subr.mxu1 %v9319_v57 }
 0x7fc   : > { %7439 = vmatpush3.msra.mxu1 %v9319_v57 }
 0x7fd   : > { %7440 = vmatprep.subr.mxu1 %v9326_v17 }
 0x7fe   : > { %7441 = vmatpush3.msra.mxu1 %v9326_v17 }
 0x7ff   : > { %7442 = vmatprep.subr.mxu1 %v9334_v56 }
 0x800   : > { %7443 = vmatpush3.msra.mxu1 %v9334_v56 }
 0x801   : > { %7445 = vmatmul.mubr.msk.f32.vlgmr.msra.gmra.mxu1 %vm688_vm1, %v9230_v41  ;;  %7512 = vmatprep.subr.mxu1 %v6599_v32 }
 0x802   : > { %7447 = vmatprep.mubr.msk.f32.mxu1 %vm688_vm1, %v9237_v16  ;;  %7513 = vmatpush3.msra.mxu1 %v6599_v32  ;;  %v9365_v32 = vpop.trf.xlu0 }
 0x803   : > { %7514 = vmatprep.subr.mxu1 %v6598_v26  ;;  %10575 = vst [vmem:[#allocation103_spill] sm:$0xff] %v9365_v32 }
 0x804   : > { %7515 = vmatpush3.msra.mxu1 %v6598_v26  ;;  %v6594_v26 = vld [vmem:[%s10306_s0 + $0x50] sm:$0xff] }
 0x805   : > { %7448 = vmatmul.mubr.msk.f32.gmra.mxu1 %vm688_vm1, %v9243_v13  ;;  %7516 = vmatprep.subr.mxu1 %v6597_v51 }
 0x806   : > { %7450 = vmatprep.mubr.msk.f32.mxu1 %vm688_vm1, %v9248_v37  ;;  %7517 = vmatpush3.msra.mxu1 %v6597_v51  ;;  %v6593_v51 = vld [vmem:[%s10306_s0 + $0x48] sm:$0xff] }
 0x807   : > { %7518 = vmatprep.subr.mxu1 %v6596_v52 }
 0x808   : > { %7519 = vmatpush3.msra.mxu1 %v6596_v52  ;;  %v6592_v52 = vld [vmem:[%s10306_s0 + $0x40] sm:$0xff] }
 0x809   : > { %7451 = vmatmul.mubr.msk.f32.gmra.mxu1 %vm688_vm1, %v9254_v9  ;;  %7520 = vmatprep.subr.mxu1 %v6595_v24  ;;  %v9384_v9 = vpop.trf.xlu0 }
 0x80a   : > { %7453 = vmatprep.mubr.msk.f32.mxu1 %vm688_vm1, %v9259_v43  ;;  %7521 = vmatpush3.msra.mxu1 %v6595_v24  ;;  %10576 = vst [vmem:[#allocation104_spill] sm:$0xff] %v9384_v9 }
 0x80b   : > { %7522 = vmatprep.subr.mxu1 %v6594_v26 }
 0x80c   : > { %7523 = vmatpush3.msra.mxu1 %v6594_v26  ;;  %v9398_v26 = vpop.permute.xlu1 %3328 }
 0x80d   : > { %7454 = vmatmul.mubr.msk.f32.gmra.mxu1 %vm688_vm1, %v9265_v61  ;;  %7524 = vmatprep.subr.mxu1 %v6593_v51  ;;  %v9390_v24 = vpop.trf.xlu0  ;;  %10578 = vst [vmem:[#allocation106_spill] sm:$0xff] %v9398_v26 }
 0x80e   : > { %7456 = vmatprep.mubr.msk.f32.mxu1 %vm688_vm1, %v9284_v0  ;;  %7525 = vmatpush3.msra.mxu1 %v6593_v51  ;;  %10577 = vst [vmem:[#allocation105_spill] sm:$0xff] %v9390_v24 }
 0x80f   : > { %7526 = vmatprep.subr.mxu1 %v6592_v52 }
 0x810   : > { %7527 = vmatpush3.msra.mxu1 %v6592_v52  ;;  %v9408_v52 = vpop.permute.xlu1 %3323 }
 0x811   : > { %7457 = vmatmul.mubr.msk.f32.gmra.mxu1 %vm688_vm1, %v9308_v42  ;;  %v9402_v51 = vpop.trf.xlu0  ;;  %10580 = vst [vmem:[#allocation108_spill] sm:$0xff] %v9408_v52 }
 0x812   : > { %7459 = vmatprep.mubr.msk.f32.mxu1 %vm688_vm1, %v9330_v12  ;;  %10579 = vst [vmem:[#allocation107_spill] sm:$0xff] %v9402_v51 }
 0x815   : > { %7460 = vmatmul.mubr.msk.f32.gmra.mxu1 %vm688_vm1, %v9350_v49 }
 0x816   : > { %7462 = vmatprep.mubr.msk.f32.mxu1 %vm688_vm1, %v9365_v32  ;;  %v10583_v32 = vld [vmem:[#allocation8_spill] sm:$0xff] }
 0x819   : > { %7463 = vmatmul.mubr.msk.f32.gmra.mxu1 %vm688_vm1, %v9384_v9  ;;  %v10581_v9 = vld [vmem:[#allocation6_spill] sm:$0xff] }
 0x81a   : > { %7465 = vmatprep.mubr.msk.f32.mxu1 %vm688_vm1, %v9390_v24  ;;  %v9416_v24 = vpop.permute.xlu1 %3318 }
 0x81b   : > { %10582 = vst [vmem:[#allocation6_spill] sm:$0xff] %v9416_v24 }
 0x81d   : > { %7466 = vmatmul.mubr.msk.f32.gmra.mxu1 %vm688_vm1, %v9402_v51  ;;  %v10584_v51 = vld [vmem:[#allocation10_spill] sm:$0xff] }
 0x81e   : > { %7528 = vmatprep.mubr.msk.f32.mxu1 %vm688_vm1, %v8418_v58  ;;  %v10585_v58 = vld [vmem:[#allocation12_spill] sm:$0xff]  ;;  %v9424_v49 = vpop.permute.xlu1 %3313 }
 0x81f   : > { %10586 = vst [vmem:[#allocation8_spill] sm:$0xff] %v9424_v49 }
 0x821   : > { %7529 = vmatmul.mubr.msk.f32.vlgmr.msra.gmra.mxu1 %vm688_vm1, %v8426_v60  ;;  %v10587_v60 = vld [vmem:[#allocation14_spill] sm:$0xff] }
 0x822   : > { %7531 = vmatprep.mubr.msk.f32.mxu1 %vm688_vm1, %v8434_v62  ;;  %v9428_v62 = vpop.permute.xlu1 %3308 }
 0x823   : > { %10588 = vst [vmem:[#allocation10_spill] sm:$0xff] %v9428_v62 }
 0x825   : > { %7532 = vmatmul.mubr.msk.f32.gmra.mxu1 %vm688_vm1, %v10581_v9 }
 0x826   : > { %7534 = vmatprep.mubr.msk.f32.mxu1 %vm688_vm1, %v10583_v32  ;;  %v9430_v12 = vpop.permute.xlu1 %3303 }
 0x827   : > { %10589 = vst [vmem:[#allocation12_spill] sm:$0xff] %v9430_v12 }
 0x829   : > { %7535 = vmatmul.mubr.msk.f32.gmra.mxu1 %vm688_vm1, %v10584_v51 }
 0x82a   : > { %7537 = vmatprep.mubr.msk.f32.mxu1 %vm688_vm1, %v10585_v58  ;;  %v9432_v9 = vpop.permute.xlu1 %3298 }
 0x82b   : > { %10590 = vst [vmem:[#allocation14_spill] sm:$0xff] %v9432_v9 }
 0x82d   : > { %7538 = vmatmul.mubr.msk.f32.gmra.mxu1 %vm688_vm1, %v10587_v60 }
 0x82e   : > { %v9434_v42 = vpop.permute.xlu1 %3293 }
 0x82f   : > { %10591 = vst [vmem:[#allocation109_spill] sm:$0xff] %v9434_v42 }
 0x832   : > { %v9436_v32 = vpop.permute.xlu1 %3288 }
 0x833   : > { %10592 = vst [vmem:[#allocation110_spill] sm:$0xff] %v9436_v32 }
 0x836   : > { %v9438_v0 = vpop.permute.xlu1 %3283 }
 0x837   : > { %10593 = vst [vmem:[#allocation111_spill] sm:$0xff] %v9438_v0 }
 0x83a   : > { %v9440_v51 = vpop.permute.xlu1 %3278 }
 0x83b   : > { %10594 = vst [vmem:[#allocation112_spill] sm:$0xff] %v9440_v51 }
 0x83e   : > { %v9442_v58 = vpop.permute.xlu1 %3273 }
 0x83f   : > { %10595 = vst [vmem:[#allocation113_spill] sm:$0xff] %v9442_v58 }
 0x842   : > { %v9444_v61 = vpop.permute.xlu1 %3268 }
 0x843   : > { %10596 = vst [vmem:[#allocation114_spill] sm:$0xff] %v9444_v61 }
 0x846   : > { %v9446_v43 = vpop.permute.xlu1 %3263 }
 0x847   : > { %10597 = vst [vmem:[#allocation115_spill] sm:$0xff] %v9446_v43 }
 0x84a   : > { %v9448_v60 = vpop.permute.xlu1 %3258 }
 0x84b   : > { %10598 = vst [vmem:[#allocation116_spill] sm:$0xff] %v9448_v60 }
 0x84e   : > { %v9450_v37 = vpop.trf.xlu1 }
 0x84f   : > { %10599 = vst [vmem:[#allocation117_spill] sm:$0xff] %v9450_v37  ;;  %7500 = vmatprep.mubr.f32.mxu0 %v9450_v37 }
 0x8c1   : > { %v9453_v13 = vpop.f32.mrf.mxu1 }
 0x8c3   : > { %v9455_v16 = vpop.f32.mrf.mxu1 }
 0x8c5   : > { %v9457_v41 = vpop.f32.mrf.mxu1 }
 0x8c7   : > { %v9459_v3 = vpop.f32.mrf.mxu1 }
 0x8c9   : > { %v7452_v47 = vpop.f32.mrf.mxu1 }
 0x8cb   : > { %v3497_v18 = vpop.f32.mrf.mxu1 }
 0x8cd   : > { %v7455_v7 = vpop.f32.mrf.mxu1 }
 0x8cf   : > { %v3507_v14 = vpop.f32.mrf.mxu1 }
 0x8d1   : > { %v7458_v2 = vpop.f32.mrf.mxu1 }
 0x8d3   : > { %v3517_v39 = vpop.f32.mrf.mxu1 }
 0x8d5   : > { %v7461_v15 = vpop.f32.mrf.mxu1 }
 0x8d6   : > { %v3533_v10 = vadd.f32 %v7461_v15, %v9428_v62 }
 0x8d7   : > { %v3527_v22 = vpop.f32.mrf.mxu1 }
 0x8d9   : > { %v7464_v5 = vpop.f32.mrf.mxu1 }
 0x8da   : > { %v3543_v50 = vadd.f32 %v7464_v5, %v9416_v24 }
 0x8db   : > { %v3537_v20 = vpop.f32.mrf.mxu1 }
 0x8dc   : > { %v3538_v63 = vadd.f32 %v3537_v20, %v9424_v49  ;;  %v3569_v35 = vmax.f32 %v3543_v50, 0.0 }
 0x8dd   : > { %v7467_v29 = vpop.f32.mrf.mxu1 }
 0x8de   : > { %v3553_v21 = vadd.f32 %v7467_v29, %v9398_v26 }
 0x8df   : > { %v3547_v4 = vpop.f32.mrf.mxu1 }
 0x8e0   : > { %v3571_v27 = vmax.f32 %v3553_v21, 0.0  ;;  %v3548_v37 = vadd.f32 %v3547_v4, %v9408_v52  ;;  %v3528_v4 = vadd.f32 %v3527_v22, %v9430_v12  ;;  %v3568_v21 = vmax.f32 %v3538_v63, 0.0 }
 0x8e1   : > { %v7530_v8 = vpop.f32.mrf.mxu1 }
 0x8e2   : > { %v3570_v59 = vmax.f32 %v3548_v37, 0.0  ;;  %v4006_v54 = vadd.f32 %v7530_v8, %v10600_v48  ;;  %7468 = vmatprep.subr.mxu0 %v3571_v27  ;;  %v9469_v48 = vpop.trf.xlu1  ;;  %v3523_v8 = vadd.f32 %v7458_v2, %v9432_v9  ;;  %v3503_v2 = vadd.f32 %v7452_v47, %v9440_v51 }
 0x8e3   : > { %7469 = vmatpush3.msra.mxu0 %v3571_v27  ;;  %v4000_v53 = vpop.f32.mrf.mxu1  ;;  %10602 = vst [vmem:[#allocation26_spill] sm:$0xff] %v9469_v48  ;;  %v3567_v27 = vmax.f32 %v3533_v10, 0.0  ;;  %v3498_v10 = vadd.f32 %v3497_v18, %v9442_v58  ;;  %v3493_v37 = vadd.f32 %v9457_v41, %v9444_v61  ;;  %v3483_v18 = vadd.f32 %v9453_v13, %v9448_v60  ;;  %v6607_v13 = vld [vmem:[%s10308_s2 + $0x78] sm:$0xff] }
 0x8e4   : > { %v4001_v29 = vadd.f32 %v4000_v53, %v10601_v40  ;;  %7470 = vmatprep.subr.mxu0 %v3570_v59  ;;  %7580 = vmatprep.subr.mxu1 %v4006_v54  ;;  %v3518_v40 = vadd.f32 %v3517_v39, %v9434_v42  ;;  %v3566_v53 = vmax.f32 %v3528_v4, 0.0  ;;  %v3561_v15 = vmax.f32 %v3503_v2, 0.0  ;;  %v6600_v2 = vld [vmem:[%s10308_s2 + $0x40] sm:$0xff] }
 0x8e5   : > { %7471 = vmatpush3.msra.mxu0 %v3570_v59  ;;  %7581 = vmatpush3.msra.mxu1 %v4006_v54  ;;  %v3513_v54 = vadd.f32 %v7455_v7, %v9436_v32  ;;  %v3565_v59 = vmax.f32 %v3523_v8, 0.0  ;;  %v3488_v39 = vadd.f32 %v9459_v3, %v9446_v43  ;;  %v9485_v7 = vpop.permute.xlu0 %3253  ;;  %v3559_v47 = vmax.f32 %v3493_v37, 0.0  ;;  %v10613_v37 = vld [vmem:[#allocation5_spill] sm:$0xff] }
 0x8e6   : > { %7472 = vmatprep.subr.mxu0 %v3569_v35  ;;  %7582 = vmatprep.subr.mxu1 %v4001_v29  ;;  %v9474_v63 = vpop.trf.xlu1  ;;  %v3564_v50 = vmax.f32 %v3518_v40, 0.0  ;;  %10605 = vst [vmem:[#allocation119_spill] sm:$0xff] %v9485_v7  ;;  %v3478_v41 = vadd.f32 %v9455_v16, %v9485_v7  ;;  %v3557_v3 = vmax.f32 %v3483_v18, 0.0  ;;  %v6606_v16 = vld [vmem:[%s10308_s2 + $0x70] sm:$0xff]  ;;  %v6604_v40 = vld [vmem:[%s10308_s2 + $0x60] sm:$0xff]  ;;  %v10617_v18 = vld [vmem:[#allocation13_spill] sm:$0xff] }
 0x8e7   : > { %7473 = vmatpush3.msra.mxu0 %v3569_v35  ;;  %7583 = vmatpush3.msra.mxu1 %v4001_v29  ;;  %10603 = vst [vmem:[#allocation28_spill] sm:$0xff] %v9474_v63  ;;  %v3508_v35 = vadd.f32 %v3507_v14, %v9438_v0  ;;  %v3563_v22 = vmax.f32 %v3513_v54, 0.0  ;;  %v3560_v14 = vmax.f32 %v3498_v10, 0.0  ;;  %v3558_v4 = vmax.f32 %v3488_v39, 0.0  ;;  %v6603_v54 = vld [vmem:[%s10308_s2 + $0x58] sm:$0xff]  ;;  %v10611_v10 = vld [vmem:[#allocation3_spill] sm:$0xff] }
 0x8e8   : > { %7474 = vmatprep.subr.mxu0 %v3568_v21  ;;  %v10615_v39 = vld [vmem:[#allocation9_spill] sm:$0xff] }
 0x8e9   : > { %7475 = vmatpush3.msra.mxu0 %v3568_v21  ;;  %v3562_v20 = vmax.f32 %v3508_v35, 0.0  ;;  %v3556_v21 = vmax.f32 %v3478_v41, 0.0  ;;  %v10619_v41 = vld [vmem:[#allocation16_spill] sm:$0xff] }
 0x8ea   : > { %7476 = vmatprep.subr.mxu0 %v3567_v27  ;;  %v9479_v5 = vpop.trf.xlu1 }
 0x8eb   : > { %7477 = vmatpush3.msra.mxu0 %v3567_v27  ;;  %10604 = vst [vmem:[#allocation118_spill] sm:$0xff] %v9479_v5  ;;  %v6605_v27 = vld [vmem:[%s10308_s2 + $0x68] sm:$0xff] }
 0x8ec   : > { %7478 = vmatprep.subr.mxu0 %v3566_v53 }
 0x8ed   : > { %7479 = vmatpush3.msra.mxu0 %v3566_v53 }
 0x8ee   : > { %7480 = vmatprep.subr.mxu0 %v3565_v59  ;;  %v9489_v29 = vpop.trf.xlu1 }
 0x8ef   : > { %7481 = vmatpush3.msra.mxu0 %v3565_v59  ;;  %10606 = vst [vmem:[#allocation120_spill] sm:$0xff] %v9489_v29  ;;  %v6602_v59 = vld [vmem:[%s10308_s2 + $0x50] sm:$0xff] }
 0x8f0   : > { %7482 = vmatprep.subr.mxu0 %v3564_v50 }
 0x8f1   : > { %7483 = vmatpush3.msra.mxu0 %v3564_v50  ;;  %v6601_v50 = vld [vmem:[%s10308_s2 + $0x48] sm:$0xff] }
 0x8f2   : > { %7484 = vmatprep.subr.mxu0 %v3563_v22  ;;  %v9496_v8 = vpop.trf.xlu1 }
 0x8f3   : > { %7485 = vmatpush3.msra.mxu0 %v3563_v22  ;;  %10607 = vst [vmem:[#allocation121_spill] sm:$0xff] %v9496_v8  ;;  %v10610_v22 = vld [vmem:[#allocation2_spill] sm:$0xff] }
 0x8f4   : > { %7486 = vmatprep.subr.mxu0 %v3562_v20 }
 0x8f5   : > { %7487 = vmatpush3.msra.mxu0 %v3562_v20  ;;  %v10612_v20 = vld [vmem:[#allocation4_spill] sm:$0xff] }
 0x8f6   : > { %7488 = vmatprep.subr.mxu0 %v3561_v15  ;;  %v9509_v53 = vpop.trf.xlu1 }
 0x8f7   : > { %7489 = vmatpush3.msra.mxu0 %v3561_v15  ;;  %10608 = vst [vmem:[#allocation122_spill] sm:$0xff] %v9509_v53  ;;  %v10614_v15 = vld [vmem:[#allocation7_spill] sm:$0xff] }
 0x8f8   : > { %7490 = vmatprep.subr.mxu0 %v3560_v14 }
 0x8f9   : > { %7491 = vmatpush3.msra.mxu0 %v3560_v14  ;;  %v10616_v14 = vld [vmem:[#allocation11_spill] sm:$0xff] }
 0x8fa   : > { %7492 = vmatprep.subr.mxu0 %v3559_v47  ;;  %v9521_v35 = vpop.trf.xlu1 }
 0x8fb   : > { %7493 = vmatpush3.msra.mxu0 %v3559_v47  ;;  %10609 = vst [vmem:[#allocation123_spill] sm:$0xff] %v9521_v35  ;;  %v10618_v47 = vld [vmem:[#allocation15_spill] sm:$0xff] }
 0x8fc   : > { %7494 = vmatprep.subr.mxu0 %v3558_v4 }
 0x8fd   : > { %7495 = vmatpush3.msra.mxu0 %v3558_v4  ;;  %v10620_v4 = vld [vmem:[#allocation17_spill] sm:$0xff] }
 0x8fe   : > { %7496 = vmatprep.subr.mxu0 %v3557_v3 }
 0x8ff   : > { %7497 = vmatpush3.msra.mxu0 %v3557_v3  ;;  %v10621_v3 = vld [vmem:[#allocation18_spill] sm:$0xff] }
 0x900   : > { %7498 = vmatprep.subr.mxu0 %v3556_v21 }
 0x901   : > { %7499 = vmatpush3.msra.mxu0 %v3556_v21  ;;  %v10622_v21 = vld [vmem:[#allocation19_spill] sm:$0xff] }
 0x902   : > { %7501 = vmatmul.mubr.f32.vlgmr.msra.gmra.mxu0 %v9469_v48  ;;  %7540 = vmatprep.subr.mxu0 %v6607_v13 }
 0x903   : > { %7503 = vmatprep.mubr.f32.mxu0 %v9474_v63  ;;  %7541 = vmatpush3.msra.mxu0 %v6607_v13  ;;  %v10623_v13 = vld [vmem:[#allocation20_spill] sm:$0xff] }
 0x904   : > { %7542 = vmatprep.subr.mxu0 %v6606_v16 }
 0x905   : > { %7543 = vmatpush3.msra.mxu0 %v6606_v16  ;;  %v10624_v16 = vld [vmem:[#allocation21_spill] sm:$0xff] }
 0x906   : > { %7504 = vmatmul.mubr.f32.gmra.mxu0 %v9479_v5  ;;  %7544 = vmatprep.subr.mxu0 %v6605_v27 }
 0x907   : > { %7506 = vmatprep.mubr.f32.mxu0 %v9489_v29  ;;  %7545 = vmatpush3.msra.mxu0 %v6605_v27  ;;  %v10625_v27 = vld [vmem:[#allocation22_spill] sm:$0xff] }
 0x908   : > { %7546 = vmatprep.subr.mxu0 %v6604_v40 }
 0x909   : > { %7547 = vmatpush3.msra.mxu0 %v6604_v40 }
 0x90a   : > { %7507 = vmatmul.mubr.f32.gmra.mxu0 %v9496_v8  ;;  %7548 = vmatprep.subr.mxu0 %v6603_v54 }
 0x90b   : > { %7509 = vmatprep.mubr.f32.mxu0 %v9509_v53  ;;  %7549 = vmatpush3.msra.mxu0 %v6603_v54 }
 0x90c   : > { %7550 = vmatprep.subr.mxu0 %v6602_v59 }
 0x90d   : > { %7551 = vmatpush3.msra.mxu0 %v6602_v59 }
 0x90e   : > { %7510 = vmatmul.mubr.f32.gmra.mxu0 %v9521_v35  ;;  %7552 = vmatprep.subr.mxu0 %v6601_v50 }
 0x90f   : > { %7553 = vmatpush3.msra.mxu0 %v6601_v50  ;;  %7556 = vmatprep.mubr.msk.f32.mxu0 %vm688_vm1, %v10610_v22 }
 0x910   : > { %7554 = vmatprep.subr.mxu0 %v6600_v2 }
 0x911   : > { %7555 = vmatpush3.msra.mxu0 %v6600_v2 }
 0x912   : > { %7557 = vmatmul.mubr.msk.f32.vlgmr.msra.gmra.mxu0 %vm688_vm1, %v10611_v10 }
 0x913   : > { %7559 = vmatprep.mubr.msk.f32.mxu0 %vm688_vm1, %v10612_v20 }
 0x916   : > { %7560 = vmatmul.mubr.msk.f32.gmra.mxu0 %vm688_vm1, %v10613_v37 }
 0x917   : > { %7562 = vmatprep.mubr.msk.f32.mxu0 %vm688_vm1, %v10614_v15 }
 0x91a   : > { %7563 = vmatmul.mubr.msk.f32.gmra.mxu0 %vm688_vm1, %v10615_v39  ;;  %v10626_v39 = vld [vmem:[#allocation27_spill] sm:$0xff] }
 0x91b   : > { %7565 = vmatprep.mubr.msk.f32.mxu0 %vm688_vm1, %v10616_v14 }
 0x91e   : > { %7566 = vmatmul.mubr.msk.f32.gmra.mxu0 %vm688_vm1, %v10617_v18 }
 0x91f   : > { %7568 = vmatprep.mubr.msk.f32.mxu0 %vm688_vm1, %v10618_v47 }
 0x922   : > { %7569 = vmatmul.mubr.msk.f32.gmra.mxu0 %vm688_vm1, %v10619_v41  ;;  %v10627_v41 = vld [vmem:[#allocation23_spill] sm:$0xff] }
 0x923   : > { %7571 = vmatprep.mubr.msk.f32.mxu0 %vm688_vm1, %v10620_v4 }
 0x926   : > { %7572 = vmatmul.mubr.msk.f32.gmra.mxu0 %vm688_vm1, %v10621_v3  ;;  %v10628_v3 = vld [vmem:[#allocation24_spill] sm:$0xff] }
 0x927   : > { %7574 = vmatprep.mubr.msk.f32.mxu0 %vm688_vm1, %v10622_v21 }
 0x92a   : > { %7575 = vmatmul.mubr.msk.f32.gmra.mxu0 %vm688_vm1, %v10623_v13 }
 0x92b   : > { %7577 = vmatprep.mubr.msk.f32.mxu0 %vm688_vm1, %v10624_v16 }
 0x92e   : > { %7578 = vmatmul.mubr.msk.f32.gmra.mxu0 %vm688_vm1, %v10625_v27  ;;  %v10629_v27 = vld [vmem:[#allocation25_spill] sm:$0xff] }
 0x9c2   : > { %v9562_v40 = vpop.f32.mrf.mxu0 }
 0x9c4   : > { %v9564_v54 = vpop.f32.mrf.mxu0 }
 0x9c6   : > { %v9566_v59 = vpop.f32.mrf.mxu0 }
 0x9c8   : > { %v9568_v50 = vpop.f32.mrf.mxu0 }
 0x9ca   : > { %v9570_v2 = vpop.f32.mrf.mxu0 }
 0x9cc   : > { %v9572_v22 = vpop.f32.mrf.mxu0 }
 0x9ce   : > { %v9574_v10 = vpop.f32.mrf.mxu0 }
 0x9d0   : > { %v9576_v20 = vpop.f32.mrf.mxu0 }
 0x9d2   : > { %v7558_v37 = vpop.f32.mrf.mxu0 }
 0x9d3   : > { %v4111_v4 = vadd.f32 %v7558_v37, %v10627_v41  ;;  %v10630_v37 = vld [vmem:[#allocation31_spill] sm:$0xff] }
 0x9d4   : > { %v4105_v15 = vpop.f32.mrf.mxu0 }
 0x9d5   : > { %v4106_v14 = vadd.f32 %v4105_v15, %v10626_v39 }
 0x9d6   : > { %v7561_v18 = vpop.f32.mrf.mxu0 }
 0x9d7   : > { %4184 = vxpose.xlu0.b32.start [1/2] (short) (narrow) %v4106_v14, 64  ;;  %v4121_v35 = vadd.f32 %v7561_v18, %v10629_v27  ;;  %v10632_v18 = vld [vmem:[#allocation33_spill] sm:$0xff] }
 0x9d8   : > { %v4115_v47 = vpop.f32.mrf.mxu0 }
 0x9d9   : > { %v4116_v21 = vadd.f32 %v4115_v47, %v10628_v3  ;;  %v10631_v47 = vld [vmem:[#allocation32_spill] sm:$0xff] }
 0x9da   : > { %v7564_v13 = vpop.f32.mrf.mxu0 }
 0x9db   : > { %4501 = vxpose.xlu1.b32.start [1/2] (short) (narrow) %v4116_v21, 64  ;;  %4185 = vxpose.xlu0.b32.end [2/2] (short) (narrow) %v4111_v4, 64  ;;  %v10633_v4 = vld [vmem:[#allocation44_spill] sm:$0xff]  ;;  %v10634_v21 = vld [vmem:[#allocation45_spill] sm:$0xff] }
 0x9dc   : > { %v4125_v16 = vpop.f32.mrf.mxu0 }
 0x9dd   : > { %v4126_v41 = vadd.f32 %v4125_v16, %v10631_v47  ;;  %v8081_v16 = vld [vmem:[%s8408_s16 + $0x10] sm:$0xff]  ;;  %v8085_v47 = vld [vmem:[%s8408_s16 + $0x28] sm:$0xff] }
 0x9de   : > { %v7567_v53 = vpop.f32.mrf.mxu0 }
 0x9df   : > { %4502 = vxpose.xlu1.b32.end [2/2] (short) (narrow) %v4121_v35, 64  ;;  %v4131_v35 = vadd.f32 %v7564_v13, %v10632_v18  ;;  %v4141_v27 = vadd.f32 %v7567_v53, %v10634_v21  ;;  %v8083_v13 = vld [vmem:[%s8408_s16 + $0x18] sm:$0xff]  ;;  %v8117_v18 = vmov 5  }
 0x9e0   : > { %v4135_v8 = vpop.f32.mrf.mxu0  ;;  %v8087_v53 = vld [vmem:[%s8408_s16 + $0x38] sm:$0xff] }
 0x9e1   : > { %v4136_v3 = vadd.f32 %v4135_v8, %v10633_v4  ;;  %v8084_v8 = vld [vmem:[%s8408_s16 + $0x20] sm:$0xff]  ;;  %v8118_v4 = vmov 6  }
 0x9e2   : > { %v9582_v29 = vpop.f32.mrf.mxu0 }
 0x9e4   : > { %v9584_v5 = vpop.f32.mrf.mxu0 }
 0x9e6   : > { %v9586_v15 = vpop.f32.mrf.mxu0 }
 0x9e8   : > { %v4155_v39 = vpop.f32.mrf.mxu0 }
 0x9e9   : > { %v4156_v14 = vadd.f32 %v4155_v39, %v10630_v37  ;;  %v8116_v39 = vmov 4   ;;  %v8080_v37 = vld [vmem:[%s8408_s16 + $0x8] sm:$0xff] }
 0x9eb   : > { %7647 = vmatprep.mubr.msk.f32.mxu0 %vm688_vm1, %v4156_v14  ;;  %v8082_v14 = vld [vmem:[%s8408_s16] sm:$0xff] }
 0x9f4   : > { %5028 = vxpose.xlu0.b32.start [1/2] (short) (narrow) %v4126_v41, 64  ;;  %v8086_v41 = vld [vmem:[%s8408_s16 + $0x30] sm:$0xff] }
 0x9f8   : > { %5458 = vxpose.xlu1.b32.start [1/2] (short) (narrow) %v4136_v3, 64  ;;  %5029 = vxpose.xlu0.b32.end [2/2] (short) (narrow) %v4131_v35, 64 }
 0x9fc   : > { %5459 = vxpose.xlu1.b32.end [2/2] (short) (narrow) %v4141_v27, 64 }
 0xa1a   : > { %7915 = vset.pattern.permute.xlu1 %v8116_v39 }
 0xa21   : > { %7914 = vset.pattern.permute.xlu0 %v8116_v39 }
 0xa32   : > { %3577 = vperm.xlu1 %7915, %v8080_v37  }
 0xa36   : > { %3581 = vperm.xlu1 %7915, %v8081_v16  }
 0xa39   : > { %3573 = vperm.xlu0 %7914, %v8082_v14  }
 0xa3a   : > { %3585 = vperm.xlu1 %7915, %v8083_v13  }
 0xa3d   : > { %3589 = vperm.xlu0 %7914, %v8084_v8  }
 0xa3e   : > { %3593 = vperm.xlu1 %7915, %v8085_v47  }
 0xa41   : > { %3597 = vperm.xlu0 %7914, %v8086_v41  }
 0xa42   : > { %3601 = vperm.xlu1 %7915, %v8087_v53  }
 0xa45   : > { %7916 = vset.pattern.permute.xlu0 %v8117_v18 }
 0xa46   : > { %7917 = vset.pattern.permute.xlu1 %v8117_v18  ;;  %3820 = vperm.xlu0 %7916, %v8082_v14  }
 0xa47   : > { %3824 = vperm.xlu1 %7917, %v8080_v37  }
 0xa4a   : > { %3832 = vperm.xlu0 %7916, %v8083_v13  }
 0xa4b   : > { %3828 = vperm.xlu1 %7917, %v8081_v16  }
 0xa4e   : > { %3840 = vperm.xlu0 %7916, %v8085_v47  }
 0xa4f   : > { %3836 = vperm.xlu1 %7917, %v8084_v8  }
 0xa52   : > { %3848 = vperm.xlu0 %7916, %v8087_v53  }
 0xa53   : > { %v4200_v35 = vpop.trf.xlu0  ;;  %3844 = vperm.xlu1 %7917, %v8086_v41  }
 0xa54   : > { %7584 = vmatprep.mubr.msk.f32.mxu1 %vm1155_vm2, %v4200_v35 }
 0xa56   : > { %7919 = vset.pattern.permute.xlu0 %v8118_v4 }
 0xa57   : > { %v4201_v3 = vpop.trf.xlu0  ;;  %v9603_v21 = vpop.trf.xlu1  ;;  %7918 = vset.pattern.permute.xlu1 %v8118_v4  ;;  %3864 = vperm.xlu0 %7919, %v8080_v37  }
 0xa58   : > { %7585 = vmatmul.mubr.msk.f32.vlgmr.msra.gmra.mxu1 %vm1155_vm2, %v4201_v3  ;;  %3860 = vperm.xlu1 %7918, %v8082_v14  }
 0xa5b   : > { %v4202_v27 = vpop.trf.xlu0  ;;  %v9606_v39 = vpop.trf.xlu1  ;;  %3876 = vperm.xlu0 %7919, %v8084_v8  }
 0xa5c   : > { %7587 = vmatprep.mubr.msk.f32.mxu1 %vm1155_vm2, %v4202_v27  ;;  %3868 = vperm.xlu1 %7918, %v8081_v16  }
 0xa5f   : > { %v4203_v18 = vpop.trf.xlu0  ;;  %v9609_v63 = vpop.trf.xlu1  ;;  %3884 = vperm.xlu0 %7919, %v8086_v41   ;;  %v10635_v41 = vld [vmem:[#allocation34_spill] sm:$0xff] }
 0xa60   : > { %7588 = vmatmul.mubr.msk.f32.gmra.mxu1 %vm1155_vm2, %v4203_v18  ;;  %3872 = vperm.xlu1 %7918, %v8083_v13   ;;  %v4146_v13 = vadd.f32 %v9584_v5, %v10635_v41 }
 0xa63   : > { %v4204_v35 = vpop.trf.xlu0  ;;  %v9612_v4 = vpop.trf.xlu1 }
 0xa64   : > { %7590 = vmatprep.mubr.msk.f32.mxu1 %vm1155_vm2, %v4204_v35  ;;  %3880 = vperm.xlu1 %7918, %v8085_v47  }
 0xa67   : > { %v4205_v37 = vpop.trf.xlu0  ;;  %v9615_v14 = vpop.trf.xlu1 }
 0xa68   : > { %7591 = vmatmul.mubr.msk.f32.gmra.mxu1 %vm1155_vm2, %v4205_v37  ;;  %3888 = vperm.xlu1 %7918, %v8087_v53  }
 0xa6b   : > { %v4206_v16 = vpop.trf.xlu0  ;;  %v9618_v8 = vpop.trf.xlu1 }
 0xa6c   : > { %7593 = vmatprep.mubr.msk.f32.mxu1 %vm1155_vm2, %v4206_v16 }
 0xa6f   : > { %v4207_v3 = vpop.trf.xlu0  ;;  %v9625_v47 = vpop.trf.xlu1 }
 0xa70   : > { %7594 = vmatmul.mubr.msk.f32.gmra.mxu1 %vm1155_vm2, %v4207_v3 }
 0xa71   : > { %7612 = vmatprep.mubr.msk.f32.mxu1 %vm688_vm1, %v4146_v13 }
 0xa73   : > { %v9627_v27 = vpop.trf.xlu1  ;;  %v9633_v35 = vpop.trf.xlu0 }
 0xa77   : > { %v9629_v18 = vpop.trf.xlu1  ;;  %v9637_v16 = vpop.trf.xlu0 }
 0xa78   : > { %10636 = vst [vmem:[#allocation2_spill] sm:$0xff] %v9629_v18  ;;  %10639 = vst [vmem:[#allocation5_spill] sm:$0xff] %v9637_v16 }
 0xa7b   : > { %v9631_v53 = vpop.trf.xlu1  ;;  %v9641_v41 = vpop.trf.xlu0 }
 0xa7c   : > { %10637 = vst [vmem:[#allocation3_spill] sm:$0xff] %v9631_v53  ;;  %10641 = vst [vmem:[#allocation9_spill] sm:$0xff] %v9641_v41 }
 0xa7f   : > { %v9635_v37 = vpop.trf.xlu1  ;;  %v9645_v13 = vpop.trf.xlu0 }
 0xa80   : > { %10638 = vst [vmem:[#allocation4_spill] sm:$0xff] %v9635_v37  ;;  %10643 = vst [vmem:[#allocation13_spill] sm:$0xff] %v9645_v13 }
 0xa83   : > { %v9639_v5 = vpop.trf.xlu1  ;;  %v9649_v7 = vpop.trf.xlu0 }
 0xa84   : > { %10640 = vst [vmem:[#allocation7_spill] sm:$0xff] %v9639_v5  ;;  %10645 = vst [vmem:[#allocation16_spill] sm:$0xff] %v9649_v7 }
 0xa87   : > { %v9643_v3 = vpop.trf.xlu1  ;;  %v9653_v43 = vpop.trf.xlu0 }
 0xa88   : > { %10642 = vst [vmem:[#allocation11_spill] sm:$0xff] %v9643_v3  ;;  %10647 = vst [vmem:[#allocation18_spill] sm:$0xff] %v9653_v43 }
 0xa8b   : > { %v9647_v48 = vpop.trf.xlu1  ;;  %v9657_v58 = vpop.trf.xlu0 }
 0xa8c   : > { %10644 = vst [vmem:[#allocation15_spill] sm:$0xff] %v9647_v48  ;;  %10649 = vst [vmem:[#allocation20_spill] sm:$0xff] %v9657_v58 }
 0xa8f   : > { %v9651_v60 = vpop.trf.xlu1  ;;  %v9661_v0 = vpop.trf.xlu0 }
 0xa90   : > { %10646 = vst [vmem:[#allocation17_spill] sm:$0xff] %v9651_v60  ;;  %10651 = vst [vmem:[#allocation22_spill] sm:$0xff] %v9661_v0 }
 0xa93   : > { %v9655_v61 = vpop.trf.xlu1 }
 0xa94   : > { %10648 = vst [vmem:[#allocation19_spill] sm:$0xff] %v9655_v61 }
 0xaad   : > { %v9659_v51 = vpop.permute.xlu1 %3577 }
 0xaae   : > { %10650 = vst [vmem:[#allocation21_spill] sm:$0xff] %v9659_v51  ;;  %v3708_v32 = vadd.f32 %v9562_v40, %v9659_v51 }
 0xab0   : > { %v3742_v62 = vadd.f32 %v3708_v32, %v9326_v17 }
 0xab1   : > { %v9665_v42 = vpop.permute.xlu1 %3581 }
 0xab2   : > { %10652 = vst [vmem:[#allocation27_spill] sm:$0xff] %v9665_v42  ;;  %v3713_v9 = vadd.f32 %v9568_v50, %v9665_v42  ;;  %v3750_v50 = vsel %vm688_vm1, %v3742_v62, 0.0 }
 0xab4   : > { %v9669_v12 = vpop.permute.xlu0 %3573  ;;  %v3743_v26 = vadd.f32 %v3713_v9, %v9319_v57 }
 0xab5   : > { %10653 = vst [vmem:[#allocation23_spill] sm:$0xff] %v9669_v12  ;;  %v3703_v49 = vadd.f32 %v9564_v54, %v9669_v12  ;;  %v9674_v52 = vpop.permute.xlu1 %3585 }
 0xab6   : > { %10654 = vst [vmem:[#allocation24_spill] sm:$0xff] %v9674_v52  ;;  %v3718_v24 = vadd.f32 %v9566_v59, %v9674_v52  ;;  %v3752_v57 = vsel %vm688_vm1, %v3743_v26, 0.0 }
 0xab7   : > { %v3741_v40 = vadd.f32 %v3703_v49, %v9334_v56 }
 0xab8   : > { %v9680_v51 = vpop.permute.xlu0 %3589  ;;  %v3744_v17 = vadd.f32 %v3718_v24, %v9311_v28 }
 0xab9   : > { %10655 = vst [vmem:[#allocation25_spill] sm:$0xff] %v9680_v51  ;;  %v3749_v42 = vsel %vm688_vm1, %v3741_v40, 0.0  ;;  %v3723_v32 = vadd.f32 %v9572_v22, %v9680_v51  ;;  %v9687_v54 = vpop.permute.xlu1 %3593 }
 0xaba   : > { %10656 = vst [vmem:[#allocation31_spill] sm:$0xff] %v9687_v54  ;;  %v3751_v12 = vadd.f32 %v3750_v50, %v3749_v42  ;;  %v3728_v59 = vadd.f32 %v9570_v2, %v9687_v54  ;;  %v3754_v52 = vsel %vm688_vm1, %v3744_v17, 0.0 }
 0xabb   : > { %v3745_v56 = vadd.f32 %v3723_v32, %v9303_v31 }
 0xabc   : > { %v3753_v49 = vadd.f32 %v3752_v57, %v3751_v12  ;;  %v9693_v9 = vpop.permute.xlu0 %3597  ;;  %v3746_v28 = vadd.f32 %v3728_v59, %v9295_v38 }
 0xabd   : > { %10657 = vst [vmem:[#allocation32_spill] sm:$0xff] %v9693_v9  ;;  %v3733_v24 = vadd.f32 %v9576_v20, %v9693_v9  ;;  %v9699_v22 = vpop.permute.xlu1 %3601  ;;  %v3756_v50 = vsel %vm688_vm1, %v3745_v56, 0.0 }
 0xabe   : > { %10658 = vst [vmem:[#allocation33_spill] sm:$0xff] %v9699_v22  ;;  %v3755_v42 = vadd.f32 %v3754_v52, %v3753_v49  ;;  %v3738_v2 = vadd.f32 %v9574_v10, %v9699_v22  ;;  %v3758_v32 = vsel %vm688_vm1, %v3746_v28, 0.0 }
 0xabf   : > { %v3747_v31 = vadd.f32 %v3733_v24, %v9288_v1 }
 0xac0   : > { %v3757_v12 = vadd.f32 %v3756_v50, %v3755_v42  ;;  %v3748_v57 = vadd.f32 %v3738_v2, %v9281_v25 }
 0xac1   : > { %v3760_v38 = vsel %vm688_vm1, %v3747_v31, 0.0 }
 0xac2   : > { %v3759_v51 = vadd.f32 %v3758_v32, %v3757_v12  ;;  %v3762_v20 = vsel %vm688_vm1, %v3748_v57, 0.0  ;;  %v9709_v32 = vpop.permute.xlu1 %3824 }
 0xac3   : > { %10659 = vst [vmem:[#allocation44_spill] sm:$0xff] %v9709_v32 }
 0xac4   : > { %v3761_v59 = vadd.f32 %v3760_v38, %v3759_v51 }
 0xac6   : > { %v3763_v9 = vadd.f32 %v3762_v20, %v3761_v59 }
 0xac8   : > { %v3764_v52 = vrot.slane %v3763_v9, 4 }
 0xaca   : > { %v3765_v49 = vadd.f32 %v3764_v52, %v3763_v9  ;;  %v9715_v52 = vpop.permute.xlu1 %3828 }
 0xacb   : > { %10660 = vst [vmem:[#allocation45_spill] sm:$0xff] %v9715_v52 }
 0xacc   : > { %v3766_v54 = vrot.slane %v3765_v49, 2 }
 0xace   : > { %v3767_v10 = vadd.f32 %v3766_v54, %v3765_v49 }
 0xad0   : > { %v3768_v22 = vrot.slane %v3767_v10, 1 }
 0xad2   : > { %v3769_v61 = vadd.f32 %v3768_v22, %v3767_v10 }
 0xad4   : > { %v3770_v60 = vmul.f32 0.015625, %v3769_v61 }
 0xad6   : > { %v3771_v1 = vsub.f32 %v3741_v40, %v3770_v60  ;;  %v3773_v24 = vsub.f32 %v3743_v26, %v3770_v60  ;;  %v3774_v42 = vsub.f32 %v3744_v17, %v3770_v60  ;;  %v3772_v50 = vsub.f32 %v3742_v62, %v3770_v60 }
 0xad7   : > { %v3775_v25 = vsub.f32 %v3745_v56, %v3770_v60  ;;  %v3776_v38 = vsub.f32 %v3746_v28, %v3770_v60  ;;  %v3777_v20 = vsub.f32 %v3747_v31, %v3770_v60  ;;  %v3778_v40 = vsub.f32 %v3748_v57, %v3770_v60  ;;  %v9722_v60 = vpop.permute.xlu0 %3820 }
 0xad8   : > { %v3779_v48 = vmul.f32 %v3771_v1, %v3771_v1  ;;  %v3780_v2 = vmul.f32 %v3772_v50, %v3772_v50  ;;  %v3781_v12 = vmul.f32 %v3773_v24, %v3773_v24  ;;  %v3782_v59 = vmul.f32 %v3774_v42, %v3774_v42  ;;  %10662 = vst [vmem:[#allocation124_spill] sm:$0xff] %v9722_v60 }
 0xad9   : > { %v3783_v22 = vmul.f32 %v3775_v25, %v3775_v25  ;;  %v3784_v62 = vmul.f32 %v3776_v38, %v3776_v38  ;;  %v3785_v49 = vmul.f32 %v3777_v20, %v3777_v20  ;;  %v3786_v10 = vmul.f32 %v3778_v40, %v3778_v40 }
 0xada   : > { %v3787_v51 = vsel %vm688_vm1, %v3779_v48, 0.0  ;;  %v3788_v9 = vsel %vm688_vm1, %v3780_v2, 0.0  ;;  %v3790_v61 = vsel %vm688_vm1, %v3781_v12, 0.0  ;;  %v3792_v17 = vsel %vm688_vm1, %v3782_v59, 0.0  ;;  %v9720_v12 = vpop.permute.xlu1 %3836 }
 0xadb   : > { %v3789_v54 = vadd.f32 %v3788_v9, %v3787_v51  ;;  %v3794_v48 = vsel %vm688_vm1, %v3783_v22, 0.0  ;;  %v3796_v2 = vsel %vm688_vm1, %v3784_v62, 0.0  ;;  %v3798_v31 = vsel %vm688_vm1, %v3785_v49, 0.0  ;;  %10661 = vst [vmem:[#allocation34_spill] sm:$0xff] %v9720_v12  ;;  %v9727_v22 = vpop.permute.xlu0 %3832 }
 0xadc   : > { %v3800_v57 = vsel %vm688_vm1, %v3786_v10, 0.0  ;;  %10664 = vst [vmem:[#allocation126_spill] sm:$0xff] %v9727_v22 }
 0xadd   : > { %v3791_v26 = vadd.f32 %v3790_v61, %v3789_v54 }
 0xadf   : > { %v3793_v56 = vadd.f32 %v3792_v17, %v3791_v26  ;;  %v9725_v26 = vpop.permute.xlu1 %3844  ;;  %v9731_v49 = vpop.permute.xlu0 %3840 }
 0xae0   : > { %10663 = vst [vmem:[#allocation125_spill] sm:$0xff] %v9725_v26  ;;  %10666 = vst [vmem:[#allocation128_spill] sm:$0xff] %v9731_v49 }
 0xae1   : > { %v3795_v28 = vadd.f32 %v3794_v48, %v3793_v56 }
 0xae3   : > { %v3797_v51 = vadd.f32 %v3796_v2, %v3795_v28  ;;  %v9729_v48 = vpop.permute.xlu1 %3860  ;;  %v9735_v10 = vpop.permute.xlu0 %3848 }
 0xae4   : > { %10665 = vst [vmem:[#allocation127_spill] sm:$0xff] %v9729_v48  ;;  %10668 = vst [vmem:[#allocation130_spill] sm:$0xff] %v9735_v10 }
 0xae5   : > { %v3799_v9 = vadd.f32 %v3798_v31, %v3797_v51 }
 0xae7   : > { %v3801_v59 = vadd.f32 %v3800_v57, %v3799_v9  ;;  %v9733_v31 = vpop.permute.xlu1 %3868  ;;  %v9739_v57 = vpop.permute.xlu0 %3864 }
 0xae8   : > { %10667 = vst [vmem:[#allocation129_spill] sm:$0xff] %v9733_v31  ;;  %10670 = vst [vmem:[#allocation132_spill] sm:$0xff] %v9739_v57 }
 0xae9   : > { %v3802_v54 = vrot.slane %v3801_v59, 4 }
 0xaeb   : > { %v3803_v61 = vadd.f32 %v3802_v54, %v3801_v59  ;;  %v9737_v9 = vpop.permute.xlu1 %3872  ;;  %v9743_v54 = vpop.permute.xlu0 %3876 }
 0xaec   : > { %10669 = vst [vmem:[#allocation131_spill] sm:$0xff] %v9737_v9  ;;  %10672 = vst [vmem:[#allocation134_spill] sm:$0xff] %v9743_v54 }
 0xaed   : > { %v3804_v17 = vrot.slane %v3803_v61, 2 }
 0xaef   : > { %v3805_v56 = vadd.f32 %v3804_v17, %v3803_v61  ;;  %v9741_v59 = vpop.permute.xlu1 %3880  ;;  %v9745_v61 = vpop.f32.mrf.mxu1 }
 0xaf0   : > { %10671 = vst [vmem:[#allocation133_spill] sm:$0xff] %v9741_v59 }
 0xaf1   : > { %v3806_v62 = vrot.slane %v3805_v56, 1 }
 0xaf3   : > { %v3807_v28 = vadd.f32 %v3806_v62, %v3805_v56  ;;  %v9753_v7 = vpop.permute.xlu1 %3888 }
 0xaf4   : > { %10673 = vst [vmem:[#allocation135_spill] sm:$0xff] %v9753_v7 }
 0xaf5   : > { %v3808_v2 = vmul.f32 0.015625, %v3807_v28 }
 0xaf7   : > { %v3809_v51 = vadd.f32 1e-05, %v3808_v2  ;;  %v9747_v2 = vpop.f32.mrf.mxu1 }
 0xaf9   : > { %7994 = vrsqrt.f32 %v3809_v51 }
 0xb06   : > { %v7995_v17 = vpop.eup %7994 }
 0xb07   : > { %v3812_v3 = vmul.f32 %v7995_v17, %v3772_v50  ;;  %v3813_v56 = vmul.f32 %v7995_v17, %v3773_v24  ;;  %v3815_v62 = vmul.f32 %v7995_v17, %v3775_v25  ;;  %v3811_v28 = vmul.f32 %v7995_v17, %v3771_v1  ;;  %v9755_v50 = vpop.permute.xlu0 %3884 }
 0xb08   : > { %v3817_v5 = vmul.f32 %v7995_v17, %v3777_v20  ;;  %v3814_v37 = vmul.f32 %v7995_v17, %v3774_v42  ;;  %v3816_v51 = vmul.f32 %v7995_v17, %v3776_v38  ;;  %v3818_v53 = vmul.f32 %v7995_v17, %v3778_v40  ;;  %10674 = vst [vmem:[#allocation136_spill] sm:$0xff] %v9755_v50 }
 0xb09   : > { %v3852_v18 = vmul.f32 %v9709_v32, %v3812_v3  ;;  %v3853_v0 = vmul.f32 %v9715_v52, %v3813_v56  ;;  %v3855_v58 = vmul.f32 %v9720_v12, %v3815_v62  ;;  %v3851_v43 = vmul.f32 %v9722_v60, %v3811_v28  ;;  %v9769_v62 = vpop.f32.mrf.mxu1 }
 0xb0a   : > { %v3857_v1 = vmul.f32 %v9725_v26, %v3817_v5  ;;  %v3854_v24 = vmul.f32 %v9727_v22, %v3814_v37  ;;  %v3856_v42 = vmul.f32 %v9731_v49, %v3816_v51  ;;  %v3858_v25 = vmul.f32 %v9735_v10, %v3818_v53 }
 0xb0b   : > { %v3891_v3 = vadd.f32 %v9729_v48, %v3851_v43  ;;  %v3893_v38 = vadd.f32 %v9733_v31, %v3853_v0  ;;  %v3892_v20 = vadd.f32 %v9739_v57, %v3852_v18  ;;  %v3895_v40 = vadd.f32 %v9743_v54, %v3855_v58  ;;  %v9803_v43 = vpop.f32.mrf.mxu1 }
 0xb0c   : > { %v3894_v17 = vadd.f32 %v9737_v9, %v3854_v24  ;;  %v3896_v56 = vadd.f32 %v9741_v59, %v3856_v42  ;;  %v3898_v5 = vadd.f32 %v9753_v7, %v3858_v25  ;;  %v3897_v37 = vadd.f32 %v9755_v50, %v3857_v1 }
 0xb0d   : > { %3899 = vst.msk [vmem:[%s10317_s11] sm:$0xff] %vm688_vm1, %v3891_v3  ;;  %3901 = vst.msk [vmem:[%s10317_s11 + $0x10] sm:$0xff] %vm688_vm1, %v3893_v38  ;;  %v9805_v0 = vpop.f32.mrf.mxu1 }
 0xb0e   : > { %3900 = vst.msk [vmem:[%s10317_s11 + $0x8] sm:$0xff] %vm688_vm1, %v3892_v20  ;;  %3903 = vst.msk [vmem:[%s10317_s11 + $0x20] sm:$0xff] %vm688_vm1, %v3895_v40 }
 0xb0f   : > { %3902 = vst.msk [vmem:[%s10317_s11 + $0x18] sm:$0xff] %vm688_vm1, %v3894_v17  ;;  %3904 = vst.msk [vmem:[%s10317_s11 + $0x28] sm:$0xff] %vm688_vm1, %v3896_v56  ;;  %v9807_v58 = vpop.f32.mrf.mxu1 }
 0xb10   : > { %3906 = vst.msk [vmem:[%s10317_s11 + $0x38] sm:$0xff] %vm688_vm1, %v3898_v5  ;;  %3905 = vst.msk [vmem:[%s10317_s11 + $0x30] sm:$0xff] %vm688_vm1, %v3897_v37 }
 0xb18   : > { %v7586_v18 = vpop.f32.mrf.mxu1 }
 0xb19   : > { %v4346_v56 = vsel %vm688_vm1, %v7586_v18, -inf }
 0xb1a   : > { %v4306_v53 = vpop.f32.mrf.mxu1 }
 0xb1b   : > { %v4345_v3 = vsel %vm688_vm1, %v4306_v53, -inf }
 0xb20   : > { %v7589_v28 = vpop.f32.mrf.mxu1 }
 0xb21   : > { %v4348_v5 = vsel %vm688_vm1, %v7589_v28, -inf }
 0xb22   : > { %v4316_v51 = vpop.f32.mrf.mxu1 }
 0xb23   : > { %v4347_v37 = vsel %vm688_vm1, %v4316_v51, -inf }
 0xb28   : > { %v7592_v1 = vpop.f32.mrf.mxu1 }
 0xb29   : > { %v4351_v38 = vsel %vm688_vm1, %v7592_v1, -inf }
 0xb2a   : > { %v4326_v24 = vpop.f32.mrf.mxu1  ;;  %v4352_v50 = vmax.f32 %v4346_v56, %v4351_v38 }
 0xb2b   : > { %v4349_v42 = vsel %vm688_vm1, %v4326_v24, -inf }
 0xb2c   : > { %v4350_v40 = vmax.f32 %v4345_v3, %v4349_v42 }
 0xb2e   : > { %v4357_v9 = vmax.f32 %v4350_v40, %v4352_v50 }
 0xb30   : > { %v7595_v25 = vpop.f32.mrf.mxu1 }
 0xb31   : > { %v4355_v20 = vsel %vm688_vm1, %v7595_v25, -inf }
 0xb32   : > { %v4336_v17 = vpop.f32.mrf.mxu1  ;;  %v4356_v59 = vmax.f32 %v4348_v5, %v4355_v20 }
 0xb33   : > { %v4353_v7 = vsel %vm688_vm1, %v4336_v17, -inf }
 0xb34   : > { %v4354_v54 = vmax.f32 %v4347_v37, %v4353_v7 }
 0xb36   : > { %v4358_v31 = vmax.f32 %v4354_v54, %v4356_v59 }
 0xb38   : > { %v4359_v57 = vmax.f32 %v4357_v9, %v4358_v31 }
 0xb3a   : > { %v4360_v48 = vrot.slane %v4359_v57, 4 }
 0xb3c   : > { %v4361_v10 = vmax.f32 %v4359_v57, %v4360_v48 }
 0xb3e   : > { %v4362_v26 = vrot.slane %v4361_v10, 2 }
 0xb40   : > { %v4363_v49 = vmax.f32 %v4361_v10, %v4362_v26 }
 0xb42   : > { %v4364_v42 = vrot.slane %v4363_v49, 1 }
 0xb44   : > { %v4365_v3 = vmax.f32 %v4363_v49, %v4364_v42 }
 0xb46   : > { %v4366_v12 = vsub.f32 %v4306_v53, %v4365_v3  ;;  %v4367_v22 = vsub.f32 %v7586_v18, %v4365_v3  ;;  %v4368_v52 = vsub.f32 %v4316_v51, %v4365_v3  ;;  %v4369_v32 = vsub.f32 %v7589_v28, %v4365_v3 }
 0xb47   : > { %v4370_v60 = vsub.f32 %v4326_v24, %v4365_v3  ;;  %v4371_v38 = vsub.f32 %v7592_v1, %v4365_v3  ;;  %v4372_v7 = vsub.f32 %v4336_v17, %v4365_v3  ;;  %v4373_v26 = vsub.f32 %v7595_v25, %v4365_v3 }
 0xb48   : > { %v4374_v13 = vmul.f32 1.442695, %v4366_v12  ;;  %v4376_v41 = vmul.f32 1.442695, %v4367_v22  ;;  %v4378_v16 = vmul.f32 1.442695, %v4368_v52 }
 0xb49   : > { %v4380_v20 = vmul.f32 1.442695, %v4369_v32  ;;  %v4382_v31 = vmul.f32 1.442695, %v4370_v60  ;;  %v4384_v48 = vmul.f32 1.442695, %v4371_v38 }
 0xb4a   : > { %7996 = vpow2.f32 %v4374_v13  ;;  %v4386_v49 = vmul.f32 1.442695, %v4372_v7  ;;  %v4388_v10 = vmul.f32 1.442695, %v4373_v26 }
 0xb4b   : > { %7998 = vpow2.f32 %v4376_v41 }
 0xb4c   : > { %8000 = vpow2.f32 %v4378_v16 }
 0xb4d   : > { %8002 = vpow2.f32 %v4380_v20 }
 0xb4e   : > { %8004 = vpow2.f32 %v4382_v31 }
 0xb4f   : > { %8006 = vpow2.f32 %v4384_v48 }
 0xb50   : > { %8008 = vpow2.f32 %v4386_v49 }
 0xb51   : > { %8010 = vpow2.f32 %v4388_v10 }
 0xb57   : > { %v7997_v9 = vpop.eup %7996 }
 0xb58   : > { %v7999_v12 = vpop.eup %7998  ;;  %v4390_v52 = vsel %vm688_vm1, %v7997_v9, 0.0 }
 0xb59   : > { %v8001_v22 = vpop.eup %8000  ;;  %v4391_v13 = vsel %vm688_vm1, %v7999_v12, 0.0 }
 0xb5a   : > { %v8003_v32 = vpop.eup %8002  ;;  %v4392_v41 = vadd.f32 %v4391_v13, %v4390_v52  ;;  %v4393_v16 = vsel %vm688_vm1, %v8001_v22, 0.0 }
 0xb5b   : > { %v8005_v60 = vpop.eup %8004  ;;  %v4395_v59 = vsel %vm688_vm1, %v8003_v32, 0.0 }
 0xb5c   : > { %v4394_v57 = vadd.f32 %v4393_v16, %v4392_v41  ;;  %v8007_v54 = vpop.eup %8006  ;;  %v4397_v18 = vsel %vm688_vm1, %v8005_v60, 0.0  ;;  %v10675_v16 = vld [vmem:[#allocation29_spill] sm:$0xff] }
 0xb5d   : > { %v8009_v53 = vpop.eup %8008  ;;  %v4399_v51 = vsel %vm688_vm1, %v8007_v54, 0.0 }
 0xb5e   : > { %v4396_v50 = vadd.f32 %v4395_v59, %v4394_v57  ;;  %v8011_v1 = vpop.eup %8010  ;;  %v4401_v25 = vsel %vm688_vm1, %v8009_v53, 0.0  ;;  %v4016_v57 = vadd.f32 %v9745_v61, %v10675_v16  ;;  %v4151_v59 = vadd.f32 %v9582_v29, %v8608_v33 }
 0xb5f   : > { %v4403_v17 = vsel %vm688_vm1, %v8011_v1, 0.0 }
 0xb60   : > { %v4398_v28 = vadd.f32 %v4397_v18, %v4396_v50 }
 0xb62   : > { %v4400_v24 = vadd.f32 %v4399_v51, %v4398_v28 }
 0xb64   : > { %v4402_v40 = vadd.f32 %v4401_v25, %v4400_v24 }
 0xb66   : > { %v4404_v56 = vadd.f32 %v4403_v17, %v4402_v40 }
 0xb68   : > { %v4405_v5 = vrot.slane %v4404_v56, 4 }
 0xb6a   : > { %v4406_v37 = vadd.f32 %v4405_v5, %v4404_v56 }
 0xb6c   : > { %v4407_v42 = vrot.slane %v4406_v37, 2 }
 0xb6e   : > { %v4408_v3 = vadd.f32 %v4407_v42, %v4406_v37 }
 0xb70   : > { %v4409_v38 = vrot.slane %v4408_v3, 1 }
 0xb72   : > { %v4410_v20 = vadd.f32 %v4409_v38, %v4408_v3 }
 0xb74   : > { %8012 = vrcp.f32 %v4410_v20 }
 0xb81   : > { %v8013_v7 = vpop.eup %8012 }
 0xb82   : > { %v4419_v31 = vmul.f32 %v8013_v7, %v8011_v1  ;;  %v4418_v48 = vmul.f32 %v8013_v7, %v8009_v53  ;;  %v4417_v26 = vmul.f32 %v8013_v7, %v8007_v54  ;;  %v4416_v49 = vmul.f32 %v8013_v7, %v8005_v60  ;;  %v10676_v60 = vld [vmem:[#allocation30_spill] sm:$0xff] }
 0xb83   : > { %v4415_v10 = vmul.f32 %v8013_v7, %v8003_v32  ;;  %v4414_v52 = vmul.f32 %v8013_v7, %v8001_v22  ;;  %v4413_v13 = vmul.f32 %v8013_v7, %v7999_v12  ;;  %v4412_v41 = vmul.f32 %v8013_v7, %v7997_v9 }
 0xb84   : > { %7596 = vmatprep.subr.mxu1 %v4419_v31  ;;  %v4011_v32 = vadd.f32 %v9747_v2, %v10676_v60 }
 0xb85   : > { %7597 = vmatpush3.msra.mxu1 %v4419_v31 }
 0xb86   : > { %7598 = vmatprep.subr.mxu1 %v4418_v48 }
 0xb87   : > { %7599 = vmatpush3.msra.mxu1 %v4418_v48 }
 0xb88   : > { %7600 = vmatprep.subr.mxu1 %v4417_v26 }
 0xb89   : > { %7601 = vmatpush3.msra.mxu1 %v4417_v26 }
 0xb8a   : > { %7602 = vmatprep.subr.mxu1 %v4416_v49 }
 0xb8b   : > { %7603 = vmatpush3.msra.mxu1 %v4416_v49 }
 0xb8c   : > { %7604 = vmatprep.subr.mxu1 %v4415_v10 }
 0xb8d   : > { %7605 = vmatpush3.msra.mxu1 %v4415_v10 }
 0xb8e   : > { %7606 = vmatprep.subr.mxu1 %v4414_v52 }
 0xb8f   : > { %7607 = vmatpush3.msra.mxu1 %v4414_v52 }
 0xb90   : > { %7608 = vmatprep.subr.mxu1 %v4413_v13 }
 0xb91   : > { %7609 = vmatpush3.msra.mxu1 %v4413_v13 }
 0xb92   : > { %7610 = vmatprep.subr.mxu1 %v4412_v41 }
 0xb93   : > { %7611 = vmatpush3.msra.mxu1 %v4412_v41 }
 0xb94   : > { %7613 = vmatmul.mubr.msk.f32.vlgmr.msra.gmra.mxu1 %vm688_vm1, %v4151_v59  ;;  %7615 = vmatprep.subr.mxu1 %v4016_v57 }
 0xb95   : > { %7616 = vmatpush3.msra.mxu1 %v4016_v57  ;;  %7619 = vmatprep.mubr.msk.f32.mxu1 %vm1155_vm2, %v9603_v21 }
 0xb96   : > { %7617 = vmatprep.subr.mxu1 %v4011_v32 }
 0xb97   : > { %7618 = vmatpush3.msra.mxu1 %v4011_v32 }
 0xb98   : > { %7620 = vmatmul.mubr.msk.f32.vlgmr.msra.gmra.mxu1 %vm1155_vm2, %v9606_v39 }
 0xb99   : > { %7622 = vmatprep.mubr.msk.f32.mxu1 %vm1155_vm2, %v9609_v63 }
 0xb9c   : > { %7623 = vmatmul.mubr.msk.f32.gmra.mxu1 %vm1155_vm2, %v9612_v4  ;;  %v9854_v4 = vpop.f32.mrf.mxu0 }
 0xb9d   : > { %7625 = vmatprep.mubr.msk.f32.mxu1 %vm1155_vm2, %v9615_v14 }
 0xba0   : > { %7626 = vmatmul.mubr.msk.f32.gmra.mxu1 %vm1155_vm2, %v9618_v8  ;;  %v4165_v8 = vpop.f32.mrf.mxu0 }
 0xba1   : > { %7628 = vmatprep.mubr.msk.f32.mxu1 %vm1155_vm2, %v9625_v47  ;;  %v4166_v47 = vadd.f32 %v4165_v8, %v8799_v45 }
 0xba4   : > { %7629 = vmatmul.mubr.msk.f32.gmra.mxu1 %vm1155_vm2, %v9627_v27 }
 0xba5   : > { %7670 = vmatprep.mubr.msk.f32.mxu1 %vm1155_vm2, %v8809_v36 }
 0xc54   : > { %v7614_v33 = vpop.f32.mrf.mxu1 }
 0xc55   : > { %7666 = vmatprep.subr.mxu1 %v7614_v33 }
 0xc56   : > { %v4492_v63 = vpop.f32.mrf.mxu1  ;;  %7667 = vmatpush3.msra.mxu1 %v7614_v33 }
 0xc57   : > { %7668 = vmatprep.subr.mxu1 %v4492_v63 }
 0xc58   : > { %v7621_v29 = vpop.f32.mrf.mxu1  ;;  %7669 = vmatpush3.msra.mxu1 %v4492_v63 }
 0xc59   : > { %7671 = vmatmul.mubr.msk.f32.vlgmr.msra.gmra.mxu1 %vm1155_vm2, %v8814_v34 }
 0xc5a   : > { %v4623_v21 = vpop.f32.mrf.mxu1  ;;  %7673 = vmatprep.mubr.msk.f32.mxu1 %vm1155_vm2, %v8816_v46 }
 0xc5c   : > { %v7624_v39 = vpop.f32.mrf.mxu1 }
 0xc5d   : > { %7674 = vmatmul.mubr.msk.f32.gmra.mxu1 %vm1155_vm2, %v8820_v11  ;;  %v4662_v11 = vsel %vm688_vm1, %v4623_v21, -inf  ;;  %v4665_v9 = vsel %vm688_vm1, %v7624_v39, -inf }
 0xc5e   : > { %v4633_v36 = vpop.f32.mrf.mxu1  ;;  %7676 = vmatprep.mubr.msk.f32.mxu1 %vm1155_vm2, %v8826_v55 }
 0xc5f   : > { %v4664_v45 = vsel %vm688_vm1, %v4633_v36, -inf }
 0xc60   : > { %v7627_v14 = vpop.f32.mrf.mxu1 }
 0xc61   : > { %7677 = vmatmul.mubr.msk.f32.gmra.mxu1 %vm1155_vm2, %v8828_v6  ;;  %v4668_v61 = vsel %vm688_vm1, %v7627_v14, -inf }
 0xc62   : > { %v4643_v34 = vpop.f32.mrf.mxu1  ;;  %7679 = vmatprep.mubr.msk.f32.mxu1 %vm1155_vm2, %v8836_v19  ;;  %v4663_v19 = vsel %vm688_vm1, %v7621_v29, -inf }
 0xc63   : > { %v4666_v46 = vsel %vm688_vm1, %v4643_v34, -inf  ;;  %v4669_v22 = vmax.f32 %v4663_v19, %v4668_v61 }
 0xc64   : > { %v7630_v27 = vpop.f32.mrf.mxu1  ;;  %v4667_v2 = vmax.f32 %v4662_v11, %v4666_v46 }
 0xc65   : > { %v4672_v55 = vsel %vm688_vm1, %v7630_v27, -inf  ;;  %7680 = vmatmul.mubr.msk.f32.gmra.mxu1 %vm1155_vm2, %v8845_v23 }
 0xc66   : > { %v4653_v6 = vpop.f32.mrf.mxu1  ;;  %7714 = vmatprep.mubr.msk.f32.mxu1 %vm688_vm1, %v4166_v47  ;;  %v4673_v54 = vmax.f32 %v4665_v9, %v4672_v55  ;;  %v4674_v18 = vmax.f32 %v4667_v2, %v4669_v22 }
 0xc67   : > { %v4670_v12 = vsel %vm688_vm1, %v4653_v6, -inf }
 0xc68   : > { %v4671_v50 = vmax.f32 %v4664_v45, %v4670_v12 }
 0xc6a   : > { %v4675_v53 = vmax.f32 %v4671_v50, %v4673_v54 }
 0xc6c   : > { %v4676_v28 = vmax.f32 %v4674_v18, %v4675_v53 }
 0xc6e   : > { %v4677_v51 = vrot.slane %v4676_v28, 4 }
 0xc70   : > { %v4678_v23 = vmax.f32 %v4676_v28, %v4677_v51 }
 0xc72   : > { %v4679_v1 = vrot.slane %v4678_v23, 2 }
 0xc74   : > { %v4680_v24 = vmax.f32 %v4678_v23, %v4679_v1 }
 0xc76   : > { %v4681_v25 = vrot.slane %v4680_v24, 1 }
 0xc78   : > { %v4682_v40 = vmax.f32 %v4680_v24, %v4681_v25 }
 0xc7a   : > { %v4683_v17 = vsub.f32 %v4623_v21, %v4682_v40  ;;  %v4684_v56 = vsub.f32 %v7621_v29, %v4682_v40  ;;  %v4685_v5 = vsub.f32 %v4633_v36, %v4682_v40  ;;  %v4686_v37 = vsub.f32 %v7624_v39, %v4682_v40 }
 0xc7b   : > { %v4687_v42 = vsub.f32 %v4643_v34, %v4682_v40  ;;  %v4688_v7 = vsub.f32 %v7627_v14, %v4682_v40  ;;  %v4689_v48 = vsub.f32 %v4653_v6, %v4682_v40  ;;  %v4690_v10 = vsub.f32 %v7630_v27, %v4682_v40 }
 0xc7c   : > { %v4691_v3 = vmul.f32 1.442695, %v4683_v17  ;;  %v4693_v38 = vmul.f32 1.442695, %v4684_v56  ;;  %v4695_v20 = vmul.f32 1.442695, %v4685_v5  ;;  %v4161_v40 = vadd.f32 %v9586_v15, %v8604_v30  ;;  %v9889_v17 = vpop.f32.mrf.mxu0 }
 0xc7d   : > { %v4697_v31 = vmul.f32 1.442695, %v4686_v37  ;;  %v4699_v26 = vmul.f32 1.442695, %v4687_v42  ;;  %v4701_v49 = vmul.f32 1.442695, %v4688_v7 }
 0xc7e   : > { %8014 = vpow2.f32 %v4691_v3  ;;  %v4703_v52 = vmul.f32 1.442695, %v4689_v48  ;;  %v4705_v13 = vmul.f32 1.442695, %v4690_v10  ;;  %v9891_v56 = vpop.f32.mrf.mxu0  ;;  %v10677_v42 = vld [vmem:[#allocation36_spill] sm:$0xff]  ;;  %v10678_v30 = vld [vmem:[#allocation35_spill] sm:$0xff] }
 0xc7f   : > { %8016 = vpow2.f32 %v4693_v38  ;;  %v4026_v3 = vadd.f32 %v9769_v62, %v10677_v42  ;;  %v4021_v15 = vadd.f32 %v9803_v43, %v10678_v30  ;;  %v10679_v38 = vld [vmem:[#allocation37_spill] sm:$0xff]  ;;  %v10683_v62 = vld [vmem:[#allocation40_spill] sm:$0xff]  ;;  %v10685_v48 = vld [vmem:[#allocation42_spill] sm:$0xff] }
 0xc80   : > { %8018 = vpow2.f32 %v4695_v20  ;;  %v10681_v20 = vld [vmem:[#allocation48_spill] sm:$0xff]  ;;  %v10684_v43 = vld [vmem:[#allocation41_spill] sm:$0xff] }
 0xc81   : > { %8020 = vpow2.f32 %v4697_v31  ;;  %v4036_v7 = vadd.f32 %v9805_v0, %v10681_v20  ;;  %v10682_v31 = vld [vmem:[#allocation39_spill] sm:$0xff]  ;;  %v10687_v0 = vld [vmem:[#allocation46_spill] sm:$0xff]  ;;  %v10688_v10 = vld [vmem:[#allocation5_spill] sm:$0xff] }
 0xc82   : > { %8022 = vpow2.f32 %v4699_v26  ;;  %v10686_v26 = vld [vmem:[#allocation43_spill] sm:$0xff] }
 0xc83   : > { %8024 = vpow2.f32 %v4701_v49  ;;  %v4031_v49 = vadd.f32 %v9807_v58, %v10687_v0  ;;  %v10694_v58 = vld [vmem:[#allocation22_spill] sm:$0xff] }
 0xc84   : > { %8026 = vpow2.f32 %v4703_v52  ;;  %v10689_v52 = vld [vmem:[#allocation9_spill] sm:$0xff] }
 0xc85   : > { %8028 = vpow2.f32 %v4705_v13  ;;  %v10690_v13 = vld [vmem:[#allocation13_spill] sm:$0xff] }
 0xc8b   : > { %v8015_v41 = vpop.eup %8014 }
 0xc8c   : > { %v8017_v16 = vpop.eup %8016  ;;  %v4707_v57 = vsel %vm688_vm1, %v8015_v41, 0.0 }
 0xc8d   : > { %v8019_v59 = vpop.eup %8018  ;;  %v4708_v60 = vsel %vm688_vm1, %v8017_v16, 0.0 }
 0xc8e   : > { %v8021_v32 = vpop.eup %8020  ;;  %v4709_v33 = vadd.f32 %v4708_v60, %v4707_v57  ;;  %v4710_v63 = vsel %vm688_vm1, %v8019_v59, 0.0  ;;  %v10695_v57 = vld [vmem:[#allocation2_spill] sm:$0xff]  ;;  %v10697_v60 = vld [vmem:[#allocation4_spill] sm:$0xff] }
 0xc8f   : > { %v8023_v29 = vpop.eup %8022  ;;  %v4712_v39 = vsel %vm688_vm1, %v8021_v32, 0.0 }
 0xc90   : > { %v4711_v21 = vadd.f32 %v4710_v63, %v4709_v33  ;;  %v8025_v36 = vpop.eup %8024  ;;  %v4714_v8 = vsel %vm688_vm1, %v8023_v29, 0.0  ;;  %v10699_v33 = vld [vmem:[#allocation11_spill] sm:$0xff] }
 0xc91   : > { %v8027_v34 = vpop.eup %8026  ;;  %v4716_v47 = vsel %vm688_vm1, %v8025_v36, 0.0  ;;  %v10700_v63 = vld [vmem:[#allocation15_spill] sm:$0xff] }
 0xc92   : > { %v4713_v14 = vadd.f32 %v4712_v39, %v4711_v21  ;;  %v8029_v27 = vpop.eup %8028  ;;  %v4718_v61 = vsel %vm688_vm1, %v8027_v34, 0.0  ;;  %v10702_v21 = vld [vmem:[#allocation19_spill] sm:$0xff] }
 0xc93   : > { %v4720_v2 = vsel %vm688_vm1, %v8029_v27, 0.0  ;;  %v10703_v39 = vld [vmem:[#allocation75_spill] sm:$0xff] }
 0xc94   : > { %v4715_v46 = vadd.f32 %v4714_v8, %v4713_v14 }
 0xc96   : > { %v4717_v11 = vadd.f32 %v4716_v47, %v4715_v46 }
 0xc98   : > { %v4719_v55 = vadd.f32 %v4718_v61, %v4717_v11 }
 0xc9a   : > { %v4721_v6 = vadd.f32 %v4720_v2, %v4719_v55 }
 0xc9c   : > { %v4722_v19 = vrot.slane %v4721_v6, 4 }
 0xc9e   : > { %v4723_v9 = vadd.f32 %v4722_v19, %v4721_v6 }
 0xca0   : > { %v4724_v45 = vrot.slane %v4723_v9, 2 }
 0xca2   : > { %v4725_v12 = vadd.f32 %v4724_v45, %v4723_v9 }
 0xca4   : > { %v4726_v22 = vrot.slane %v4725_v12, 1 }
 0xca6   : > { %v4727_v54 = vadd.f32 %v4726_v22, %v4725_v12 }
 0xca8   : > { %8030 = vrcp.f32 %v4727_v54 }
 0xcb5   : > { %v8031_v50 = vpop.eup %8030 }
 0xcb6   : > { %v4736_v18 = vmul.f32 %v8031_v50, %v8029_v27  ;;  %v4735_v53 = vmul.f32 %v8031_v50, %v8027_v34  ;;  %v4734_v28 = vmul.f32 %v8031_v50, %v8025_v36  ;;  %v4733_v51 = vmul.f32 %v8031_v50, %v8023_v29  ;;  %v10701_v29 = vld [vmem:[#allocation17_spill] sm:$0xff] }
 0xcb7   : > { %v4732_v23 = vmul.f32 %v8031_v50, %v8021_v32  ;;  %v4731_v1 = vmul.f32 %v8031_v50, %v8019_v59  ;;  %v4730_v24 = vmul.f32 %v8031_v50, %v8017_v16  ;;  %v4729_v25 = vmul.f32 %v8031_v50, %v8015_v41  ;;  %v10691_v41 = vld [vmem:[#allocation16_spill] sm:$0xff]  ;;  %v10692_v16 = vld [vmem:[#allocation18_spill] sm:$0xff]  ;;  %v10696_v59 = vld [vmem:[#allocation3_spill] sm:$0xff] }
 0xcb8   : > { %7631 = vmatprep.subr.mxu0 %v4736_v18  ;;  %v10698_v32 = vld [vmem:[#allocation7_spill] sm:$0xff] }
 0xcb9   : > { %7632 = vmatpush3.msra.mxu0 %v4736_v18 }
 0xcba   : > { %7633 = vmatprep.subr.mxu0 %v4735_v53 }
 0xcbb   : > { %7634 = vmatpush3.msra.mxu0 %v4735_v53 }
 0xcbc   : > { %7635 = vmatprep.subr.mxu0 %v4734_v28 }
 0xcbd   : > { %7636 = vmatpush3.msra.mxu0 %v4734_v28 }
 0xcbe   : > { %7637 = vmatprep.subr.mxu0 %v4733_v51 }
 0xcbf   : > { %7638 = vmatpush3.msra.mxu0 %v4733_v51 }
 0xcc0   : > { %7639 = vmatprep.subr.mxu0 %v4732_v23 }
 0xcc1   : > { %7640 = vmatpush3.msra.mxu0 %v4732_v23 }
 0xcc2   : > { %7641 = vmatprep.subr.mxu0 %v4731_v1 }
 0xcc3   : > { %7642 = vmatpush3.msra.mxu0 %v4731_v1 }
 0xcc4   : > { %7643 = vmatprep.subr.mxu0 %v4730_v24 }
 0xcc5   : > { %7644 = vmatpush3.msra.mxu0 %v4730_v24 }
 0xcc6   : > { %7645 = vmatprep.subr.mxu0 %v4729_v25 }
 0xcc7   : > { %7646 = vmatpush3.msra.mxu0 %v4729_v25 }
 0xcc8   : > { %7648 = vmatmul.mubr.msk.f32.vlgmr.msra.gmra.mxu0 %vm688_vm1, %v4161_v40 }
 0xcc9   : > { %7654 = vmatprep.mubr.msk.f32.mxu0 %vm1155_vm2, %v8622_v44  ;;  %v10680_v44 = vld [vmem:[#allocation38_spill] sm:$0xff] }
 0xd88   : > { %v7649_v5 = vpop.f32.mrf.mxu0 }
 0xd89   : > { %7650 = vmatprep.subr.mxu0 %v7649_v5 }
 0xd8a   : > { %v4809_v37 = vpop.f32.mrf.mxu0  ;;  %7651 = vmatpush3.msra.mxu0 %v7649_v5 }
 0xd8b   : > { %7652 = vmatprep.subr.mxu0 %v4809_v37 }
 0xd8c   : > { %7653 = vmatpush3.msra.mxu0 %v4809_v37 }
 0xd8d   : > { %7655 = vmatmul.mubr.msk.f32.vlgmr.msra.gmra.mxu0 %vm1155_vm2, %v10679_v38  ;;  %7682 = vmatprep.subr.mxu0 %v4026_v3 }
 0xd8e   : > { %7657 = vmatprep.mubr.msk.f32.mxu0 %vm1155_vm2, %v10680_v44  ;;  %7683 = vmatpush3.msra.mxu0 %v4026_v3 }
 0xd8f   : > { %7684 = vmatprep.subr.mxu0 %v4021_v15 }
 0xd90   : > { %7685 = vmatpush3.msra.mxu0 %v4021_v15 }
 0xd91   : > { %7658 = vmatmul.mubr.msk.f32.gmra.mxu0 %vm1155_vm2, %v10682_v31  ;;  %7733 = vmatprep.subr.mxu0 %v4036_v7 }
 0xd92   : > { %7660 = vmatprep.mubr.msk.f32.mxu0 %vm1155_vm2, %v10683_v62 }
 0xd95   : > { %7661 = vmatmul.mubr.msk.f32.gmra.mxu0 %vm1155_vm2, %v10684_v43 }
 0xd96   : > { %7663 = vmatprep.mubr.msk.f32.mxu0 %vm1155_vm2, %v10685_v48 }
 0xd99   : > { %7664 = vmatmul.mubr.msk.f32.gmra.mxu0 %vm1155_vm2, %v10686_v26 }
 0xd9a   : > { %7686 = vmatprep.mubr.msk.f32.mxu0 %vm1155_vm2, %v9633_v35  ;;  %v10693_v35 = vld [vmem:[#allocation20_spill] sm:$0xff] }
 0xd9d   : > { %7687 = vmatmul.mubr.msk.f32.vlgmr.msra.gmra.mxu0 %vm1155_vm2, %v10688_v10 }
 0xd9e   : > { %7734 = vmatpush3.msra.mxu0 %v4036_v7  ;;  %7689 = vmatprep.mubr.msk.f32.mxu0 %vm1155_vm2, %v10689_v52 }
 0xd9f   : > { %7735 = vmatprep.subr.mxu0 %v4031_v49 }
 0xda0   : > { %7736 = vmatpush3.msra.mxu0 %v4031_v49 }
 0xda1   : > { %7690 = vmatmul.mubr.msk.f32.gmra.mxu0 %vm1155_vm2, %v10690_v13 }
 0xda2   : > { %7692 = vmatprep.mubr.msk.f32.mxu0 %vm1155_vm2, %v10691_v41 }
 0xda5   : > { %7693 = vmatmul.mubr.msk.f32.gmra.mxu0 %vm1155_vm2, %v10692_v16 }
 0xda6   : > { %7695 = vmatprep.mubr.msk.f32.mxu0 %vm1155_vm2, %v10693_v35 }
 0xda9   : > { %7696 = vmatmul.mubr.msk.f32.gmra.mxu0 %vm1155_vm2, %v10694_v58 }
 0xdaa   : > { %7737 = vmatprep.mubr.msk.f32.mxu0 %vm1155_vm2, %v10695_v57 }
 0xdad   : > { %7738 = vmatmul.mubr.msk.f32.vlgmr.msra.gmra.mxu0 %vm1155_vm2, %v10696_v59 }
 0xdae   : > { %7740 = vmatprep.mubr.msk.f32.mxu0 %vm1155_vm2, %v10697_v60 }
 0xdb1   : > { %7741 = vmatmul.mubr.msk.f32.gmra.mxu0 %vm1155_vm2, %v10698_v32 }
 0xdb2   : > { %7743 = vmatprep.mubr.msk.f32.mxu0 %vm1155_vm2, %v10699_v33 }
 0xdb5   : > { %7744 = vmatmul.mubr.msk.f32.gmra.mxu0 %vm1155_vm2, %v10700_v63 }
 0xdb6   : > { %7746 = vmatprep.mubr.msk.f32.mxu0 %vm1155_vm2, %v10701_v29 }
 0xdb9   : > { %7747 = vmatmul.mubr.msk.f32.gmra.mxu0 %vm1155_vm2, %v10702_v21 }
 0xdba   : > { %7800 = vmatprep.mubr.msk.f32.mxu0 %vm688_vm1, %v10703_v39 }
 0xe4d   : > { %v9949_v36 = vpop.f32.mrf.mxu0 }
 0xe4f   : > { %v9951_v14 = vpop.f32.mrf.mxu0 }
 0xe51   : > { %v9953_v8 = vpop.f32.mrf.mxu0 }
 0xe53   : > { %v9955_v34 = vpop.f32.mrf.mxu0 }
 0xe55   : > { %v9957_v46 = vpop.f32.mrf.mxu0 }
 0xe57   : > { %v9959_v47 = vpop.f32.mrf.mxu0 }
 0xe59   : > { %v9961_v27 = vpop.f32.mrf.mxu0 }
 0xe5b   : > { %v9963_v11 = vpop.f32.mrf.mxu0 }
 0xe5d   : > { %v7688_v61 = vpop.f32.mrf.mxu0 }
 0xe5e   : > { %v5190_v28 = vsel %vm688_vm1, %v7688_v61, -inf }
 0xe5f   : > { %v5150_v55 = vpop.f32.mrf.mxu0 }
 0xe60   : > { %v5189_v22 = vsel %vm688_vm1, %v5150_v55, -inf }
 0xe61   : > { %v7691_v2 = vpop.f32.mrf.mxu0 }
 0xe62   : > { %v5192_v51 = vsel %vm688_vm1, %v7691_v2, -inf }
 0xe63   : > { %v5160_v6 = vpop.f32.mrf.mxu0 }
 0xe64   : > { %v5191_v23 = vsel %vm688_vm1, %v5160_v6, -inf }
 0xe65   : > { %v7694_v19 = vpop.f32.mrf.mxu0 }
 0xe66   : > { %v5195_v54 = vsel %vm688_vm1, %v7694_v19, -inf }
 0xe67   : > { %v5170_v9 = vpop.f32.mrf.mxu0  ;;  %v5196_v24 = vmax.f32 %v5190_v28, %v5195_v54 }
 0xe68   : > { %v5193_v45 = vsel %vm688_vm1, %v5170_v9, -inf }
 0xe69   : > { %v7697_v12 = vpop.f32.mrf.mxu0  ;;  %v5194_v18 = vmax.f32 %v5189_v22, %v5193_v45 }
 0xe6a   : > { %v5199_v50 = vsel %vm688_vm1, %v7697_v12, -inf }
 0xe6b   : > { %v5180_v53 = vpop.f32.mrf.mxu0  ;;  %v5200_v25 = vmax.f32 %v5192_v51, %v5199_v50  ;;  %v5201_v5 = vmax.f32 %v5194_v18, %v5196_v24 }
 0xe6c   : > { %v5197_v1 = vsel %vm688_vm1, %v5180_v53, -inf }
 0xe6d   : > { %v5198_v40 = vmax.f32 %v5191_v23, %v5197_v1 }
 0xe6f   : > { %v5202_v37 = vmax.f32 %v5198_v40, %v5200_v25 }
 0xe71   : > { %v5203_v42 = vmax.f32 %v5201_v5, %v5202_v37 }
 0xe73   : > { %v5204_v3 = vrot.slane %v5203_v42, 4 }
 0xe75   : > { %v5205_v30 = vmax.f32 %v5203_v42, %v5204_v3 }
 0xe77   : > { %v5206_v15 = vrot.slane %v5205_v30, 2 }
 0xe79   : > { %v5207_v38 = vmax.f32 %v5205_v30, %v5206_v15 }
 0xe7b   : > { %v5208_v44 = vrot.slane %v5207_v38, 1 }
 0xe7d   : > { %v5209_v20 = vmax.f32 %v5207_v38, %v5208_v44 }
 0xe7f   : > { %v5210_v7 = vsub.f32 %v5150_v55, %v5209_v20  ;;  %v5211_v31 = vsub.f32 %v7688_v61, %v5209_v20  ;;  %v5212_v62 = vsub.f32 %v5160_v6, %v5209_v20  ;;  %v5213_v43 = vsub.f32 %v7691_v2, %v5209_v20 }
 0xe80   : > { %v5214_v48 = vsub.f32 %v5170_v9, %v5209_v20  ;;  %v5215_v10 = vsub.f32 %v7694_v19, %v5209_v20  ;;  %v5216_v13 = vsub.f32 %v5180_v53, %v5209_v20  ;;  %v5217_v35 = vsub.f32 %v7697_v12, %v5209_v20 }
 0xe81   : > { %v5218_v26 = vmul.f32 1.442695, %v5210_v7  ;;  %v5220_v0 = vmul.f32 1.442695, %v5211_v31  ;;  %v5222_v49 = vmul.f32 1.442695, %v5212_v62 }
 0xe82   : > { %v5224_v52 = vmul.f32 1.442695, %v5213_v43  ;;  %v5226_v41 = vmul.f32 1.442695, %v5214_v48  ;;  %v5228_v16 = vmul.f32 1.442695, %v5215_v10  ;;  %v7739_v48 = vpop.f32.mrf.mxu0 }
 0xe83   : > { %8032 = vpow2.f32 %v5218_v26  ;;  %v5230_v58 = vmul.f32 1.442695, %v5216_v13  ;;  %v5232_v57 = vmul.f32 1.442695, %v5217_v35  ;;  %v10704_v31 = vld [vmem:[#allocation47_spill] sm:$0xff]  ;;  %v10705_v43 = vld [vmem:[#allocation50_spill] sm:$0xff] }
 0xe84   : > { %8034 = vpow2.f32 %v5220_v0  ;;  %v4171_v62 = vadd.f32 %v9854_v4, %v10704_v31  ;;  %v5580_v26 = vpop.f32.mrf.mxu0 }
 0xe85   : > { %8036 = vpow2.f32 %v5222_v49  ;;  %v5619_v35 = vsel %vm688_vm1, %v5580_v26, -inf }
 0xe86   : > { %8038 = vpow2.f32 %v5224_v52  ;;  %v7742_v0 = vpop.f32.mrf.mxu0 }
 0xe87   : > { %8040 = vpow2.f32 %v5226_v41  ;;  %v5622_v4 = vsel %vm688_vm1, %v7742_v0, -inf }
 0xe88   : > { %8042 = vpow2.f32 %v5228_v16  ;;  %v5590_v49 = vpop.f32.mrf.mxu0  ;;  %v5620_v16 = vsel %vm688_vm1, %v7739_v48, -inf }
 0xe89   : > { %8044 = vpow2.f32 %v5230_v58  ;;  %v5621_v58 = vsel %vm688_vm1, %v5590_v49, -inf }
 0xe8a   : > { %8046 = vpow2.f32 %v5232_v57  ;;  %v7745_v10 = vpop.f32.mrf.mxu0 }
 0xe8b   : > { %v5625_v57 = vsel %vm688_vm1, %v7745_v10, -inf }
 0xe8c   : > { %v5600_v52 = vpop.f32.mrf.mxu0 }
 0xe8e   : > { %v7748_v13 = vpop.f32.mrf.mxu0 }
 0xe90   : > { %v8033_v59 = vpop.eup %8032  ;;  %v5610_v41 = vpop.f32.mrf.mxu0 }
 0xe91   : > { %v8035_v60 = vpop.eup %8034  ;;  %v5234_v32 = vsel %vm688_vm1, %v8033_v59, 0.0 }
 0xe92   : > { %v8037_v33 = vpop.eup %8036  ;;  %v5235_v63 = vsel %vm688_vm1, %v8035_v60, 0.0 }
 0xe93   : > { %v8039_v29 = vpop.eup %8038  ;;  %v5236_v21 = vadd.f32 %v5235_v63, %v5234_v32  ;;  %v5237_v39 = vsel %vm688_vm1, %v8037_v33, 0.0  ;;  %v5627_v32 = vsel %vm688_vm1, %v5610_v41, -inf }
 0xe94   : > { %v8041_v61 = vpop.eup %8040  ;;  %v5239_v2 = vsel %vm688_vm1, %v8039_v29, 0.0 }
 0xe95   : > { %v5238_v55 = vadd.f32 %v5237_v39, %v5236_v21  ;;  %v8043_v6 = vpop.eup %8042  ;;  %v5241_v9 = vsel %vm688_vm1, %v8041_v61, 0.0  ;;  %v5628_v21 = vmax.f32 %v5621_v58, %v5627_v32 }
 0xe96   : > { %v8045_v45 = vpop.eup %8044  ;;  %v5243_v22 = vsel %vm688_vm1, %v8043_v6, 0.0 }
 0xe97   : > { %v5240_v19 = vadd.f32 %v5239_v2, %v5238_v55  ;;  %v8047_v54 = vpop.eup %8046  ;;  %v5245_v18 = vsel %vm688_vm1, %v8045_v45, 0.0 }
 0xe98   : > { %v5247_v28 = vsel %vm688_vm1, %v8047_v54, 0.0 }
 0xe99   : > { %v5242_v12 = vadd.f32 %v5241_v9, %v5240_v19 }
 0xe9b   : > { %v5244_v50 = vadd.f32 %v5243_v22, %v5242_v12 }
 0xe9d   : > { %v5246_v53 = vadd.f32 %v5245_v18, %v5244_v50 }
 0xe9f   : > { %v5248_v51 = vadd.f32 %v5247_v28, %v5246_v53 }
 0xea1   : > { %v5249_v23 = vrot.slane %v5248_v51, 4 }
 0xea3   : > { %v5250_v1 = vadd.f32 %v5249_v23, %v5248_v51 }
 0xea5   : > { %v5251_v24 = vrot.slane %v5250_v1, 2 }
 0xea7   : > { %v5252_v25 = vadd.f32 %v5251_v24, %v5250_v1 }
 0xea9   : > { %v5253_v40 = vrot.slane %v5252_v25, 1 }
 0xeab   : > { %v5254_v5 = vadd.f32 %v5253_v40, %v5252_v25 }
 0xead   : > { %8048 = vrcp.f32 %v5254_v5 }
 0xeba   : > { %v8049_v37 = vpop.eup %8048 }
 0xebb   : > { %v5263_v42 = vmul.f32 %v8049_v37, %v8047_v54  ;;  %v5262_v3 = vmul.f32 %v8049_v37, %v8045_v45  ;;  %v5261_v30 = vmul.f32 %v8049_v37, %v8043_v6  ;;  %v5260_v15 = vmul.f32 %v8049_v37, %v8041_v61 }
 0xebc   : > { %v5259_v38 = vmul.f32 %v8049_v37, %v8039_v29  ;;  %v5258_v44 = vmul.f32 %v8049_v37, %v8037_v33  ;;  %v5257_v20 = vmul.f32 %v8049_v37, %v8035_v60  ;;  %v5256_v7 = vmul.f32 %v8049_v37, %v8033_v59 }
 0xebd   : > { %7698 = vmatprep.subr.mxu1 %v5263_v42  ;;  %v5623_v59 = vsel %vm688_vm1, %v5600_v52, -inf  ;;  %v5629_v60 = vsel %vm688_vm1, %v7748_v13, -inf  ;;  %v5626_v33 = vmax.f32 %v5620_v16, %v5625_v57 }
 0xebe   : > { %7699 = vmatpush3.msra.mxu1 %v5263_v42  ;;  %v5624_v63 = vmax.f32 %v5619_v35, %v5623_v59  ;;  %v5630_v29 = vmax.f32 %v5622_v4, %v5629_v60 }
 0xebf   : > { %7700 = vmatprep.subr.mxu1 %v5262_v3 }
 0xec0   : > { %7701 = vmatpush3.msra.mxu1 %v5262_v3  ;;  %v5631_v39 = vmax.f32 %v5624_v63, %v5626_v33  ;;  %v5632_v61 = vmax.f32 %v5628_v21, %v5630_v29  ;;  %v7672_v33 = vpop.f32.mrf.mxu1 }
 0xec1   : > { %7702 = vmatprep.subr.mxu1 %v5261_v30 }
 0xec2   : > { %7703 = vmatpush3.msra.mxu1 %v5261_v30  ;;  %v5633_v55 = vmax.f32 %v5631_v39, %v5632_v61  ;;  %v4989_v29 = vpop.f32.mrf.mxu1 }
 0xec3   : > { %7704 = vmatprep.subr.mxu1 %v5260_v15 }
 0xec4   : > { %7705 = vmatpush3.msra.mxu1 %v5260_v15  ;;  %v5634_v2 = vrot.slane %v5633_v55, 4  ;;  %v7675_v39 = vpop.f32.mrf.mxu1 }
 0xec5   : > { %7706 = vmatprep.subr.mxu1 %v5259_v38 }
 0xec6   : > { %7707 = vmatpush3.msra.mxu1 %v5259_v38  ;;  %v5635_v6 = vmax.f32 %v5633_v55, %v5634_v2  ;;  %v4999_v55 = vpop.f32.mrf.mxu1 }
 0xec7   : > { %7708 = vmatprep.subr.mxu1 %v5258_v44 }
 0xec8   : > { %7709 = vmatpush3.msra.mxu1 %v5258_v44  ;;  %v5636_v19 = vrot.slane %v5635_v6, 2 }
 0xec9   : > { %7710 = vmatprep.subr.mxu1 %v5257_v20 }
 0xeca   : > { %7711 = vmatpush3.msra.mxu1 %v5257_v20  ;;  %v5637_v9 = vmax.f32 %v5635_v6, %v5636_v19  ;;  %v7678_v6 = vpop.f32.mrf.mxu1 }
 0xecb   : > { %7712 = vmatprep.subr.mxu1 %v5256_v7 }
 0xecc   : > { %7713 = vmatpush3.msra.mxu1 %v5256_v7  ;;  %v5638_v45 = vrot.slane %v5637_v9, 1  ;;  %v5009_v19 = vpop.f32.mrf.mxu1 }
 0xecd   : > { %7715 = vmatmul.mubr.msk.f32.vlgmr.msra.gmra.mxu1 %vm688_vm1, %v4171_v62 }
 0xece   : > { %7721 = vmatprep.mubr.msk.f32.mxu1 %vm1155_vm2, %v10705_v43  ;;  %v5639_v12 = vmax.f32 %v5637_v9, %v5638_v45  ;;  %v7681_v9 = vpop.f32.mrf.mxu1 }
 0xed0   : > { %v5640_v22 = vsub.f32 %v5580_v26, %v5639_v12  ;;  %v5641_v54 = vsub.f32 %v7739_v48, %v5639_v12  ;;  %v5642_v18 = vsub.f32 %v5590_v49, %v5639_v12  ;;  %v5643_v28 = vsub.f32 %v7742_v0, %v5639_v12  ;;  %v10011_v45 = vpop.f32.mrf.mxu1 }
 0xed1   : > { %v5644_v23 = vsub.f32 %v5600_v52, %v5639_v12  ;;  %v5645_v24 = vsub.f32 %v7745_v10, %v5639_v12  ;;  %v5646_v5 = vsub.f32 %v5610_v41, %v5639_v12  ;;  %v5647_v3 = vsub.f32 %v7748_v13, %v5639_v12 }
 0xed2   : > { %v5648_v50 = vmul.f32 1.442695, %v5640_v22  ;;  %v5650_v53 = vmul.f32 1.442695, %v5641_v54  ;;  %v5652_v51 = vmul.f32 1.442695, %v5642_v18 }
 0xed3   : > { %v5654_v1 = vmul.f32 1.442695, %v5643_v28  ;;  %v5656_v25 = vmul.f32 1.442695, %v5644_v23  ;;  %v5658_v37 = vmul.f32 1.442695, %v5645_v24 }
 0xed4   : > { %8050 = vpow2.f32 %v5648_v50  ;;  %v5660_v30 = vmul.f32 1.442695, %v5646_v5  ;;  %v5662_v31 = vmul.f32 1.442695, %v5647_v3  ;;  %v10706_v18 = vld [vmem:[#allocation51_spill] sm:$0xff]  ;;  %v10707_v28 = vld [vmem:[#allocation52_spill] sm:$0xff] }
 0xed5   : > { %8052 = vpow2.f32 %v5650_v53  ;;  %v10708_v23 = vld [vmem:[#allocation53_spill] sm:$0xff]  ;;  %v10709_v24 = vld [vmem:[#allocation54_spill] sm:$0xff]  ;;  %v10710_v5 = vld [vmem:[#allocation55_spill] sm:$0xff] }
 0xed6   : > { %8054 = vpow2.f32 %v5652_v51  ;;  %v10711_v3 = vld [vmem:[#allocation56_spill] sm:$0xff] }
 0xed7   : > { %8056 = vpow2.f32 %v5654_v1 }
 0xed8   : > { %8058 = vpow2.f32 %v5656_v25 }
 0xed9   : > { %8060 = vpow2.f32 %v5658_v37 }
 0xeda   : > { %8062 = vpow2.f32 %v5660_v30 }
 0xedb   : > { %8064 = vpow2.f32 %v5662_v31 }
 0xee1   : > { %v9994_v40 = vpop.eup %8050 }
 0xee2   : > { %v9996_v42 = vpop.eup %8052  ;;  %v5664_v15 = vsel %vm688_vm1, %v9994_v40, 0.0 }
 0xee3   : > { %v5665_v38 = vsel %vm688_vm1, %v9996_v42, 0.0  ;;  %v10002_v44 = vpop.eup %8054 }
 0xee4   : > { %v5666_v20 = vadd.f32 %v5665_v38, %v5664_v15  ;;  %v5667_v7 = vsel %vm688_vm1, %v10002_v44, 0.0  ;;  %v8057_v62 = vpop.eup %8056  ;;  %v10712_v15 = vld [vmem:[#allocation57_spill] sm:$0xff] }
 0xee5   : > { %v5669_v48 = vsel %vm688_vm1, %v8057_v62, 0.0  ;;  %v8059_v26 = vpop.eup %8058  ;;  %v4176_v38 = vadd.f32 %v9891_v56, %v10712_v15  ;;  %v4995_v56 = vadd.f32 %v7672_v33, %v9949_v36  ;;  %v10727_v15 = vld [vmem:[#allocation77_spill] sm:$0xff] }
 0xee6   : > { %v5668_v43 = vadd.f32 %v5667_v7, %v5666_v20  ;;  %v5671_v49 = vsel %vm688_vm1, %v8059_v26, 0.0  ;;  %v8061_v10 = vpop.eup %8060  ;;  %v10713_v20 = vld [vmem:[#allocation58_spill] sm:$0xff] }
 0xee7   : > { %v5673_v13 = vsel %vm688_vm1, %v8061_v10, 0.0  ;;  %v8063_v41 = vpop.eup %8062 }
 0xee8   : > { %v5670_v0 = vadd.f32 %v5669_v48, %v5668_v43  ;;  %v5675_v35 = vsel %vm688_vm1, %v8063_v41, 0.0  ;;  %v8065_v4 = vpop.eup %8064  ;;  %v4990_v43 = vadd.f32 %v4989_v29, %v9951_v14  ;;  %v5025_v14 = vadd.f32 %v7681_v9, %v9961_v27  ;;  %v10718_v27 = vld [vmem:[#allocation62_spill] sm:$0xff]  ;;  %v10721_v29 = vld [vmem:[#allocation65_spill] sm:$0xff] }
 0xee9   : > { %v5677_v57 = vsel %vm688_vm1, %v8065_v4, 0.0 }
 0xeea   : > { %v5672_v52 = vadd.f32 %v5671_v49, %v5670_v0 }
 0xeec   : > { %v5674_v16 = vadd.f32 %v5673_v13, %v5672_v52  ;;  %v5015_v13 = vadd.f32 %v7678_v6, %v9957_v46  ;;  %v10716_v46 = vld [vmem:[#allocation60_spill] sm:$0xff] }
 0xeee   : > { %v5676_v58 = vadd.f32 %v5675_v35, %v5674_v16  ;;  %v5010_v35 = vadd.f32 %v5009_v19, %v9959_v47  ;;  %v10717_v47 = vld [vmem:[#allocation61_spill] sm:$0xff]  ;;  %v10724_v19 = vld [vmem:[#allocation76_spill] sm:$0xff] }
 0xef0   : > { %v5678_v59 = vadd.f32 %v5677_v57, %v5676_v58 }
 0xef2   : > { %v5679_v60 = vrot.slane %v5678_v59, 4 }
 0xef4   : > { %v5680_v32 = vadd.f32 %v5679_v60, %v5678_v59 }
 0xef6   : > { %v5681_v63 = vrot.slane %v5680_v32, 2 }
 0xef8   : > { %v5682_v21 = vadd.f32 %v5681_v63, %v5680_v32  ;;  %v10719_v63 = vld [vmem:[#allocation63_spill] sm:$0xff] }
 0xefa   : > { %v5683_v61 = vrot.slane %v5682_v21, 1 }
 0xefc   : > { %v5684_v2 = vadd.f32 %v5683_v61, %v5682_v21  ;;  %v10722_v21 = vld [vmem:[#allocation66_spill] sm:$0xff] }
 0xefe   : > { %8066 = vrcp.f32 %v5684_v2  ;;  %v6609_v2 = vld [vmem:[%s10317_s11 + $0x48] sm:$0xff] }
 0xf0b   : > { %v8067_v22 = vpop.eup %8066 }
 0xf0c   : > { %v5693_v50 = vmul.f32 %v8067_v22, %v8065_v4  ;;  %v5692_v53 = vmul.f32 %v8067_v22, %v8063_v41  ;;  %v5691_v51 = vmul.f32 %v8067_v22, %v8061_v10  ;;  %v5690_v1 = vmul.f32 %v8067_v22, %v8059_v26 }
 0xf0d   : > { %v5689_v25 = vmul.f32 %v8067_v22, %v8057_v62  ;;  %v5688_v37 = vmul.f32 %v8067_v22, %v10002_v44  ;;  %v5687_v30 = vmul.f32 %v8067_v22, %v9996_v42  ;;  %v5686_v7 = vmul.f32 %v8067_v22, %v9994_v40  ;;  %v10714_v44 = vld [vmem:[#allocation49_spill] sm:$0xff]  ;;  %v10715_v42 = vld [vmem:[#allocation59_spill] sm:$0xff] }
 0xf0e   : > { %v4181_v31 = vadd.f32 %v9889_v17, %v10714_v44  ;;  %v5005_v26 = vadd.f32 %v7675_v39, %v9953_v8  ;;  %v5000_v17 = vadd.f32 %v4999_v55, %v9955_v34  ;;  %v5020_v8 = vadd.f32 %v10011_v45, %v9963_v11  ;;  %v10720_v11 = vld [vmem:[#allocation64_spill] sm:$0xff]  ;;  %v10723_v39 = vld [vmem:[#allocation117_spill] sm:$0xff] }
 0xf8d   : > { %v7716_v12 = vpop.f32.mrf.mxu1 }
 0xf8e   : > { %7717 = vmatprep.subr.mxu1 %v7716_v12 }
 0xf8f   : > { %v5336_v54 = vpop.f32.mrf.mxu1  ;;  %7718 = vmatpush3.msra.mxu1 %v7716_v12  ;;  %v6608_v12 = vld [vmem:[%s10317_s11 + $0x40] sm:$0xff] }
 0xf90   : > { %7719 = vmatprep.subr.mxu1 %v5336_v54 }
 0xf91   : > { %7720 = vmatpush3.msra.mxu1 %v5336_v54 }
 0xf92   : > { %7722 = vmatmul.mubr.msk.f32.vlgmr.msra.gmra.mxu1 %vm1155_vm2, %v10706_v18  ;;  %7749 = vmatprep.subr.mxu1 %v5693_v50 }
 0xf93   : > { %7724 = vmatprep.mubr.msk.f32.mxu1 %vm1155_vm2, %v10707_v28  ;;  %7750 = vmatpush3.msra.mxu1 %v5693_v50  ;;  %v10725_v50 = vld [vmem:[#allocation67_spill] sm:$0xff] }
 0xf94   : > { %7751 = vmatprep.subr.mxu1 %v5692_v53 }
 0xf95   : > { %7752 = vmatpush3.msra.mxu1 %v5692_v53 }
 0xf96   : > { %7725 = vmatmul.mubr.msk.f32.gmra.mxu1 %vm1155_vm2, %v10708_v23  ;;  %7753 = vmatprep.subr.mxu1 %v5691_v51  ;;  %v6611_v23 = vld [vmem:[%s10317_s11 + $0x58] sm:$0xff] }
 0xf97   : > { %7727 = vmatprep.mubr.msk.f32.mxu1 %vm1155_vm2, %v10709_v24  ;;  %7754 = vmatpush3.msra.mxu1 %v5691_v51 }
 0xf98   : > { %7755 = vmatprep.subr.mxu1 %v5690_v1 }
 0xf99   : > { %7756 = vmatpush3.msra.mxu1 %v5690_v1  ;;  %v10726_v1 = vld [vmem:[#allocation78_spill] sm:$0xff] }
 0xf9a   : > { %7728 = vmatmul.mubr.msk.f32.gmra.mxu1 %vm1155_vm2, %v10710_v5  ;;  %7757 = vmatprep.subr.mxu1 %v5689_v25  ;;  %v6610_v5 = vld [vmem:[%s10317_s11 + $0x50] sm:$0xff] }
 0xf9b   : > { %7730 = vmatprep.mubr.msk.f32.mxu1 %vm1155_vm2, %v10711_v3  ;;  %7758 = vmatpush3.msra.mxu1 %v5689_v25 }
 0xf9c   : > { %7759 = vmatprep.subr.mxu1 %v5688_v37 }
 0xf9d   : > { %7760 = vmatpush3.msra.mxu1 %v5688_v37 }
 0xf9e   : > { %7731 = vmatmul.mubr.msk.f32.gmra.mxu1 %vm1155_vm2, %v10713_v20  ;;  %7761 = vmatprep.subr.mxu1 %v5687_v30 }
 0xf9f   : > { %7762 = vmatpush3.msra.mxu1 %v5687_v30  ;;  %7765 = vmatprep.mubr.msk.f32.mxu1 %vm688_vm1, %v4176_v38 }
 0xfa0   : > { %7763 = vmatprep.subr.mxu1 %v5686_v7 }
 0xfa1   : > { %7764 = vmatpush3.msra.mxu1 %v5686_v7 }
 0xfa2   : > { %7766 = vmatmul.mubr.msk.f32.vlgmr.msra.gmra.mxu1 %vm688_vm1, %v4181_v31 }
 0xfa3   : > { %7772 = vmatprep.mubr.msk.f32.mxu1 %vm1155_vm2, %v10715_v42 }
0x1052   : > { %v7723_v62 = vpop.f32.mrf.mxu1 }
0x1053   : > { %v5451_v48 = vadd.f32 %v7723_v62, %v4995_v56  ;;  %v10728_v56 = vld [vmem:[#allocation68_spill] sm:$0xff] }
0x1054   : > { %v5411_v40 = vpop.f32.mrf.mxu1 }
0x1055   : > { %v5450_v0 = vadd.f32 %v5411_v40, %v4990_v43  ;;  %v6612_v40 = vld [vmem:[%s10317_s11 + $0x60] sm:$0xff] }
0x1056   : > { %v7726_v49 = vpop.f32.mrf.mxu1 }
0x1057   : > { %v5453_v10 = vadd.f32 %v7726_v49, %v5005_v26  ;;  %v10729_v49 = vld [vmem:[#allocation79_spill] sm:$0xff] }
0x1058   : > { %v5421_v52 = vpop.f32.mrf.mxu1 }
0x1059   : > { %v5452_v41 = vadd.f32 %v5421_v52, %v5000_v17 }
0x105a   : > { %v7729_v16 = vpop.f32.mrf.mxu1 }
0x105b   : > { %v5455_v36 = vadd.f32 %v7729_v16, %v5015_v13 }
0x105c   : > { %v5431_v4 = vpop.f32.mrf.mxu1 }
0x105d   : > { %v5454_v58 = vadd.f32 %v5431_v4, %v5010_v35 }
0x105e   : > { %v7732_v57 = vpop.f32.mrf.mxu1 }
0x105f   : > { %v5457_v59 = vadd.f32 %v7732_v57, %v5025_v14  ;;  %v6615_v57 = vld [vmem:[%s10317_s11 + $0x78] sm:$0xff] }
0x1060   : > { %v5441_v60 = vpop.f32.mrf.mxu1 }
0x1061   : > { %v5456_v34 = vadd.f32 %v5441_v60, %v5020_v8  ;;  %v6614_v8 = vld [vmem:[%s10317_s11 + $0x70] sm:$0xff] }
0x1062   : > { %v7767_v32 = vpop.f32.mrf.mxu1  ;;  %v10731_v60 = vld [vmem:[#allocation80_spill] sm:$0xff] }
0x1063   : > { %7768 = vmatprep.subr.mxu1 %v7767_v32 }
0x1064   : > { %v5766_v33 = vpop.f32.mrf.mxu1  ;;  %7769 = vmatpush3.msra.mxu1 %v7767_v32 }
0x1065   : > { %7770 = vmatprep.subr.mxu1 %v5766_v33 }
0x1066   : > { %7771 = vmatpush3.msra.mxu1 %v5766_v33 }
0x1067   : > { %7773 = vmatmul.mubr.msk.f32.vlgmr.msra.gmra.mxu1 %vm1155_vm2, %v10716_v46 }
0x1068   : > { %7775 = vmatprep.mubr.msk.f32.mxu1 %vm1155_vm2, %v10717_v47 }
0x106b   : > { %7776 = vmatmul.mubr.msk.f32.gmra.mxu1 %vm1155_vm2, %v10718_v27 }
0x106c   : > { %7778 = vmatprep.mubr.msk.f32.mxu1 %vm1155_vm2, %v10719_v63 }
0x106f   : > { %7779 = vmatmul.mubr.msk.f32.gmra.mxu1 %vm1155_vm2, %v10720_v11 }
0x1070   : > { %7781 = vmatprep.mubr.msk.f32.mxu1 %vm1155_vm2, %v10721_v29 }
0x1073   : > { %7782 = vmatmul.mubr.msk.f32.gmra.mxu1 %vm1155_vm2, %v10722_v21 }
0x1074   : > { %7856 = vmatprep.mubr.f32.mxu1 %v10723_v39 }
0x1127   : > { %v7774_v61 = vpop.f32.mrf.mxu1 }
0x1128   : > { %v5881_v55 = vadd.f32 %v7774_v61, %v5451_v48  ;;  %v6613_v48 = vld [vmem:[%s10317_s11 + $0x68] sm:$0xff] }
0x1129   : > { %v5841_v6 = vpop.f32.mrf.mxu1 }
0x112a   : > { %v5889_v9 = vadd.f32 %v5881_v55, %v10724_v19  ;;  %v5880_v45 = vadd.f32 %v5841_v6, %v5450_v0 }
0x112b   : > { %v7777_v22 = vpop.f32.mrf.mxu1 }
0x112c   : > { %v5897_v54 = vadd.f32 %v6609_v2, %v5889_v9  ;;  %v5888_v18 = vadd.f32 %v5880_v45, %v10725_v50  ;;  %v5883_v53 = vadd.f32 %v7777_v22, %v5453_v10 }
0x112d   : > { %v5851_v28 = vpop.f32.mrf.mxu1 }
0x112e   : > { %v5896_v51 = vadd.f32 %v6608_v12, %v5888_v18  ;;  %v5891_v24 = vadd.f32 %v5883_v53, %v10726_v1  ;;  %v5882_v25 = vadd.f32 %v5851_v28, %v5452_v41  ;;  %v5905_v3 = vsel %vm688_vm1, %v5897_v54, 0.0 }
0x112f   : > { %v7780_v37 = vpop.f32.mrf.mxu1 }
0x1130   : > { %v5904_v30 = vsel %vm688_vm1, %v5896_v51, 0.0  ;;  %v5890_v38 = vadd.f32 %v5882_v25, %v10727_v15  ;;  %v5885_v20 = vadd.f32 %v7780_v37, %v5455_v36  ;;  %v5899_v44 = vadd.f32 %v6611_v23, %v5891_v24  ;;  %v10730_v36 = vld [vmem:[#allocation69_spill] sm:$0xff] }
0x1131   : > { %v5906_v7 = vadd.f32 %v5905_v3, %v5904_v30  ;;  %v5861_v31 = vpop.f32.mrf.mxu1 }
0x1132   : > { %v5898_v42 = vadd.f32 %v6610_v5, %v5890_v38  ;;  %v5893_v62 = vadd.f32 %v5885_v20, %v10728_v56  ;;  %v5884_v43 = vadd.f32 %v5861_v31, %v5454_v58  ;;  %v5909_v52 = vsel %vm688_vm1, %v5899_v44, 0.0 }
0x1133   : > { %v7783_v26 = vpop.f32.mrf.mxu1 }
0x1134   : > { %v5907_v0 = vsel %vm688_vm1, %v5898_v42, 0.0  ;;  %v5892_v17 = vadd.f32 %v5884_v43, %v10729_v49  ;;  %v5887_v10 = vadd.f32 %v7783_v26, %v5457_v59  ;;  %v5901_v16 = vadd.f32 %v6613_v48, %v5893_v62 }
0x1135   : > { %v5908_v13 = vadd.f32 %v5907_v0, %v5906_v7  ;;  %v5871_v41 = vpop.f32.mrf.mxu1 }
0x1136   : > { %v5900_v35 = vadd.f32 %v6612_v40, %v5892_v17  ;;  %v5895_v4 = vadd.f32 %v5887_v10, %v10730_v36  ;;  %v5886_v14 = vadd.f32 %v5871_v41, %v5456_v34  ;;  %v5913_v46 = vsel %vm688_vm1, %v5901_v16, 0.0 }
0x1137   : > { %v5910_v58 = vadd.f32 %v5909_v52, %v5908_v13 }
0x1138   : > { %v5911_v59 = vsel %vm688_vm1, %v5900_v35, 0.0  ;;  %v5894_v32 = vadd.f32 %v5886_v14, %v10731_v60  ;;  %v5903_v47 = vadd.f32 %v6615_v57, %v5895_v4 }
0x1139   : > { %v5912_v33 = vadd.f32 %v5911_v59, %v5910_v58 }
0x113a   : > { %v5902_v27 = vadd.f32 %v6614_v8, %v5894_v32  ;;  %v5917_v29 = vsel %vm688_vm1, %v5903_v47, 0.0 }
0x113b   : > { %v5914_v63 = vadd.f32 %v5913_v46, %v5912_v33  ;;  %v10732_v33 = vld [vmem:[#allocation81_spill] sm:$0xff] }
0x113c   : > { %v5915_v34 = vsel %vm688_vm1, %v5902_v27, 0.0 }
0x113d   : > { %v5916_v11 = vadd.f32 %v5915_v34, %v5914_v63  ;;  %v10734_v63 = vld [vmem:[#allocation82_spill] sm:$0xff] }
0x113f   : > { %v5918_v21 = vadd.f32 %v5917_v29, %v5916_v11  ;;  %v10735_v11 = vld [vmem:[#allocation84_spill] sm:$0xff] }
0x1141   : > { %v5919_v39 = vrot.slane %v5918_v21, 4 }
0x1143   : > { %v5920_v61 = vadd.f32 %v5919_v39, %v5918_v21  ;;  %v10736_v21 = vld [vmem:[#allocation70_spill] sm:$0xff] }
0x1145   : > { %v5921_v55 = vrot.slane %v5920_v61, 2 }
0x1147   : > { %v5922_v2 = vadd.f32 %v5921_v55, %v5920_v61  ;;  %v10737_v61 = vld [vmem:[#allocation86_spill] sm:$0xff] }
0x1149   : > { %v5923_v6 = vrot.slane %v5922_v2, 1 }
0x114b   : > { %v5924_v19 = vadd.f32 %v5923_v6, %v5922_v2  ;;  %v10738_v2 = vld [vmem:[#allocation88_spill] sm:$0xff] }
0x114d   : > { %v5925_v9 = vmul.f32 0.015625, %v5924_v19  ;;  %v10739_v19 = vld [vmem:[#allocation73_spill] sm:$0xff] }
0x114f   : > { %v5926_v45 = vsub.f32 %v5896_v51, %v5925_v9  ;;  %v5927_v12 = vsub.f32 %v5897_v54, %v5925_v9  ;;  %v5928_v22 = vsub.f32 %v5898_v42, %v5925_v9  ;;  %v5929_v50 = vsub.f32 %v5899_v44, %v5925_v9 }
0x1150   : > { %v5930_v18 = vsub.f32 %v5900_v35, %v5925_v9  ;;  %v5931_v53 = vsub.f32 %v5901_v16, %v5925_v9  ;;  %v5932_v28 = vsub.f32 %v5902_v27, %v5925_v9  ;;  %v5933_v23 = vsub.f32 %v5903_v47, %v5925_v9  ;;  %v10733_v47 = vld [vmem:[#allocation72_spill] sm:$0xff] }
0x1151   : > { %v5934_v1 = vmul.f32 %v5926_v45, %v5926_v45  ;;  %v5935_v24 = vmul.f32 %v5927_v12, %v5927_v12  ;;  %v5936_v25 = vmul.f32 %v5928_v22, %v5928_v22  ;;  %v5937_v5 = vmul.f32 %v5929_v50, %v5929_v50 }
0x1152   : > { %v5938_v15 = vmul.f32 %v5930_v18, %v5930_v18  ;;  %v5939_v54 = vmul.f32 %v5931_v53, %v5931_v53  ;;  %v5940_v44 = vmul.f32 %v5932_v28, %v5932_v28  ;;  %v5941_v62 = vmul.f32 %v5933_v23, %v5933_v23 }
0x1153   : > { %v5942_v37 = vsel %vm688_vm1, %v5934_v1, 0.0  ;;  %v5943_v3 = vsel %vm688_vm1, %v5935_v24, 0.0  ;;  %v5945_v38 = vsel %vm688_vm1, %v5936_v25, 0.0  ;;  %v5947_v20 = vsel %vm688_vm1, %v5937_v5, 0.0  ;;  %v10744_v1 = vld [vmem:[#allocation96_spill] sm:$0xff]  ;;  %v10745_v25 = vld [vmem:[#allocation74_spill] sm:$0xff] }
0x1154   : > { %v5944_v30 = vadd.f32 %v5943_v3, %v5942_v37  ;;  %v5949_v31 = vsel %vm688_vm1, %v5938_v15, 0.0  ;;  %v5951_v56 = vsel %vm688_vm1, %v5939_v54, 0.0  ;;  %v5953_v48 = vsel %vm688_vm1, %v5940_v44, 0.0  ;;  %v10746_v37 = vld [vmem:[#allocation98_spill] sm:$0xff]  ;;  %v10750_v54 = vld [vmem:[#allocation87_spill] sm:$0xff]  ;;  %v10753_v44 = vld [vmem:[#allocation93_spill] sm:$0xff] }
0x1155   : > { %v5955_v26 = vsel %vm688_vm1, %v5941_v62, 0.0  ;;  %v10757_v62 = vld [vmem:[#allocation101_spill] sm:$0xff] }
0x1156   : > { %v5946_v51 = vadd.f32 %v5945_v38, %v5944_v30  ;;  %v10747_v30 = vld [vmem:[#allocation100_spill] sm:$0xff]  ;;  %v10748_v38 = vld [vmem:[#allocation83_spill] sm:$0xff] }
0x1158   : > { %v5948_v7 = vadd.f32 %v5947_v20, %v5946_v51  ;;  %v10749_v51 = vld [vmem:[#allocation85_spill] sm:$0xff] }
0x1159   : > { %v10751_v20 = vld [vmem:[#allocation89_spill] sm:$0xff] }
0x115a   : > { %v5950_v42 = vadd.f32 %v5949_v31, %v5948_v7  ;;  %v10752_v7 = vld [vmem:[#allocation91_spill] sm:$0xff] }
0x115b   : > { %v10754_v31 = vld [vmem:[#allocation95_spill] sm:$0xff] }
0x115c   : > { %v5952_v43 = vadd.f32 %v5951_v56, %v5950_v42  ;;  %v10755_v42 = vld [vmem:[#allocation97_spill] sm:$0xff]  ;;  %v10756_v56 = vld [vmem:[#allocation99_spill] sm:$0xff] }
0x115e   : > { %v5954_v40 = vadd.f32 %v5953_v48, %v5952_v43  ;;  %v10758_v43 = vld [vmem:[#allocation102_spill] sm:$0xff]  ;;  %v10759_v48 = vld [vmem:[#allocation103_spill] sm:$0xff] }
0x1160   : > { %v5956_v0 = vadd.f32 %v5955_v26, %v5954_v40  ;;  %v10760_v40 = vld [vmem:[#allocation104_spill] sm:$0xff]  ;;  %v10761_v26 = vld [vmem:[#allocation105_spill] sm:$0xff] }
0x1162   : > { %v5957_v49 = vrot.slane %v5956_v0, 4 }
0x1164   : > { %v5958_v17 = vadd.f32 %v5957_v49, %v5956_v0  ;;  %v10762_v0 = vld [vmem:[#allocation107_spill] sm:$0xff] }
0x1166   : > { %v5959_v10 = vrot.slane %v5958_v17, 2 }
0x1168   : > { %v5960_v52 = vadd.f32 %v5959_v10, %v5958_v17 }
0x116a   : > { %v5961_v13 = vrot.slane %v5960_v52, 1 }
0x116c   : > { %v5962_v41 = vadd.f32 %v5961_v13, %v5960_v52 }
0x116e   : > { %v5963_v16 = vmul.f32 0.015625, %v5962_v41 }
0x1170   : > { %v5964_v35 = vadd.f32 1e-05, %v5963_v16 }
0x1172   : > { %8068 = vrsqrt.f32 %v5964_v35 }
0x117f   : > { %v8069_v36 = vpop.eup %8068 }
0x1180   : > { %v5973_v4 = vmul.f32 %v8069_v36, %v5933_v23  ;;  %v5972_v14 = vmul.f32 %v8069_v36, %v5932_v28  ;;  %v5971_v58 = vmul.f32 %v8069_v36, %v5931_v53  ;;  %v5970_v57 = vmul.f32 %v8069_v36, %v5930_v18  ;;  %v10742_v18 = vld [vmem:[#allocation71_spill] sm:$0xff]  ;;  %v10743_v28 = vld [vmem:[#allocation94_spill] sm:$0xff] }
0x1181   : > { %v5969_v8 = vmul.f32 %v8069_v36, %v5929_v50  ;;  %v5968_v59 = vmul.f32 %v8069_v36, %v5928_v22  ;;  %v5967_v60 = vmul.f32 %v8069_v36, %v5927_v12  ;;  %v5966_v32 = vmul.f32 %v8069_v36, %v5926_v45  ;;  %v10740_v45 = vld [vmem:[#allocation90_spill] sm:$0xff]  ;;  %v10741_v22 = vld [vmem:[#allocation92_spill] sm:$0xff] }
0x1182   : > { %v5981_v46 = vmul.f32 %v5973_v4, %v10732_v33  ;;  %v5980_v27 = vmul.f32 %v5972_v14, %v10733_v47  ;;  %v5979_v29 = vmul.f32 %v5971_v58, %v10735_v11  ;;  %v5978_v55 = vmul.f32 %v5970_v57, %v10737_v61 }
0x1183   : > { %v5977_v9 = vmul.f32 %v5969_v8, %v10739_v19  ;;  %v5976_v50 = vmul.f32 %v5968_v59, %v10741_v22  ;;  %v5975_v23 = vmul.f32 %v5967_v60, %v10743_v28  ;;  %v5974_v5 = vmul.f32 %v5966_v32, %v10745_v25  ;;  %v10763_v60 = vld [vmem:[#allocation106_spill] sm:$0xff] }
0x1184   : > { %v10113_v34 = vadd.f32 %v5981_v46, %v10734_v63  ;;  %v10118_v39 = vadd.f32 %v5980_v27, %v10736_v21  ;;  %v10124_v6 = vadd.f32 %v5979_v29, %v10738_v2  ;;  %v10130_v12 = vadd.f32 %v5978_v55, %v10740_v45  ;;  %v10764_v46 = vld [vmem:[#allocation6_spill] sm:$0xff]  ;;  %v10765_v63 = vld [vmem:[#allocation108_spill] sm:$0xff] }
0x1185   : > { %v10136_v53 = vadd.f32 %v5977_v9, %v10742_v18  ;;  %v10142_v24 = vadd.f32 %v5976_v50, %v10744_v1  ;;  %v10148_v3 = vadd.f32 %v5975_v23, %v10746_v37  ;;  %v10153_v15 = vadd.f32 %v5974_v5, %v10747_v30  ;;  %v10766_v29 = vld [vmem:[#allocation8_spill] sm:$0xff]  ;;  %v10767_v55 = vld [vmem:[#allocation10_spill] sm:$0xff]  ;;  %v10770_v23 = vld [vmem:[#allocation109_spill] sm:$0xff] }
0x1186   : > { %7784 = vmatprep.subr.mxu0 %v10113_v34  ;;  %v10768_v9 = vld [vmem:[#allocation12_spill] sm:$0xff]  ;;  %v10769_v50 = vld [vmem:[#allocation14_spill] sm:$0xff] }
0x1187   : > { %7785 = vmatpush3.msra.mxu0 %v10113_v34  ;;  %v10771_v5 = vld [vmem:[#allocation110_spill] sm:$0xff] }
0x1188   : > { %7786 = vmatprep.subr.mxu0 %v10118_v39 }
0x1189   : > { %7787 = vmatpush3.msra.mxu0 %v10118_v39 }
0x118a   : > { %7788 = vmatprep.subr.mxu0 %v10124_v6 }
0x118b   : > { %7789 = vmatpush3.msra.mxu0 %v10124_v6 }
0x118c   : > { %7790 = vmatprep.subr.mxu0 %v10130_v12 }
0x118d   : > { %7791 = vmatpush3.msra.mxu0 %v10130_v12 }
0x118e   : > { %7792 = vmatprep.subr.mxu0 %v10136_v53 }
0x118f   : > { %7793 = vmatpush3.msra.mxu0 %v10136_v53 }
0x1190   : > { %7794 = vmatprep.subr.mxu0 %v10142_v24 }
0x1191   : > { %7795 = vmatpush3.msra.mxu0 %v10142_v24 }
0x1192   : > { %7796 = vmatprep.subr.mxu0 %v10148_v3 }
0x1193   : > { %7797 = vmatpush3.msra.mxu0 %v10148_v3 }
0x1194   : > { %7798 = vmatprep.subr.mxu0 %v10153_v15 }
0x1195   : > { %7799 = vmatpush3.msra.mxu0 %v10153_v15 }
0x1196   : > { %7801 = vmatmul.mubr.msk.f32.vlgmr.msra.gmra.mxu0 %vm688_vm1, %v10748_v38  ;;  %v10772_v38 = vld [vmem:[#allocation111_spill] sm:$0xff] }
0x1197   : > { %7803 = vmatprep.mubr.msk.f32.mxu0 %vm688_vm1, %v10749_v51 }
0x119a   : > { %7804 = vmatmul.mubr.msk.f32.gmra.mxu0 %vm688_vm1, %v10750_v54 }
0x119b   : > { %7806 = vmatprep.mubr.msk.f32.mxu0 %vm688_vm1, %v10751_v20  ;;  %v10773_v20 = vld [vmem:[#allocation112_spill] sm:$0xff] }
0x119e   : > { %7807 = vmatmul.mubr.msk.f32.gmra.mxu0 %vm688_vm1, %v10752_v7 }
0x119f   : > { %7809 = vmatprep.mubr.msk.f32.mxu0 %vm688_vm1, %v10753_v44 }
0x11a2   : > { %7810 = vmatmul.mubr.msk.f32.gmra.mxu0 %vm688_vm1, %v10754_v31  ;;  %v10774_v31 = vld [vmem:[#allocation113_spill] sm:$0xff] }
0x11a3   : > { %7812 = vmatprep.mubr.msk.f32.mxu0 %vm688_vm1, %v10755_v42 }
0x11a6   : > { %7813 = vmatmul.mubr.msk.f32.gmra.mxu0 %vm688_vm1, %v10756_v56 }
0x11a7   : > { %7815 = vmatprep.mubr.msk.f32.mxu0 %vm688_vm1, %v10757_v62  ;;  %v10775_v62 = vld [vmem:[#allocation114_spill] sm:$0xff] }
0x11aa   : > { %7816 = vmatmul.mubr.msk.f32.gmra.mxu0 %vm688_vm1, %v10758_v43 }
0x11ab   : > { %7818 = vmatprep.mubr.msk.f32.mxu0 %vm688_vm1, %v10759_v48 }
0x11ae   : > { %7819 = vmatmul.mubr.msk.f32.gmra.mxu0 %vm688_vm1, %v10760_v40  ;;  %v10776_v40 = vld [vmem:[#allocation115_spill] sm:$0xff] }
0x11af   : > { %7821 = vmatprep.mubr.msk.f32.mxu0 %vm688_vm1, %v10761_v26 }
0x11b2   : > { %7822 = vmatmul.mubr.msk.f32.gmra.mxu0 %vm688_vm1, %v10762_v0 }
0x1256   : > { %v10188_v49 = vpop.f32.mrf.mxu0 }
0x1258   : > { %v10190_v17 = vpop.f32.mrf.mxu0 }
0x125a   : > { %v7805_v10 = vpop.f32.mrf.mxu0 }
0x125b   : > { %v6072_v43 = vadd.f32 %v7805_v10, %v10775_v62 }
0x125c   : > { %v6066_v52 = vpop.f32.mrf.mxu0 }
0x125d   : > { %v6067_v26 = vadd.f32 %v6066_v52, %v10776_v40  ;;  %v10779_v52 = vld [vmem:[#allocation26_spill] sm:$0xff] }
0x125e   : > { %v7808_v13 = vpop.f32.mrf.mxu0 }
0x125f   : > { %v6082_v7 = vadd.f32 %v7808_v13, %v10773_v20  ;;  %v10792_v20 = vld [vmem:[#allocation33_spill] sm:$0xff] }
0x1260   : > { %v6076_v41 = vpop.f32.mrf.mxu0 }
0x1261   : > { %v6077_v42 = vadd.f32 %v6076_v41, %v10774_v31  ;;  %v6140_v48 = vmax.f32 %v6082_v7, 0.0  ;;  %v10778_v41 = vld [vmem:[#allocation119_spill] sm:$0xff]  ;;  %v10793_v31 = vld [vmem:[#allocation32_spill] sm:$0xff] }
0x1262   : > { %v7811_v16 = vpop.f32.mrf.mxu0 }
0x1263   : > { %v6092_v37 = vadd.f32 %v7811_v16, %v10771_v5  ;;  %v6139_v0 = vmax.f32 %v6077_v42, 0.0  ;;  %v10777_v16 = vld [vmem:[#allocation116_spill] sm:$0xff] }
0x1264   : > { %v6086_v35 = vpop.f32.mrf.mxu0  ;;  %v6062_v13 = vadd.f32 %v10188_v49, %v10777_v16  ;;  %v10780_v49 = vld [vmem:[#allocation28_spill] sm:$0xff] }
0x1265   : > { %v6087_v51 = vadd.f32 %v6086_v35, %v10772_v38  ;;  %v6142_v44 = vmax.f32 %v6092_v37, 0.0  ;;  %v6138_v35 = vmax.f32 %v6072_v43, 0.0 }
0x1266   : > { %v7814_v36 = vpop.f32.mrf.mxu0  ;;  %v6136_v10 = vmax.f32 %v6062_v13, 0.0 }
0x1267   : > { %v6102_v18 = vadd.f32 %v7814_v36, %v10769_v50  ;;  %v6141_v56 = vmax.f32 %v6087_v51, 0.0  ;;  %v6057_v36 = vadd.f32 %v10190_v17, %v10778_v41  ;;  %v10783_v17 = vld [vmem:[#allocation121_spill] sm:$0xff] }
0x1268   : > { %v6096_v4 = vpop.f32.mrf.mxu0 }
0x1269   : > { %v6097_v1 = vadd.f32 %v6096_v4, %v10770_v23  ;;  %v6144_v30 = vmax.f32 %v6102_v18, 0.0  ;;  %v6137_v4 = vmax.f32 %v6067_v26, 0.0 }
0x126a   : > { %v7817_v14 = vpop.f32.mrf.mxu0 }
0x126b   : > { %v6112_v2 = vadd.f32 %v7817_v14, %v10767_v55  ;;  %v6143_v54 = vmax.f32 %v6097_v1, 0.0  ;;  %v6135_v14 = vmax.f32 %v6057_v36, 0.0 }
0x126c   : > { %v6106_v58 = vpop.f32.mrf.mxu0 }
0x126d   : > { %v6107_v45 = vadd.f32 %v6106_v58, %v10768_v9  ;;  %v6146_v28 = vmax.f32 %v6112_v2, 0.0  ;;  %v10781_v58 = vld [vmem:[#allocation118_spill] sm:$0xff] }
0x126e   : > { %v7820_v57 = vpop.f32.mrf.mxu0 }
0x126f   : > { %v6122_v47 = vadd.f32 %v7820_v57, %v10764_v46  ;;  %v6145_v25 = vmax.f32 %v6107_v45, 0.0  ;;  %v10782_v57 = vld [vmem:[#allocation120_spill] sm:$0xff] }
0x1270   : > { %v6116_v8 = vpop.f32.mrf.mxu0 }
0x1271   : > { %v6117_v21 = vadd.f32 %v6116_v8, %v10766_v29  ;;  %v6148_v19 = vmax.f32 %v6122_v47, 0.0  ;;  %v10784_v8 = vld [vmem:[#allocation122_spill] sm:$0xff]  ;;  %v10787_v47 = vld [vmem:[#allocation23_spill] sm:$0xff] }
0x1272   : > { %v7823_v59 = vpop.f32.mrf.mxu0 }
0x1273   : > { %v6132_v32 = vadd.f32 %v7823_v59, %v10763_v60  ;;  %v6147_v22 = vmax.f32 %v6117_v21, 0.0  ;;  %v10785_v59 = vld [vmem:[#allocation123_spill] sm:$0xff]  ;;  %v10788_v21 = vld [vmem:[#allocation24_spill] sm:$0xff] }
0x1274   : > { %v6126_v33 = vpop.f32.mrf.mxu0 }
0x1275   : > { %v6150_v27 = vmax.f32 %v6132_v32, 0.0  ;;  %v6127_v11 = vadd.f32 %v6126_v33, %v10765_v63  ;;  %v10786_v32 = vld [vmem:[#allocation21_spill] sm:$0xff] }
0x1277   : > { %v6149_v61 = vmax.f32 %v6127_v11, 0.0  ;;  %7824 = vmatprep.subr.mxu1 %v6150_v27 }
0x1278   : > { %7825 = vmatpush3.msra.mxu1 %v6150_v27 }
0x1279   : > { %7826 = vmatprep.subr.mxu1 %v6149_v61 }
0x127a   : > { %7827 = vmatpush3.msra.mxu1 %v6149_v61 }
0x127b   : > { %7828 = vmatprep.subr.mxu1 %v6148_v19 }
0x127c   : > { %7829 = vmatpush3.msra.mxu1 %v6148_v19  ;;  %v10789_v19 = vld [vmem:[#allocation27_spill] sm:$0xff] }
0x127d   : > { %7830 = vmatprep.subr.mxu1 %v6147_v22 }
0x127e   : > { %7831 = vmatpush3.msra.mxu1 %v6147_v22 }
0x127f   : > { %7832 = vmatprep.subr.mxu1 %v6146_v28 }
0x1280   : > { %7833 = vmatpush3.msra.mxu1 %v6146_v28  ;;  %v10790_v28 = vld [vmem:[#allocation31_spill] sm:$0xff] }
0x1281   : > { %7834 = vmatprep.subr.mxu1 %v6145_v25 }
0x1282   : > { %7835 = vmatpush3.msra.mxu1 %v6145_v25  ;;  %v10791_v25 = vld [vmem:[#allocation25_spill] sm:$0xff] }
0x1283   : > { %7836 = vmatprep.subr.mxu1 %v6144_v30 }
0x1284   : > { %7837 = vmatpush3.msra.mxu1 %v6144_v30 }
0x1285   : > { %7838 = vmatprep.subr.mxu1 %v6143_v54 }
0x1286   : > { %7839 = vmatpush3.msra.mxu1 %v6143_v54 }
0x1287   : > { %7840 = vmatprep.subr.mxu1 %v6142_v44 }
0x1288   : > { %7841 = vmatpush3.msra.mxu1 %v6142_v44 }
0x1289   : > { %7842 = vmatprep.subr.mxu1 %v6141_v56 }
0x128a   : > { %7843 = vmatpush3.msra.mxu1 %v6141_v56 }
0x128b   : > { %7844 = vmatprep.subr.mxu1 %v6140_v48 }
0x128c   : > { %7845 = vmatpush3.msra.mxu1 %v6140_v48 }
0x128d   : > { %7846 = vmatprep.subr.mxu1 %v6139_v0 }
0x128e   : > { %7847 = vmatpush3.msra.mxu1 %v6139_v0 }
0x128f   : > { %7848 = vmatprep.subr.mxu1 %v6138_v35 }
0x1290   : > { %7849 = vmatpush3.msra.mxu1 %v6138_v35 }
0x1291   : > { %7850 = vmatprep.subr.mxu1 %v6137_v4 }
0x1292   : > { %7851 = vmatpush3.msra.mxu1 %v6137_v4 }
0x1293   : > { %7852 = vmatprep.subr.mxu1 %v6136_v10 }
0x1294   : > { %7853 = vmatpush3.msra.mxu1 %v6136_v10 }
0x1295   : > { %7854 = vmatprep.subr.mxu1 %v6135_v14 }
0x1296   : > { %7855 = vmatpush3.msra.mxu1 %v6135_v14 }
0x1297   : > { %7857 = vmatmul.mubr.f32.vlgmr.msra.gmra.mxu1 %v10779_v52 }
0x1298   : > { %7859 = vmatprep.mubr.f32.mxu1 %v10780_v49 }
0x129b   : > { %7860 = vmatmul.mubr.f32.gmra.mxu1 %v10781_v58 }
0x129c   : > { %7862 = vmatprep.mubr.f32.mxu1 %v10782_v57 }
0x129f   : > { %7863 = vmatmul.mubr.f32.gmra.mxu1 %v10783_v17 }
0x12a0   : > { %7865 = vmatprep.mubr.f32.mxu1 %v10784_v8 }
0x12a3   : > { %7866 = vmatmul.mubr.f32.gmra.mxu1 %v10785_v59 }
0x1357   : > { %v7858_v60 = vpop.f32.mrf.mxu1 }
0x1358   : > { %v6223_v33 = vadd.f32 %v7858_v60, %v10786_v32 }
0x1359   : > { %v6217_v46 = vpop.f32.mrf.mxu1 }
0x135a   : > { %v6218_v27 = vadd.f32 %v6217_v46, %v10787_v47  ;;  %v6257_v11 = vadd.f32 %v6223_v33, %v10148_v3 }
0x135b   : > { %v7861_v63 = vpop.f32.mrf.mxu1 }
0x135c   : > { %v6256_v29 = vadd.f32 %v6218_v27, %v10153_v15  ;;  %v6233_v61 = vadd.f32 %v7861_v63, %v10788_v21  ;;  %v6265_v22 = vsel %vm688_vm1, %v6257_v11, 0.0 }
0x135d   : > { %v6227_v55 = vpop.f32.mrf.mxu1 }
0x135e   : > { %v6264_v2 = vsel %vm688_vm1, %v6256_v29, 0.0  ;;  %v6228_v9 = vadd.f32 %v6227_v55, %v10789_v19  ;;  %v6259_v50 = vadd.f32 %v6233_v61, %v10136_v53 }
0x135f   : > { %v7864_v45 = vpop.f32.mrf.mxu1  ;;  %v6266_v1 = vadd.f32 %v6265_v22, %v6264_v2 }
0x1360   : > { %v6258_v18 = vadd.f32 %v6228_v9, %v10142_v24  ;;  %v6243_v23 = vadd.f32 %v7864_v45, %v10790_v28  ;;  %v6269_v38 = vsel %vm688_vm1, %v6259_v50, 0.0 }
0x1361   : > { %v6237_v3 = vpop.f32.mrf.mxu1 }
0x1362   : > { %v6267_v15 = vsel %vm688_vm1, %v6258_v18, 0.0  ;;  %v6238_v5 = vadd.f32 %v6237_v3, %v10791_v25  ;;  %v6261_v51 = vadd.f32 %v6243_v23, %v10124_v6 }
0x1363   : > { %v6268_v37 = vadd.f32 %v6267_v15, %v6266_v1  ;;  %v7867_v30 = vpop.f32.mrf.mxu1 }
0x1364   : > { %v6260_v54 = vadd.f32 %v6238_v5, %v10130_v12  ;;  %v6253_v53 = vadd.f32 %v7867_v30, %v10792_v20  ;;  %v6273_v62 = vsel %vm688_vm1, %v6261_v51, 0.0 }
0x1365   : > { %v6270_v7 = vadd.f32 %v6269_v38, %v6268_v37  ;;  %v6247_v24 = vpop.f32.mrf.mxu1 }
0x1366   : > { %v6271_v44 = vsel %vm688_vm1, %v6260_v54, 0.0  ;;  %v6248_v42 = vadd.f32 %v6247_v24, %v10793_v31  ;;  %v6263_v43 = vadd.f32 %v6253_v53, %v10113_v34 }
0x1367   : > { %v6272_v56 = vadd.f32 %v6271_v44, %v6270_v7 }
0x1368   : > { %v6262_v48 = vadd.f32 %v6248_v42, %v10118_v39  ;;  %v6277_v12 = vsel %vm688_vm1, %v6263_v43, 0.0 }
0x1369   : > { %v6274_v40 = vadd.f32 %v6273_v62, %v6272_v56  ;;  %v10794_v56 = vld [vmem:[#allocation124_spill] sm:$0xff] }
0x136a   : > { %v6275_v6 = vsel %vm688_vm1, %v6262_v48, 0.0 }
0x136b   : > { %v6276_v26 = vadd.f32 %v6275_v6, %v6274_v40  ;;  %v10796_v40 = vld [vmem:[#allocation45_spill] sm:$0xff] }
0x136d   : > { %v6278_v0 = vadd.f32 %v6277_v12, %v6276_v26  ;;  %v10797_v26 = vld [vmem:[#allocation126_spill] sm:$0xff] }
0x136f   : > { %v6279_v16 = vrot.slane %v6278_v0, 4 }
0x1371   : > { %v6280_v13 = vadd.f32 %v6279_v16, %v6278_v0  ;;  %v10798_v0 = vld [vmem:[#allocation34_spill] sm:$0xff] }
0x1373   : > { %v6281_v35 = vrot.slane %v6280_v13, 2 }
0x1375   : > { %v6282_v41 = vadd.f32 %v6281_v35, %v6280_v13  ;;  %v10799_v13 = vld [vmem:[#allocation128_spill] sm:$0xff] }
0x1377   : > { %v6283_v36 = vrot.slane %v6282_v41, 1 }
0x1379   : > { %v6284_v4 = vadd.f32 %v6283_v36, %v6282_v41  ;;  %v10800_v41 = vld [vmem:[#allocation125_spill] sm:$0xff] }
0x137b   : > { %v6285_v10 = vmul.f32 0.015625, %v6284_v4  ;;  %v10801_v4 = vld [vmem:[#allocation130_spill] sm:$0xff] }
0x137d   : > { %v6286_v14 = vsub.f32 %v6256_v29, %v6285_v10  ;;  %v6287_v52 = vsub.f32 %v6257_v11, %v6285_v10  ;;  %v6288_v49 = vsub.f32 %v6258_v18, %v6285_v10  ;;  %v6289_v34 = vsub.f32 %v6259_v50, %v6285_v10 }
0x137e   : > { %v6290_v58 = vsub.f32 %v6260_v54, %v6285_v10  ;;  %v6291_v8 = vsub.f32 %v6261_v51, %v6285_v10  ;;  %v6292_v46 = vsub.f32 %v6262_v48, %v6285_v10  ;;  %v6293_v29 = vsub.f32 %v6263_v43, %v6285_v10  ;;  %v10795_v43 = vld [vmem:[#allocation44_spill] sm:$0xff] }
0x137f   : > { %v6294_v39 = vmul.f32 %v6286_v14, %v6286_v14  ;;  %v6295_v57 = vmul.f32 %v6287_v52, %v6287_v52  ;;  %v6296_v17 = vmul.f32 %v6288_v49, %v6288_v49  ;;  %v6297_v59 = vmul.f32 %v6289_v34, %v6289_v34 }
0x1380   : > { %v6298_v47 = vmul.f32 %v6290_v58, %v6290_v58  ;;  %v6299_v11 = vmul.f32 %v6291_v8, %v6291_v8  ;;  %v6300_v55 = vmul.f32 %v6292_v46, %v6292_v46  ;;  %v6301_v9 = vmul.f32 %v6293_v29, %v6293_v29 }
0x1381   : > { %v6302_v60 = vsel %vm688_vm1, %v6294_v39, 0.0  ;;  %v6303_v32 = vsel %vm688_vm1, %v6295_v57, 0.0  ;;  %v6305_v27 = vsel %vm688_vm1, %v6296_v17, 0.0  ;;  %v6307_v21 = vsel %vm688_vm1, %v6297_v59, 0.0  ;;  %v10805_v57 = vld [vmem:[#allocation131_spill] sm:$0xff] }
0x1382   : > { %v6304_v33 = vadd.f32 %v6303_v32, %v6302_v60  ;;  %v6309_v2 = vsel %vm688_vm1, %v6298_v47, 0.0  ;;  %v6311_v45 = vsel %vm688_vm1, %v6299_v11, 0.0  ;;  %v6313_v50 = vsel %vm688_vm1, %v6300_v55, 0.0  ;;  %v10807_v60 = vld [vmem:[#allocation133_spill] sm:$0xff]  ;;  %v10809_v47 = vld [vmem:[#allocation135_spill] sm:$0xff] }
0x1383   : > { %v6315_v28 = vsel %vm688_vm1, %v6301_v9, 0.0 }
0x1384   : > { %v6306_v63 = vadd.f32 %v6305_v27, %v6304_v33  ;;  %v10808_v33 = vld [vmem:[#allocation136_spill] sm:$0xff] }
0x1386   : > { %v6308_v61 = vadd.f32 %v6307_v21, %v6306_v63 }
0x1388   : > { %v6310_v19 = vadd.f32 %v6309_v2, %v6308_v61 }
0x138a   : > { %v6312_v22 = vadd.f32 %v6311_v45, %v6310_v19 }
0x138c   : > { %v6314_v18 = vadd.f32 %v6313_v50, %v6312_v22 }
0x138e   : > { %v6316_v23 = vadd.f32 %v6315_v28, %v6314_v18 }
0x1390   : > { %v6317_v1 = vrot.slane %v6316_v23, 4 }
0x1392   : > { %v6318_v3 = vadd.f32 %v6317_v1, %v6316_v23 }
0x1394   : > { %v6319_v15 = vrot.slane %v6318_v3, 2 }
0x1396   : > { %v6320_v25 = vadd.f32 %v6319_v15, %v6318_v3 }
0x1398   : > { %v6321_v5 = vrot.slane %v6320_v25, 1 }
0x139a   : > { %v6322_v37 = vadd.f32 %v6321_v5, %v6320_v25 }
0x139c   : > { %v6323_v30 = vmul.f32 0.015625, %v6322_v37 }
0x139e   : > { %v6324_v38 = vadd.f32 1e-05, %v6323_v30 }
0x13a0   : > { %8070 = vrsqrt.f32 %v6324_v38 }
0x13ad   : > { %v8071_v51 = vpop.eup %8070 }
0x13ae   : > { %v6326_v54 = vmul.f32 %v8071_v51, %v6286_v14  ;;  %v6327_v20 = vmul.f32 %v8071_v51, %v6287_v52  ;;  %v6328_v53 = vmul.f32 %v8071_v51, %v6288_v49  ;;  %v6329_v7 = vmul.f32 %v8071_v51, %v6289_v34  ;;  %v10802_v14 = vld [vmem:[#allocation127_spill] sm:$0xff]  ;;  %v10803_v49 = vld [vmem:[#allocation132_spill] sm:$0xff] }
0x13af   : > { %v6330_v24 = vmul.f32 %v8071_v51, %v6290_v58  ;;  %v6331_v44 = vmul.f32 %v8071_v51, %v6291_v8  ;;  %v6332_v31 = vmul.f32 %v8071_v51, %v6292_v46  ;;  %v6333_v42 = vmul.f32 %v8071_v51, %v6293_v29  ;;  %v10804_v58 = vld [vmem:[#allocation129_spill] sm:$0xff]  ;;  %v10806_v8 = vld [vmem:[#allocation134_spill] sm:$0xff] }
0x13b0   : > { %v6334_v62 = vmul.f32 %v6326_v54, %v10794_v56  ;;  %v6335_v48 = vmul.f32 %v6327_v20, %v10795_v43  ;;  %v6336_v6 = vmul.f32 %v6328_v53, %v10796_v40  ;;  %v6337_v12 = vmul.f32 %v6329_v7, %v10797_v26 }
0x13b1   : > { %v6338_v16 = vmul.f32 %v6330_v24, %v10798_v0  ;;  %v6339_v35 = vmul.f32 %v6331_v44, %v10799_v13  ;;  %v6340_v36 = vmul.f32 %v6332_v31, %v10800_v41  ;;  %v6341_v10 = vmul.f32 %v6333_v42, %v10801_v4 }
0x13b2   : > { %v6342_v52 = vadd.f32 %v6334_v62, %v10802_v14  ;;  %v6343_v34 = vadd.f32 %v6335_v48, %v10803_v49  ;;  %v6344_v39 = vadd.f32 %v6336_v6, %v10804_v58  ;;  %v6345_v17 = vadd.f32 %v6337_v12, %v10805_v57 }
0x13b3   : > { %v6346_v59 = vadd.f32 %v6338_v16, %v10806_v8  ;;  %v6347_v32 = vadd.f32 %v6339_v35, %v10807_v60  ;;  %v6348_v46 = vadd.f32 %v6340_v36, %v10808_v33  ;;  %v6349_v27 = vadd.f32 %v6341_v10, %v10809_v47 }
0x13b4   : > { %6728 = vst.msk [vmem:[%s10317_s11 + $0x40] sm:$0xff] %vm688_vm1, %v6342_v52  ;;  %6729 = vst.msk [vmem:[%s10317_s11 + $0x48] sm:$0xff] %vm688_vm1, %v6343_v34 }
0x13b5   : > { %6730 = vst.msk [vmem:[%s10317_s11 + $0x50] sm:$0xff] %vm688_vm1, %v6344_v39  ;;  %6731 = vst.msk [vmem:[%s10317_s11 + $0x58] sm:$0xff] %vm688_vm1, %v6345_v17 }
0x13b6   : > { %6732 = vst.msk [vmem:[%s10317_s11 + $0x60] sm:$0xff] %vm688_vm1, %v6346_v59  ;;  %6733 = vst.msk [vmem:[%s10317_s11 + $0x68] sm:$0xff] %vm688_vm1, %v6347_v32 }
0x13b7   : > { %6734 = vst.msk [vmem:[%s10317_s11 + $0x70] sm:$0xff] %vm688_vm1, %v6348_v46  ;;  %6735 = vst.msk [vmem:[%s10317_s11 + $0x78] sm:$0xff] %vm688_vm1, %v6349_v27 }
0x13b8 PF: > { %s21_s19 = sadd.s32 1, %s8110_s19   ;;  %s10810_s17 = smov %s8106_s18 }
0x13b9   : > { %p18_p5 = scmp.ge.s32.totalorder %s21_s19, 5   ;;  %s10811_s18 = smov %s10813_s20 }
0x13bb   :  { %20 = sbr.rel (!%p18_p5) target bundleno = 2 (0x2), region = 115 }

</bundles_post_ra>
